<compile_context>
chip_gen: v7x
topology: tpu7x:2x2x1
jax: 0.10.0
libtpu: 0.0.40
codegen_flags: <defaults>
</compile_context>

<pallas_src>
import functools

import jax
import jax.numpy as jnp
from jax import lax
from jax.experimental import pallas as pl
from jax.experimental.pallas import tpu as pltpu

NEG_INF = -1e30


def attention_gated_kernel(x_ref, wf_ref, bf_ref, wab_ref, wc_ref,
                           wcls_ref, bcls_ref, out_ref,
                           m_scr, l_scr, acc_scr, *, tn, n_valid):
    i = pl.program_id(0)

    @pl.when(i == 0)
    def _init():
        m_scr[...] = jnp.full_like(m_scr, NEG_INF)
        l_scr[...] = jnp.zeros_like(l_scr)
        acc_scr[...] = jnp.zeros_like(acc_scr)

    x = x_ref[...]                                                  # (TN, 1024) bf16

    # feature: Linear(1024, 512) + ReLU   (Dropout(0.25) is identity in eval)
    h = jnp.dot(x, wf_ref[...], preferred_element_type=jnp.float32) + bf_ref[...]
    h = jnp.maximum(h, 0.0)                                         # (TN, 512) f32

    # gated attention branches: fused (512, 256) dot, split at lane 128
    ab = jnp.dot(h.astype(jnp.bfloat16), wab_ref[...],
                 preferred_element_type=jnp.float32)                # (TN, 256) f32
    a = jnp.maximum(ab[:, :128], 0.0)                               # ReLU branch
    b = jax.nn.sigmoid(ab[:, 128:])                                 # Sigmoid branch
    g = a * b                                                       # (TN, 128)

    # attention_c: Linear(128, 1, bias=False); wc stored as (1, 128)
    logit = jnp.sum(g * wc_ref[...], axis=1, keepdims=True)         # (TN, 1)

    # mask padded rows of the (zero-padded) last tile
    row = i * tn + lax.broadcasted_iota(jnp.int32, (tn, 1), 0)
    logit = jnp.where(row < n_valid, logit, NEG_INF)

    # online softmax over instances + rescaled pooled accumulator
    m_prev = m_scr[...]                                             # (1, 1)
    m_new = jnp.maximum(m_prev, jnp.max(logit, axis=0, keepdims=True))
    scale = jnp.exp(m_prev - m_new)                                 # (1, 1)
    p = jnp.exp(logit - m_new)                                      # (TN, 1), 0 at masked
    l_scr[...] = scale * l_scr[...] + jnp.sum(p, axis=0, keepdims=True)
    acc_scr[...] = scale * acc_scr[...] + jnp.dot(
        jnp.transpose(p), h, preferred_element_type=jnp.float32)    # (1, 512)
    m_scr[...] = m_new

    @pl.when(i == pl.num_programs(0) - 1)
    def _finalize():
        pooled = acc_scr[...] / l_scr[...]                          # (1, 512)
        out_ref[...] = (jnp.dot(pooled, wcls_ref[...],
                                preferred_element_type=jnp.float32)
                        + bcls_ref[...])                            # (1, n_classes)


def attention_gated_forward(x, params, *, tn=128):
    """x: (1, N, 1024) float32 (matches the torch module's input convention).

    tn: rows per tile (use 256/512 on v6e/v7x for large bags; 128 on v5e).
    """
    x2d = x[0]                                                      # squeeze(0)
    n = x2d.shape[0]
    n_pad = pl.cdiv(n, tn) * tn
    if n_pad != n:
        x2d = jnp.pad(x2d, ((0, n_pad - n), (0, 0)))
    x_bf = x2d.astype(jnp.bfloat16)

    wf = params["wf"].astype(jnp.bfloat16)                          # (1024, 512)
    bf = params["bf"]                                               # (1, 512)   f32
    wab = jnp.concatenate([params["wa"], params["wb"]],
                          axis=1).astype(jnp.bfloat16)              # (512, 256)
    wc = params["wc"]                                               # (1, 128)   f32
    wcls = params["wcls"]                                           # (512, C)   f32
    bcls = params["bcls"]                                           # (1, C)     f32
    n_classes = wcls.shape[1]

    kernel = functools.partial(attention_gated_kernel, tn=tn, n_valid=n)

    cost = pl.CostEstimate(
        flops=2 * n_pad * (1024 * 512 + 512 * 256 + 128 + 512)
              + 2 * 512 * n_classes,
        transcendentals=n_pad * 129,              # sigmoid(128) + exp(1) per row
        bytes_accessed=n_pad * 1024 * 2           # bf16 x stream (dominant)
                       + (1024 * 512 + 512 * 256) * 2
                       + (512 + 128 + 512 * n_classes + n_classes) * 4,
    )

    out = pl.pallas_call(
        kernel,
        out_shape=jax.ShapeDtypeStruct((1, n_classes), jnp.float32),
        grid_spec=pltpu.PrefetchScalarGridSpec(
            num_scalar_prefetch=0,
            grid=(n_pad // tn,),
            in_specs=[
                pl.BlockSpec((tn, 1024), lambda i: (i, 0)),          # x (streamed)
                pl.BlockSpec((1024, 512), lambda i: (0, 0)),         # Wf (resident)
                pl.BlockSpec((1, 512), lambda i: (0, 0)),            # bf
                pl.BlockSpec((512, 256), lambda i: (0, 0)),          # Wab (fused)
                pl.BlockSpec((1, 128), lambda i: (0, 0)),            # Wc
                pl.BlockSpec((512, n_classes), lambda i: (0, 0)),    # Wcls
                pl.BlockSpec((1, n_classes), lambda i: (0, 0)),      # bcls
            ],
            out_specs=pl.BlockSpec((1, n_classes), lambda i: (0, 0)),
            scratch_shapes=[
                pltpu.VMEM((1, 1), jnp.float32),      # running max m
                pltpu.VMEM((1, 1), jnp.float32),      # running denom l
                pltpu.VMEM((1, 512), jnp.float32),    # pooled accumulator
            ],
        ),
        compiler_params=pltpu.CompilerParams(
            dimension_semantics=("arbitrary",)),      # reduction over N tiles
        cost_estimate=cost,
    )(x_bf, wf, bf, wab, wc, wcls, bcls)
    return out


def xavier_normal(key, fan_in, fan_out):
    std = (2.0 / (fan_in + fan_out)) ** 0.5
    # stored as (in, out) so the kernel can do x @ W directly
    return std * jax.random.normal(key, (fan_in, fan_out), dtype=jnp.float32)


def init_params(key, n_classes):
    k1, k2, k3, k4, k5 = jax.random.split(key, 5)
    return {
        "wf":   xavier_normal(k1, 1024, 512),
        "bf":   jnp.zeros((1, 512), jnp.float32),
        "wa":   xavier_normal(k2, 512, 128),
        "wb":   xavier_normal(k3, 512, 128),
        # attention_c weight is (1, 128) in torch (out, in); keep that layout
        # and contract against the lane dim inside the kernel.
        "wc":   xavier_normal(k4, 128, 1).reshape(1, 128),
        "wcls": xavier_normal(k5, 512, n_classes),
        "bcls": jnp.zeros((1, n_classes), jnp.float32),
    }


def reference_forward_f32(x, p):
    """Pure-JAX f32 reference (matches the PyTorch module in eval mode)."""
    h = jnp.maximum(x[0] @ p["wf"] + p["bf"], 0.0)
    a = jnp.maximum(h @ p["wa"], 0.0)
    b = jax.nn.sigmoid(h @ p["wb"])
    logit = jnp.sum((a * b) * p["wc"], axis=1, keepdims=True)
    w = jax.nn.softmax(logit, axis=0)
    pooled = (w * h).sum(axis=0, keepdims=True)
    return pooled @ p["wcls"] + p["bcls"]


def reference_forward_mixed(x, p):
    """Pure-JAX reference using the same bf16-input / f32-accum matmuls as the kernel."""
    xb = x[0].astype(jnp.bfloat16)
    wf = p["wf"].astype(jnp.bfloat16)
    wab = jnp.concatenate([p["wa"], p["wb"]], axis=1).astype(jnp.bfloat16)
    h = jnp.maximum(
        jnp.dot(xb, wf, preferred_element_type=jnp.float32) + p["bf"], 0.0)
    ab = jnp.dot(h.astype(jnp.bfloat16), wab, preferred_element_type=jnp.float32)
    a = jnp.maximum(ab[:, :128], 0.0)
    b = jax.nn.sigmoid(ab[:, 128:])
    logit = jnp.sum((a * b) * p["wc"], axis=1, keepdims=True)
    w = jax.nn.softmax(logit, axis=0)
    pooled = (w * h).sum(axis=0, keepdims=True)
    return pooled @ p["wcls"] + p["bcls"]


if __name__ == "__main__":
    key = jax.random.PRNGKey(0)
    kx, kp = jax.random.split(key)

    n_instances = 300      # bag size N (not a multiple of TN -> exercises masking)
    n_classes = 2

    x = jax.random.normal(kx, (1, n_instances, 1024), dtype=jnp.float32)
    params = init_params(kp, n_classes)

    y = attention_gated_forward(x, params, tn=128)
    y = jax.block_until_ready(y)

    y_mixed = reference_forward_mixed(x, params)
    y_f32 = reference_forward_f32(x, params)

    assert y.shape == (1, n_classes)
    # tight check vs same-precision reference (validates tiling / online softmax)
    assert jnp.allclose(y, y_mixed, atol=5e-3, rtol=5e-3), (y, y_mixed)
    # loose check vs full-f32 reference (validates overall semantics under bf16)
    assert jnp.allclose(y, y_f32, atol=5e-2, rtol=5e-2), (y, y_f32)

    print("KERNEL_OK")
</pallas_src>

<mosaic_0001>
module attributes {stable_mosaic.version = 11 : i64} {
  func.func @attention_gated_kernel(%arg0: i32, %arg1: memref<128x1024xbf16, #tpu.memory_space<vmem>>, %arg2: memref<1024x512xbf16, #tpu.memory_space<vmem>>, %arg3: memref<1x512xf32, #tpu.memory_space<vmem>>, %arg4: memref<512x256xbf16, #tpu.memory_space<vmem>>, %arg5: memref<1x128xf32, #tpu.memory_space<vmem>>, %arg6: memref<512x2xf32, #tpu.memory_space<vmem>>, %arg7: memref<1x2xf32, #tpu.memory_space<vmem>>, %arg8: memref<1x2xf32, #tpu.memory_space<vmem>>, %arg9: memref<1x1xf32, #tpu.memory_space<vmem>>, %arg10: memref<1x1xf32, #tpu.memory_space<vmem>>, %arg11: memref<1x512xf32, #tpu.memory_space<vmem>>) attributes {dimension_semantics = [#tpu.dimension_semantics<arbitrary>], iteration_bounds = array<i64: 3>, scalar_prefetch = 0 : i64, scratch_operands = 3 : i64, tpu.core_type = #tpu.core_type<tc>, window_params = [{transform_indices = @transform_0, window_bounds = array<i64: 128, 1024>}, {pipeline_mode = #tpu.pipeline_mode<synchronous>, transform_indices = @transform_1, window_bounds = array<i64: 1024, 512>}, {pipeline_mode = #tpu.pipeline_mode<synchronous>, transform_indices = @transform_2, window_bounds = array<i64: 1, 512>}, {pipeline_mode = #tpu.pipeline_mode<synchronous>, transform_indices = @transform_3, window_bounds = array<i64: 512, 256>}, {pipeline_mode = #tpu.pipeline_mode<synchronous>, transform_indices = @transform_4, window_bounds = array<i64: 1, 128>}, {pipeline_mode = #tpu.pipeline_mode<synchronous>, transform_indices = @transform_5, window_bounds = array<i64: 512, 2>}, {pipeline_mode = #tpu.pipeline_mode<synchronous>, transform_indices = @transform_6, window_bounds = array<i64: 1, 2>}, {pipeline_mode = #tpu.pipeline_mode<synchronous>, transform_indices = @transform_7, window_bounds = array<i64: 1, 2>}]} {
    %c0_i32 = arith.constant 0 : i32
    %0 = arith.cmpi eq, %arg0, %c0_i32 : i32
    %1 = arith.extui %0 : i1 to i32
    %c0_i32_0 = arith.constant 0 : i32
    %2 = arith.cmpi ne, %1, %c0_i32_0 : i32
    scf.if %2 {
      %cst_32 = arith.constant -1.000000e+30 : f32
      %63 = vector.broadcast %cst_32 : f32 to vector<1x1xf32>
      %c0_33 = arith.constant 0 : index
      %c0_34 = arith.constant 0 : index
      %64 = vector.load %arg9[%c0_33, %c0_34] : memref<1x1xf32, #tpu.memory_space<vmem>>, vector<1x1xf32>
      tpu.vector_store %arg9[%c0_33, %c0_34], %63 {strides = array<i32>} : memref<1x1xf32, #tpu.memory_space<vmem>>, vector<1x1xf32>,
      %cst_35 = arith.constant 0.000000e+00 : f32
      %65 = vector.broadcast %cst_35 : f32 to vector<1x1xf32>
      %c0_36 = arith.constant 0 : index
      %c0_37 = arith.constant 0 : index
      %66 = vector.load %arg10[%c0_36, %c0_37] : memref<1x1xf32, #tpu.memory_space<vmem>>, vector<1x1xf32>
      tpu.vector_store %arg10[%c0_36, %c0_37], %65 {strides = array<i32>} : memref<1x1xf32, #tpu.memory_space<vmem>>, vector<1x1xf32>,
      %cst_38 = arith.constant 0.000000e+00 : f32
      %67 = vector.broadcast %cst_38 : f32 to vector<1x512xf32>
      %c0_39 = arith.constant 0 : index
      %c0_40 = arith.constant 0 : index
      %68 = vector.load %arg11[%c0_39, %c0_40] : memref<1x512xf32, #tpu.memory_space<vmem>>, vector<1x512xf32>
      tpu.vector_store %arg11[%c0_39, %c0_40], %67 {strides = array<i32>} : memref<1x512xf32, #tpu.memory_space<vmem>>, vector<1x512xf32>,
    } else {
    }
    %c0 = arith.constant 0 : index
    %c0_1 = arith.constant 0 : index
    %3 = vector.load %arg1[%c0, %c0_1] : memref<128x1024xbf16, #tpu.memory_space<vmem>>, vector<128x1024xbf16>
    %c0_2 = arith.constant 0 : index
    %c0_3 = arith.constant 0 : index
    %4 = vector.load %arg2[%c0_2, %c0_3] : memref<1024x512xbf16, #tpu.memory_space<vmem>>, vector<1024x512xbf16>
    %cst = arith.constant dense<0.000000e+00> : vector<128x512xf32>
    %5 = tpu.matmul %3, %4, %cst {dimension_numbers = #tpu.dot_dimension_numbers<[1], [0], [0], [1], [0, 0, 1, 1], [], []>} : vector<128x1024xbf16>, vector<1024x512xbf16>, vector<128x512xf32> -> vector<128x512xf32>
    %c0_4 = arith.constant 0 : index
    %c0_5 = arith.constant 0 : index
    %6 = vector.load %arg3[%c0_4, %c0_5] : memref<1x512xf32, #tpu.memory_space<vmem>>, vector<1x512xf32>
    %7 = vector.broadcast %6 : vector<1x512xf32> to vector<128x512xf32>
    %8 = arith.addf %5, %7 : vector<128x512xf32>
    %cst_6 = arith.constant 0.000000e+00 : f32
    %9 = vector.broadcast %cst_6 : f32 to vector<128x512xf32>
    %10 = arith.maximumf %8, %9 : vector<128x512xf32>
    %11 = arith.truncf %10 : vector<128x512xf32> to vector<128x512xbf16>
    %c0_7 = arith.constant 0 : index
    %c0_8 = arith.constant 0 : index
    %12 = vector.load %arg4[%c0_7, %c0_8] : memref<512x256xbf16, #tpu.memory_space<vmem>>, vector<512x256xbf16>
    %cst_9 = arith.constant dense<0.000000e+00> : vector<128x256xf32>
    %13 = tpu.matmul %11, %12, %cst_9 {dimension_numbers = #tpu.dot_dimension_numbers<[1], [0], [0], [1], [0, 0, 1, 1], [], []>} : vector<128x512xbf16>, vector<512x256xbf16>, vector<128x256xf32> -> vector<128x256xf32>
    %14 = vector.extract_strided_slice %13 {offsets = [0, 0], sizes = [128, 128], strides = [1, 1]} : vector<128x256xf32> to vector<128x128xf32>
    %cst_10 = arith.constant 0.000000e+00 : f32
    %15 = vector.broadcast %cst_10 : f32 to vector<128x128xf32>
    %16 = arith.maximumf %14, %15 : vector<128x128xf32>
    %17 = vector.extract_strided_slice %13 {offsets = [0, 128], sizes = [128, 128], strides = [1, 1]} : vector<128x256xf32> to vector<128x128xf32>
    %18 = arith.negf %17 : vector<128x128xf32>
    %19 = math.exp %18 : vector<128x128xf32>
    %cst_11 = arith.constant 1.000000e+00 : f32
    %20 = vector.broadcast %cst_11 : f32 to vector<128x128xf32>
    %21 = arith.addf %20, %19 : vector<128x128xf32>
    %22 = arith.divf %20, %21 : vector<128x128xf32>
    %23 = arith.mulf %16, %22 : vector<128x128xf32>
    %c0_12 = arith.constant 0 : index
    %c0_13 = arith.constant 0 : index
    %24 = vector.load %arg5[%c0_12, %c0_13] : memref<1x128xf32, #tpu.memory_space<vmem>>, vector<1x128xf32>
    %25 = vector.broadcast %24 : vector<1x128xf32> to vector<128x128xf32>
    %26 = arith.mulf %23, %25 : vector<128x128xf32>
    %cst_14 = arith.constant dense<0.000000e+00> : vector<128xf32>
    %27 = vector.multi_reduction <add>, %26, %cst_14 [1] : vector<128x128xf32> to vector<128xf32>
    %28 = vector.shape_cast %27 : vector<128xf32> to vector<128x1xf32>
    %c128_i32 = arith.constant 128 : i32
    %29 = arith.muli %arg0, %c128_i32 : i32
    %30 = tpu.iota {dimensions = array<i32: 0>} : vector<128x1xi32>
    %31 = vector.broadcast %29 : i32 to vector<128x1xi32>
    %32 = arith.addi %31, %30 : vector<128x1xi32>
    %c300_i32 = arith.constant 300 : i32
    %33 = vector.broadcast %c300_i32 : i32 to vector<128x1xi32>
    %34 = arith.cmpi slt, %32, %33 : vector<128x1xi32>
    %cst_15 = arith.constant -1.000000e+30 : f32
    %35 = vector.broadcast %cst_15 : f32 to vector<128x1xf32>
    %36 = arith.select %34, %28, %35 : vector<128x1xi1>, vector<128x1xf32>
    %c0_16 = arith.constant 0 : index
    %c0_17 = arith.constant 0 : index
    %37 = vector.load %arg9[%c0_16, %c0_17] : memref<1x1xf32, #tpu.memory_space<vmem>>, vector<1x1xf32>
    %cst_18 = arith.constant dense<0xFF800000> : vector<1xf32>
    %38 = vector.multi_reduction <maximumf>, %36, %cst_18 [0] : vector<128x1xf32> to vector<1xf32>
    %39 = vector.shape_cast %38 : vector<1xf32> to vector<1x1xf32>
    %40 = arith.maximumf %37, %39 : vector<1x1xf32>
    %41 = arith.subf %37, %40 : vector<1x1xf32>
    %42 = math.exp %41 : vector<1x1xf32>
    %43 = vector.broadcast %40 : vector<1x1xf32> to vector<128x1xf32>
    %44 = arith.subf %36, %43 : vector<128x1xf32>
    %45 = math.exp %44 : vector<128x1xf32>
    %c0_19 = arith.constant 0 : index
    %c0_20 = arith.constant 0 : index
    %46 = vector.load %arg10[%c0_19, %c0_20] : memref<1x1xf32, #tpu.memory_space<vmem>>, vector<1x1xf32>
    %47 = arith.mulf %42, %46 : vector<1x1xf32>
    %cst_21 = arith.constant dense<0.000000e+00> : vector<1xf32>
    %48 = vector.multi_reduction <add>, %45, %cst_21 [0] : vector<128x1xf32> to vector<1xf32>
    %49 = vector.shape_cast %48 : vector<1xf32> to vector<1x1xf32>
    %50 = arith.addf %47, %49 : vector<1x1xf32>
    %c0_22 = arith.constant 0 : index
    %c0_23 = arith.constant 0 : index
    %51 = vector.load %arg10[%c0_22, %c0_23] : memref<1x1xf32, #tpu.memory_space<vmem>>, vector<1x1xf32>
    tpu.vector_store %arg10[%c0_22, %c0_23], %50 {strides = array<i32>} : memref<1x1xf32, #tpu.memory_space<vmem>>, vector<1x1xf32>,
    %c0_24 = arith.constant 0 : index
    %c0_25 = arith.constant 0 : index
    %52 = vector.load %arg11[%c0_24, %c0_25] : memref<1x512xf32, #tpu.memory_space<vmem>>, vector<1x512xf32>
    %53 = vector.broadcast %42 : vector<1x1xf32> to vector<1x512xf32>
    %54 = arith.mulf %53, %52 : vector<1x512xf32>
    %55 = tpu.transpose %45, [1, 0] : vector<128x1xf32> -> vector<1x128xf32>
    %cst_26 = arith.constant dense<0.000000e+00> : vector<1x512xf32>
    %56 = tpu.matmul %55, %10, %cst_26 {dimension_numbers = #tpu.dot_dimension_numbers<[1], [0], [0], [1], [0, 0, 1, 1], [], []>} : vector<1x128xf32>, vector<128x512xf32>, vector<1x512xf32> -> vector<1x512xf32>
    %57 = arith.addf %54, %56 : vector<1x512xf32>
    %c0_27 = arith.constant 0 : index
    %c0_28 = arith.constant 0 : index
    %58 = vector.load %arg11[%c0_27, %c0_28] : memref<1x512xf32, #tpu.memory_space<vmem>>, vector<1x512xf32>
    tpu.vector_store %arg11[%c0_27, %c0_28], %57 {strides = array<i32>} : memref<1x512xf32, #tpu.memory_space<vmem>>, vector<1x512xf32>,
    %c0_29 = arith.constant 0 : index
    %c0_30 = arith.constant 0 : index
    %59 = vector.load %arg9[%c0_29, %c0_30] : memref<1x1xf32, #tpu.memory_space<vmem>>, vector<1x1xf32>
    tpu.vector_store %arg9[%c0_29, %c0_30], %40 {strides = array<i32>} : memref<1x1xf32, #tpu.memory_space<vmem>>, vector<1x1xf32>,
    %c2_i32 = arith.constant 2 : i32
    %60 = arith.cmpi eq, %arg0, %c2_i32 : i32
    %61 = arith.extui %60 : i1 to i32
    %c0_i32_31 = arith.constant 0 : i32
    %62 = arith.cmpi ne, %61, %c0_i32_31 : i32
    scf.if %62 {
      %c0_32 = arith.constant 0 : index
      %c0_33 = arith.constant 0 : index
      %63 = vector.load %arg11[%c0_32, %c0_33] : memref<1x512xf32, #tpu.memory_space<vmem>>, vector<1x512xf32>
      %c0_34 = arith.constant 0 : index
      %c0_35 = arith.constant 0 : index
      %64 = vector.load %arg10[%c0_34, %c0_35] : memref<1x1xf32, #tpu.memory_space<vmem>>, vector<1x1xf32>
      %65 = vector.broadcast %64 : vector<1x1xf32> to vector<1x512xf32>
      %66 = arith.divf %63, %65 : vector<1x512xf32>
      %c0_36 = arith.constant 0 : index
      %c0_37 = arith.constant 0 : index
      %67 = vector.load %arg6[%c0_36, %c0_37] : memref<512x2xf32, #tpu.memory_space<vmem>>, vector<512x2xf32>
      %cst_38 = arith.constant dense<0.000000e+00> : vector<1x2xf32>
      %68 = tpu.matmul %66, %67, %cst_38 {dimension_numbers = #tpu.dot_dimension_numbers<[1], [0], [0], [1], [0, 0, 1, 1], [], []>} : vector<1x512xf32>, vector<512x2xf32>, vector<1x2xf32> -> vector<1x2xf32>
      %c0_39 = arith.constant 0 : index
      %c0_40 = arith.constant 0 : index
      %69 = vector.load %arg7[%c0_39, %c0_40] : memref<1x2xf32, #tpu.memory_space<vmem>>, vector<1x2xf32>
      %70 = arith.addf %68, %69 : vector<1x2xf32>
      %c0_41 = arith.constant 0 : index
      %c0_42 = arith.constant 0 : index
      %71 = vector.load %arg8[%c0_41, %c0_42] : memref<1x2xf32, #tpu.memory_space<vmem>>, vector<1x2xf32>
      tpu.vector_store %arg8[%c0_41, %c0_42], %70 {strides = array<i32>} : memref<1x2xf32, #tpu.memory_space<vmem>>, vector<1x2xf32>,
    } else {
    }
    return
  }
  func.func @transform_0(%arg0: i32) -> (i32, i32) {
    %c0_i32 = arith.constant 0 : i32
    %c0_i32_0 = arith.constant 0 : i32
    return %arg0, %c0_i32 : i32, i32
  }
  func.func @transform_1(%arg0: i32) -> (i32, i32) {
    %c0_i32 = arith.constant 0 : i32
    %c0_i32_0 = arith.constant 0 : i32
    %c0_i32_1 = arith.constant 0 : i32
    return %c0_i32, %c0_i32_0 : i32, i32
  }
  func.func @transform_2(%arg0: i32) -> (i32, i32) {
    %c0_i32 = arith.constant 0 : i32
    %c0_i32_0 = arith.constant 0 : i32
    %c0_i32_1 = arith.constant 0 : i32
    return %c0_i32, %c0_i32_0 : i32, i32
  }
  func.func @transform_3(%arg0: i32) -> (i32, i32) {
    %c0_i32 = arith.constant 0 : i32
    %c0_i32_0 = arith.constant 0 : i32
    %c0_i32_1 = arith.constant 0 : i32
    return %c0_i32, %c0_i32_0 : i32, i32
  }
  func.func @transform_4(%arg0: i32) -> (i32, i32) {
    %c0_i32 = arith.constant 0 : i32
    %c0_i32_0 = arith.constant 0 : i32
    %c0_i32_1 = arith.constant 0 : i32
    return %c0_i32, %c0_i32_0 : i32, i32
  }
  func.func @transform_5(%arg0: i32) -> (i32, i32) {
    %c0_i32 = arith.constant 0 : i32
    %c0_i32_0 = arith.constant 0 : i32
    %c0_i32_1 = arith.constant 0 : i32
    return %c0_i32, %c0_i32_0 : i32, i32
  }
  func.func @transform_6(%arg0: i32) -> (i32, i32) {
    %c0_i32 = arith.constant 0 : i32
    %c0_i32_0 = arith.constant 0 : i32
    %c0_i32_1 = arith.constant 0 : i32
    return %c0_i32, %c0_i32_0 : i32, i32
  }
  func.func @transform_7(%arg0: i32) -> (i32, i32) {
    %c0_i32 = arith.constant 0 : i32
    %c0_i32_0 = arith.constant 0 : i32
    %c0_i32_1 = arith.constant 0 : i32
    return %c0_i32, %c0_i32_0 : i32, i32
  }
}

</mosaic_0001>

<bundles_post_ra>
// kernel: tpu_custom_call.1
= control target key start
LH: loop header
LB: loop body
LE: loop exit
PB: predicated region body
PF: predicated region fallthrough
CT: control target
= control target key end

     0   :  { %12 = vsyncpa [#allocation6], 0  ;;  %s7683_s0 = inlined_call_operand.hbm [shape: bf16[384,1024], index: 0, kind: input, shape index: {}]   ;;  %s7684_s1 = inlined_call_operand.hbm [shape: bf16[1024,512], index: 1, kind: input, shape index: {}]   ;;  %s7685_s2 = inlined_call_operand.vmem [shape: f32[1,512], index: 2, kind: input, shape index: {}]   ;;  %s7686_s3 = inlined_call_operand.vmem [shape: bf16[512,256], index: 3, kind: input, shape index: {}]   ;;  %s7687_s4 = inlined_call_operand.vmem [shape: f32[1,128], index: 4, kind: input, shape index: {}]   ;;  %s7688_s5 = inlined_call_operand.vmem [shape: f32[512,2], index: 5, kind: input, shape index: {}]   ;;  %s7689_s6 = inlined_call_operand.vmem [shape: f32[1,2], index: 6, kind: input, shape index: {}]   ;;  %s7690_s7 = inlined_call_operand.hbm [shape: f32[1,2], index: 7, kind: output, shape index: {}]  }
   0x1   :  { %14 = vsyncpa [#allocation6 + $0x1], 0 }
   0x2   :  { %15 = vsyncpa [#allocation9], 0 }
   0x3   :  { %16 = vsyncpa [#allocation7], 0  ;;  %s6542_s24 = smov 0   ;;  %s6544_s25 = smov 0  }
   0x4   :  { %s6546_s26 = smov 0   ;;  %s6548_s27 = smov 0  }
   0x5 LB: > { %s6561_s28 = sadd.s32 4294967295, %s6487_s27   ;;  %p42_p0 = scmp.ne.s32.totalorder %s6479_s25, %s6475_s24  ;;  %s6487_s27 = sphi %s6548_s27, %s7708_s27   ;;  %s6483_s26 = sphi %s6546_s26, %s7707_s26   ;;  %s6479_s25 = sphi %s6544_s25, %s7706_s25   ;;  %s6475_s24 = sphi %s6542_s24, %s7705_s24  }
   0x6   : > { %p7691_p1 = scmp.eq.s32.totalorder %s6561_s28, 0  ;;  %p4773_p2 = scmp.ge.s32.totalorder %s6487_s27, 1 }
   0x7   : > { %p200_p3 = scmp.lt.s32.totalorder %s6487_s27, 4  ;;  %s6489_s8 = smov [#allocation8]  }
   0x8   : > { %p6570_p5 = por %p7691_p1, %p42_p0  ;;  %s212_s9 = sshll.u32 %s6489_s8, 4  ;;  %s213_s9 = int_to_ptr.vmem [resolvable:$true] %s212_s9 }
   0x9   : > { %p6574_p6 = pnand %p4773_p2, %p200_p3  ;;  %s6587_s11 = sadd.s32 1, %s6487_s27  }
   0xa   : > { %s7695_s29 = scalar_select %p6570_p5, 1, 0 }
   0xb   : > { %s7696_s30 = scalar_select %p6574_p6, 1, 0 }
   0xc   : > { %p5721_p7 = pneg %p6574_p6  ;;  %s29_s12 = sadd.s32 1, %s6483_s26 }
   0xd   : > { %s26_s13 = ssub.s32 %s6487_s27, %s6587_s11  ;;  %s6361_s16 = scalar_lea.hbm %s7684_s1, 32768 }
   0xe   : > { %p6582_p8 = pnand %p5721_p7, %p7691_p1  ;;  %p6362_p9 = scmp.ne.s32.totalorder %s7684_s1, %s6361_s16 }
   0xf   : > { %p6368_p13 = scmp.lt.u32.totalorder %s6361_s16, %s7684_s1 }
  0x10   : > { %p6363_p10 = pneg %p6582_p8 }
  0x12   : > { %p6364_p11 = pnand %p6363_p10, %p6362_p9 }
  0x14   : > { %p6365_p12 = pneg %p6364_p11 }
  0x16   : > { %p6370_p0 = pnand %p6368_p13, %p6365_p12 }
  0x18   : > { %6373 = shalt.err (!%p6370_p0)
}
  0x19   : > { %s6374_s21 = scalar_lea.vmem %s213_s9, 32768  ;;  %p6382_p4 = scmp.lt.s32.totalorder %s213_s9, %s213_s9 }
  0x1a   : > { %p6375_p2 = scmp.ne.s32.totalorder %s213_s9, %s6374_s21  ;;  %p6383_p1 = scmp.lt.s32.totalorder %s6374_s21, %s6374_s21 }
  0x1c   : > { %p6377_p3 = pnand %p6375_p2, %p6363_p10  ;;  %p6384_p5 = por %p6383_p1, %p6382_p4 }
  0x1e   : > { %p6378_p7 = pneg %p6377_p3 }
  0x20   : > { %p6385_p6 = pnand %p6384_p5, %p6378_p7 }
  0x22   : > { %6388 = shalt.err (!%p6385_p6)
}
  0x23   : > { %s6490_s22 = smov 256   ;;  %s6491_s23 = smov 16  }
  0x24   : > { %5724 = dma.hbm_to_vmem [thread:$0]  (!%p6582_p8), %s7684_s1, 32768, %s213_s9, [#allocation9], %s6490_s22, %s6490_s22, %s6491_s23  }
  0x25   : > { %p27_p9 = scmp.eq.s32.totalorder %s26_s13, 0  ;;  %p36_p10 = scmp.ne.s32.totalorder %s6483_s26, %s6479_s25 }
  0x26   : > { %p37_p1 = scmp.eq.s32.totalorder %s6487_s27, 0  ;;  %p5730_p4 = scmp.lt.s32.totalorder %s6487_s27, 3 }
  0x27   : > { %s6613_s14 = scalar_select %p27_p9, %s6483_s26, %s29_s12  }
  0x28   : > { %p38_p5 = por %p37_p1, %p36_p10  ;;  %s241_s15 = sand.u32 1, %s6483_s26  }
  0x29   : > { %s4776_s16 = sshll.u32 %s241_s15, 9  ;;  %s5192_s17 = sshll.u32 %s6487_s27, 13 }
  0x2a   : > { %s6620_s20 = scalar_lea.hbm %s7683_s0, %s5192_s17  ;;  %s245_s9 = scalar_lea.vmem [#allocation5], %s4776_s16 }
  0x2b   : > { %s253_s10 = sshll.u32 %s245_s9, 4  ;;  %p6624_p6 = pnand %p5730_p4, %p38_p5  ;;  %s6622_s10 = int_to_ptr.vmem [resolvable:$true] %s253_s10 }
  0x2c   : > { %s6628_s27 = scalar_lea.sflag [#allocation6], %s241_s15  ;;  %s6389_s13 = scalar_lea.hbm %s6620_s20, 8192 }
  0x2d   : > { %p6390_p8 = scmp.ne.s32.totalorder %s6620_s20, %s6389_s13  ;;  %p6391_p11 = pneg %p6624_p6 }
  0x2e   : > { %s6394_s23 = scalar_lea.hbm %s7683_s0, 24576  ;;  %p6395_p0 = scmp.lt.u32.totalorder %s6620_s20, %s7683_s0 }
  0x2f   : > { %p6392_p12 = pnand %p6391_p11, %p6390_p8  ;;  %p6396_p2 = scmp.lt.u32.totalorder %s6394_s23, %s6389_s13 }
  0x30   : > { %p6398_p7 = scmp.lt.u32.totalorder %s6389_s13, %s6620_s20 }
  0x31   : > { %p6393_p13 = pneg %p6392_p12  ;;  %p6397_p3 = por %p6396_p2, %p6395_p0 }
  0x33   : > { %p6399_p9 = por %p6398_p7, %p6397_p3 }
  0x35   : > { %p6400_p10 = pnand %p6399_p9, %p6393_p13 }
  0x37   : > { %6403 = shalt.err (!%p6400_p10)
}
  0x38   : > { %s6404_s15 = scalar_lea.vmem %s6622_s10, 8192  ;;  %s6492_s16 = smov [#allocation5]  }
  0x39   : > { %p6405_p1 = scmp.ne.s32.totalorder %s6622_s10, %s6404_s15  ;;  %s6409_s17 = sshll.u32 %s6492_s16, 4  ;;  %s6410_s17 = int_to_ptr.vmem [resolvable:$false] %s6409_s17 }
  0x3a   : > { %s6411_s18 = scalar_lea.vmem %s6410_s17, 16384  ;;  %p6412_p8 = scmp.lt.s32.totalorder %s6622_s10, %s6410_s17 }
  0x3b   : > { %p6407_p4 = pnand %p6405_p1, %p6391_p11  ;;  %p6413_p12 = scmp.lt.s32.totalorder %s6411_s18, %s6404_s15 }
  0x3d   : > { %p6408_p5 = pneg %p6407_p4  ;;  %p6414_p0 = por %p6413_p12, %p6412_p8 }
  0x3f   : > { %p6415_p2 = pnand %p6414_p0, %p6408_p5 }
  0x41   : > { %6418 = shalt.err (!%p6415_p2)
}
  0x42   : > { %s6493_s19 = smov 512   ;;  %s6494_s9 = smov 32  }
  0x43   : > { %5728 = dma.hbm_to_vmem [thread:$0]  (!%p6624_p6), %s6620_s20, 8192, %s6622_s10, %s6628_s27, %s6493_s19, %s6493_s19, %s6494_s9  }
  0x44   : > { %p7699_p11 = scmp.ne.s32.totalorder %s7696_s30, 0 }
  0x45   : > { %s267_s13 = sand.u32 (!%p7699_p11), 1, %s6479_s25   ;;  %p7700_p13 = scmp.ne.s32.totalorder (!%p7699_p11), %s7695_s29, 0 }
  0x46   : > { %265 = sbr.rel (%p7699_p11) target bundleno = 1723 (0x6bb), region = 48  ;;  %s4781_s21 = sshll.u32 (!%p7699_p11), %s267_s13, 9 }
  0x47   : > { %s268_s22 = scalar_lea.sflag (!%p7699_p11), [#allocation6], %s267_s13  ;;  %s6659_s23 = scalar_lea.vmem (!%p7699_p11), [#allocation5], %s4781_s21 }
  0x4d   : > { %6462 = dma.done.wait (%p7700_p13), %s268_s22, 8192  }
  0x4e   : > { %6464 = vsyncadd (%p7700_p13), %s268_s22, 4294959104  ;;  %p7701_p3 = scmp.eq.s32.totalorder %s6561_s28, 0 }
  0x50   : > { %6466 = dma.done.wait (%p7701_p3), [#allocation9], 32768   ;;  %p7702_p6 = pmov %p7701_p3 }
  0x51   : > { %p7703_p7 = scmp.ne.s32.totalorder %s6561_s28, 0 }
  0x52   : > { %6468 = vsyncadd (%p7702_p6), [#allocation9], 4294934528  ;;  %vm306_vm0 = vcmask (!%p7703_p7), 0   ;;  %v309_v0 = vlaneseq (!%p7703_p7)  ;;  %v6495_v1 = vmov (!%p7703_p7), -1e+30   ;;  %v6496_v2 = vmov (!%p7703_p7), 0.0  }
  0x53   : > { %305 = sbr.rel (%p7703_p7) target bundleno = 90 (0x5a), region = 60  ;;  %307 = vst.msk [vmem:[#allocation2] sm:$0x1] (!%p7703_p7), %vm306_vm0, %v6495_v1  ;;  %308 = vst.msk [vmem:[#allocation3] sm:$0x1] (!%p7703_p7), %vm306_vm0, %v6496_v2 }
  0x54   : > { %vm311_vm1 = vcmp.lt.s32.totalorder (!%p7703_p7), %v309_v0, 512 }
  0x55   : > { %313 = vst.msk [vmem:[#allocation4] sm:$0xf] (!%p7703_p7), %vm311_vm1, %v6496_v2 }
  0x5a PF: > { %v5780_v3 = vld [vmem:[#allocation8 + $0x4] ss:$16 sps:$4 sm:$0xff]   ;;  %v5782_v4 = vld [vmem:[#allocation8 + $0xc] ss:$16 sps:$4 sm:$0xff]   ;;  %v5784_v5 = vld [vmem:[#allocation8] ss:$16 sps:$4 sm:$0xff]  }
  0x5b   : > { %2256 = vmatprep.subr.bf16.mxu0 %v5780_v3  ;;  %v5785_v6 = vld [vmem:[#allocation8 + $0x8] ss:$16 sps:$4 sm:$0xff]   ;;  %2708 = vmatprep.subr.bf16.mxu1 %v5782_v4  ;;  %v5786_v7 = vld [vmem:[#allocation8 + $0x24] ss:$16 sps:$4 sm:$0xff]   ;;  %v5788_v8 = vld [vmem:[#allocation8 + $0x2c] ss:$16 sps:$4 sm:$0xff]  }
  0x5c   : > { %2257 = vmatpush1.bf16.msra.mxu0 %v5784_v5  ;;  %2709 = vmatpush1.bf16.msra.mxu1 %v5785_v6  ;;  %v5790_v9 = vld [vmem:[#allocation8 + $0x20] ss:$16 sps:$4 sm:$0xff]   ;;  %v5791_v10 = vld [vmem:[#allocation8 + $0x28] ss:$16 sps:$4 sm:$0xff]   ;;  %v5792_v11 = vld [vmem:[#allocation8 + $0x44] ss:$16 sps:$4 sm:$0xff]  }
  0x5d   : > { %2258 = vmatprep.subr.bf16.mxu0 %v5786_v7  ;;  %2710 = vmatprep.subr.bf16.mxu1 %v5788_v8  ;;  %v5794_v12 = vld [vmem:[#allocation8 + $0x4c] ss:$16 sps:$4 sm:$0xff]   ;;  %v5796_v13 = vld [vmem:[#allocation8 + $0x40] ss:$16 sps:$4 sm:$0xff]   ;;  %v5797_v14 = vld [vmem:[#allocation8 + $0x48] ss:$16 sps:$4 sm:$0xff]  }
  0x5e   : > { %v5798_v15 = vld [vmem:[#allocation8 + $0x64] ss:$16 sps:$4 sm:$0xff]   ;;  %v5800_v16 = vld [vmem:[#allocation8 + $0x6c] ss:$16 sps:$4 sm:$0xff]   ;;  %v5802_v17 = vld [vmem:[#allocation8 + $0x60] ss:$16 sps:$4 sm:$0xff]  }
  0x5f   : > { %v5803_v18 = vld [vmem:[#allocation8 + $0x68] ss:$16 sps:$4 sm:$0xff]   ;;  %v5804_v19 = vld [vmem:[#allocation8 + $0x84] ss:$16 sps:$4 sm:$0xff]   ;;  %v5806_v20 = vld [vmem:[#allocation8 + $0x8c] ss:$16 sps:$4 sm:$0xff]  }
  0x60   : > { %2259 = vmatpush1.bf16.msra.mxu0 %v5790_v9  ;;  %2711 = vmatpush1.bf16.msra.mxu1 %v5791_v10  ;;  %v5808_v21 = vld [vmem:[#allocation8 + $0x80] ss:$16 sps:$4 sm:$0xff]   ;;  %v5809_v22 = vld [vmem:[#allocation8 + $0x88] ss:$16 sps:$4 sm:$0xff]   ;;  %v5810_v23 = vld [vmem:[#allocation8 + $0xa4] ss:$16 sps:$4 sm:$0xff]  }
  0x61   : > { %2260 = vmatprep.subr.bf16.mxu0 %v5792_v11  ;;  %2712 = vmatprep.subr.bf16.mxu1 %v5794_v12  ;;  %v5812_v24 = vld [vmem:[#allocation8 + $0xac] ss:$16 sps:$4 sm:$0xff]   ;;  %v5814_v25 = vld [vmem:[#allocation8 + $0xa0] ss:$16 sps:$4 sm:$0xff]   ;;  %v5815_v26 = vld [vmem:[#allocation8 + $0xa8] ss:$16 sps:$4 sm:$0xff]  }
  0x62   : > { %v5816_v27 = vld [vmem:[#allocation8 + $0xc4] ss:$16 sps:$4 sm:$0xff]   ;;  %v5818_v28 = vld [vmem:[#allocation8 + $0xcc] ss:$16 sps:$4 sm:$0xff]   ;;  %v5820_v29 = vld [vmem:[#allocation8 + $0xc0] ss:$16 sps:$4 sm:$0xff]  }
  0x63   : > { %v5821_v30 = vld [vmem:[#allocation8 + $0xc8] ss:$16 sps:$4 sm:$0xff]   ;;  %v5822_v31 = vld [vmem:[#allocation8 + $0xe4] ss:$16 sps:$4 sm:$0xff]   ;;  %v5824_v32 = vld [vmem:[#allocation8 + $0xec] ss:$16 sps:$4 sm:$0xff]  }
  0x64   : > { %2261 = vmatpush1.bf16.msra.mxu0 %v5796_v13  ;;  %2713 = vmatpush1.bf16.msra.mxu1 %v5797_v14  ;;  %v5826_v33 = vld [vmem:[#allocation8 + $0xe0] ss:$16 sps:$4 sm:$0xff]   ;;  %v5827_v34 = vld [vmem:[#allocation8 + $0xe8] ss:$16 sps:$4 sm:$0xff]   ;;  %v5828_v35 = vld [vmem:[#allocation8 + $0x104] ss:$16 sps:$4 sm:$0xff]  }
  0x65   : > { %2262 = vmatprep.subr.bf16.mxu0 %v5798_v15  ;;  %2714 = vmatprep.subr.bf16.mxu1 %v5800_v16  ;;  %v5830_v36 = vld [vmem:[#allocation8 + $0x10c] ss:$16 sps:$4 sm:$0xff]   ;;  %v5832_v37 = vld [vmem:[#allocation8 + $0x100] ss:$16 sps:$4 sm:$0xff]   ;;  %v5833_v38 = vld [vmem:[#allocation8 + $0x108] ss:$16 sps:$4 sm:$0xff]  }
  0x66   : > { %v5834_v39 = vld [vmem:[#allocation8 + $0x124] ss:$16 sps:$4 sm:$0xff]   ;;  %v5836_v40 = vld [vmem:[#allocation8 + $0x12c] ss:$16 sps:$4 sm:$0xff]   ;;  %v5838_v41 = vld [vmem:[#allocation8 + $0x120] ss:$16 sps:$4 sm:$0xff]  }
  0x67   : > { %v5839_v42 = vld [vmem:[#allocation8 + $0x128] ss:$16 sps:$4 sm:$0xff]   ;;  %v5840_v43 = vld [vmem:[#allocation8 + $0x144] ss:$16 sps:$4 sm:$0xff]   ;;  %v5842_v44 = vld [vmem:[#allocation8 + $0x14c] ss:$16 sps:$4 sm:$0xff]  }
  0x68   : > { %2263 = vmatpush1.bf16.msra.mxu0 %v5802_v17  ;;  %2715 = vmatpush1.bf16.msra.mxu1 %v5803_v18  ;;  %v5844_v45 = vld [vmem:[#allocation8 + $0x140] ss:$16 sps:$4 sm:$0xff]   ;;  %v5845_v46 = vld [vmem:[#allocation8 + $0x148] ss:$16 sps:$4 sm:$0xff]   ;;  %v5846_v47 = vld [vmem:[#allocation8 + $0x164] ss:$16 sps:$4 sm:$0xff]  }
  0x69   : > { %2264 = vmatprep.subr.bf16.mxu0 %v5804_v19  ;;  %2716 = vmatprep.subr.bf16.mxu1 %v5806_v20  ;;  %v5848_v48 = vld [vmem:[#allocation8 + $0x16c] ss:$16 sps:$4 sm:$0xff]   ;;  %v314_v49 = vld [vmem:[%s6659_s23] sm:$0xff]  ;;  %v5851_v52 = vld [vmem:[#allocation8 + $0x168] ss:$16 sps:$4 sm:$0xff]   ;;  %s5185_s18 = sshll.u32 %s6561_s28, 7 }
  0x6a   : > { %v318_v50 = vld [vmem:[%s6659_s23 + $0x20] sm:$0xff]  ;;  %v5854_v55 = vld [vmem:[#allocation8 + $0x18c] ss:$16 sps:$4 sm:$0xff]   ;;  %v5857_v57 = vld [vmem:[#allocation8 + $0x188] ss:$16 sps:$4 sm:$0xff]   ;;  %p5186_p9 = scmp.ne.s32.totalorder %s6561_s28, 2 }
  0x6b   : > { %v5850_v51 = vld [vmem:[#allocation8 + $0x160] ss:$16 sps:$4 sm:$0xff]   ;;  %v4785_v53 = vcombine.high %v314_v49, %v318_v50  ;;  %v5852_v54 = vld [vmem:[#allocation8 + $0x184] ss:$16 sps:$4 sm:$0xff]   ;;  %v5860_v59 = vld [vmem:[#allocation8 + $0x1ac] ss:$16 sps:$4 sm:$0xff]   ;;  %v4784_v10 = vcombine.low %v314_v49, %v318_v50 }
  0x6c   : > { %2265 = vmatpush1.bf16.msra.mxu0 %v5808_v21  ;;  %2717 = vmatpush1.bf16.msra.mxu1 %v5809_v22  ;;  %v5856_v56 = vld [vmem:[#allocation8 + $0x180] ss:$16 sps:$4 sm:$0xff]   ;;  %v5858_v58 = vld [vmem:[#allocation8 + $0x1a4] ss:$16 sps:$4 sm:$0xff]   ;;  %v5863_v61 = vld [vmem:[#allocation8 + $0x1a8] ss:$16 sps:$4 sm:$0xff]  }
  0x6d   : > { %2266 = vmatprep.subr.bf16.mxu0 %v5810_v23  ;;  %2718 = vmatprep.subr.bf16.mxu1 %v5812_v24  ;;  %v5862_v60 = vld [vmem:[#allocation8 + $0x1a0] ss:$16 sps:$4 sm:$0xff]   ;;  %v5864_v62 = vld [vmem:[#allocation8 + $0x1c4] ss:$16 sps:$4 sm:$0xff]   ;;  %v5866_v63 = vld [vmem:[#allocation8 + $0x1cc] ss:$16 sps:$4 sm:$0xff]  }
  0x6e   : > { %2288 = vmatprep.mubr.bf16.mxu0 %v4785_v53  ;;  %2740 = vmatprep.mubr.bf16.mxu1 %v4785_v53  ;;  %v5868_v0 = vld [vmem:[#allocation8 + $0x1c0] ss:$16 sps:$4 sm:$0xff]   ;;  %v5869_v1 = vld [vmem:[#allocation8 + $0x1c8] ss:$16 sps:$4 sm:$0xff]   ;;  %v5870_v2 = vld [vmem:[#allocation8 + $0x1e4] ss:$16 sps:$4 sm:$0xff]  }
  0x6f   : > { %v5872_v3 = vld [vmem:[#allocation8 + $0x1ec] ss:$16 sps:$4 sm:$0xff]   ;;  %v5874_v4 = vld [vmem:[#allocation8 + $0x1e0] ss:$16 sps:$4 sm:$0xff]   ;;  %v5875_v5 = vld [vmem:[#allocation8 + $0x1e8] ss:$16 sps:$4 sm:$0xff]  }
  0x70   : > { %2267 = vmatpush1.bf16.msra.mxu0 %v5814_v25  ;;  %2719 = vmatpush1.bf16.msra.mxu1 %v5815_v26  ;;  %v5878_v6 = vld [vmem:[#allocation8 + $0x204] ss:$16 sps:$4 sm:$0xff]   ;;  %v5881_v7 = vld [vmem:[#allocation8 + $0x20c] ss:$16 sps:$4 sm:$0xff]   ;;  %v5876_v8 = vld [vmem:[#allocation8 + $0x200] ss:$16 sps:$4 sm:$0xff]  }
  0x71   : > { %2268 = vmatprep.subr.bf16.mxu0 %v5816_v27  ;;  %2720 = vmatprep.subr.bf16.mxu1 %v5818_v28  ;;  %v5879_v9 = vld [vmem:[#allocation8 + $0x208] ss:$16 sps:$4 sm:$0xff]   ;;  %v322_v11 = vld [vmem:[%s6659_s23 + $0x40] sm:$0xff]  ;;  %v5887_v14 = vld [vmem:[#allocation8 + $0x22c] ss:$16 sps:$4 sm:$0xff]  }
  0x72   : > { %v326_v12 = vld [vmem:[%s6659_s23 + $0x60] sm:$0xff]  ;;  %v5885_v17 = vld [vmem:[#allocation8 + $0x228] ss:$16 sps:$4 sm:$0xff]   ;;  %v5893_v19 = vld [vmem:[#allocation8 + $0x24c] ss:$16 sps:$4 sm:$0xff]  }
  0x73   : > { %v5884_v13 = vld [vmem:[#allocation8 + $0x224] ss:$16 sps:$4 sm:$0xff]   ;;  %v4793_v15 = vcombine.high %v322_v11, %v326_v12  ;;  %v5882_v16 = vld [vmem:[#allocation8 + $0x220] ss:$16 sps:$4 sm:$0xff]   ;;  %v4792_v21 = vcombine.low %v322_v11, %v326_v12  ;;  %v5891_v24 = vld [vmem:[#allocation8 + $0x248] ss:$16 sps:$4 sm:$0xff]  }
  0x74   : > { %2269 = vmatpush1.bf16.msra.mxu0 %v5820_v29  ;;  %2721 = vmatpush1.bf16.msra.mxu1 %v5821_v30  ;;  %v5890_v18 = vld [vmem:[#allocation8 + $0x244] ss:$16 sps:$4 sm:$0xff]   ;;  %v5888_v23 = vld [vmem:[#allocation8 + $0x240] ss:$16 sps:$4 sm:$0xff]   ;;  %v5899_v26 = vld [vmem:[#allocation8 + $0x26c] ss:$16 sps:$4 sm:$0xff]  }
  0x75   : > { %2270 = vmatprep.subr.bf16.mxu0 %v5822_v31  ;;  %2722 = vmatprep.subr.bf16.mxu1 %v5824_v32  ;;  %v330_v20 = vld [vmem:[%s6659_s23 + $0x80] sm:$0xff]  ;;  %v5897_v29 = vld [vmem:[#allocation8 + $0x268] ss:$16 sps:$4 sm:$0xff]   ;;  %v5905_v31 = vld [vmem:[#allocation8 + $0x28c] ss:$16 sps:$4 sm:$0xff]  }
  0x76   : > { %v334_v22 = vld [vmem:[%s6659_s23 + $0xa0] sm:$0xff]  ;;  %v5923_v50 = vld [vmem:[#allocation8 + $0x2ec] ss:$16 sps:$4 sm:$0xff]   ;;  %v5921_v53 = vld [vmem:[#allocation8 + $0x2e8] ss:$16 sps:$4 sm:$0xff]  }
  0x77   : > { %v5896_v25 = vld [vmem:[#allocation8 + $0x264] ss:$16 sps:$4 sm:$0xff]   ;;  %v4801_v27 = vcombine.high %v330_v20, %v334_v22  ;;  %v5894_v28 = vld [vmem:[#allocation8 + $0x260] ss:$16 sps:$4 sm:$0xff]  }
  0x78   : > { %2271 = vmatpush1.bf16.msra.mxu0 %v5826_v33  ;;  %2723 = vmatpush1.bf16.msra.mxu1 %v5827_v34  ;;  %v5902_v30 = vld [vmem:[#allocation8 + $0x284] ss:$16 sps:$4 sm:$0xff]   ;;  %v4800_v33 = vcombine.low %v330_v20, %v334_v22  ;;  %v5942_v12 = vld [vmem:[#allocation8 + $0x360] ss:$16 sps:$4 sm:$0xff]   ;;  %v5959_v22 = vld [vmem:[#allocation8 + $0x3ac] ss:$16 sps:$4 sm:$0xff]  }
  0x79   : > { %2272 = vmatprep.subr.bf16.mxu0 %v5828_v35  ;;  %2724 = vmatprep.subr.bf16.mxu1 %v5830_v36  ;;  %v338_v32 = vld [vmem:[%s6659_s23 + $0xc0] sm:$0xff]  ;;  %v5903_v36 = vld [vmem:[#allocation8 + $0x288] ss:$16 sps:$4 sm:$0xff]  }
  0x7a   : > { %v342_v34 = vld [vmem:[%s6659_s23 + $0xe0] sm:$0xff] }
  0x7b   : > { %v5900_v35 = vld [vmem:[#allocation8 + $0x280] ss:$16 sps:$4 sm:$0xff]   ;;  %v5920_v49 = vld [vmem:[#allocation8 + $0x2e4] ss:$16 sps:$4 sm:$0xff]  }
  0x7c   : > { %2273 = vmatpush1.bf16.msra.mxu0 %v5832_v37  ;;  %2725 = vmatpush1.bf16.msra.mxu1 %v5833_v38  ;;  %v5908_v37 = vld [vmem:[#allocation8 + $0x2a4] ss:$16 sps:$4 sm:$0xff]   ;;  %v5911_v38 = vld [vmem:[#allocation8 + $0x2ac] ss:$16 sps:$4 sm:$0xff]  }
  0x7d   : > { %2274 = vmatprep.subr.bf16.mxu0 %v5834_v39  ;;  %2726 = vmatprep.subr.bf16.mxu1 %v5836_v40  ;;  %v4809_v39 = vcombine.high %v338_v32, %v342_v34  ;;  %v5906_v40 = vld [vmem:[#allocation8 + $0x2a0] ss:$16 sps:$4 sm:$0xff]  }
  0x7e   : > { %v374_v20 = vld [vmem:[%s6659_s23 + $0x1e0] sm:$0xff] }
  0x80   : > { %2275 = vmatpush1.bf16.msra.mxu0 %v5838_v41  ;;  %2727 = vmatpush1.bf16.msra.mxu1 %v5839_v42  ;;  %v5909_v41 = vld [vmem:[#allocation8 + $0x2a8] ss:$16 sps:$4 sm:$0xff]   ;;  %v5914_v42 = vld [vmem:[#allocation8 + $0x2c4] ss:$16 sps:$4 sm:$0xff]  }
  0x81   : > { %2276 = vmatprep.subr.bf16.mxu0 %v5840_v43  ;;  %2728 = vmatprep.subr.bf16.mxu1 %v5842_v44  ;;  %v5917_v43 = vld [vmem:[#allocation8 + $0x2cc] ss:$16 sps:$4 sm:$0xff]   ;;  %v5912_v44 = vld [vmem:[#allocation8 + $0x2c0] ss:$16 sps:$4 sm:$0xff]  }
  0x84   : > { %2277 = vmatpush1.bf16.msra.mxu0 %v5844_v45  ;;  %2729 = vmatpush1.bf16.msra.mxu1 %v5845_v46  ;;  %v5915_v45 = vld [vmem:[#allocation8 + $0x2c8] ss:$16 sps:$4 sm:$0xff]   ;;  %v4808_v46 = vcombine.low %v338_v32, %v342_v34  ;;  %v5971_v34 = vld [vmem:[#allocation8 + $0x3ec] ss:$16 sps:$4 sm:$0xff]  }
  0x85   : > { %2278 = vmatprep.subr.bf16.mxu0 %v5846_v47  ;;  %2730 = vmatprep.subr.bf16.mxu1 %v5848_v48  ;;  %v346_v47 = vld [vmem:[%s6659_s23 + $0x100] sm:$0xff]  ;;  %v5963_v32 = vld [vmem:[#allocation8 + $0x3c8] ss:$16 sps:$4 sm:$0xff]  }
  0x86   : > { %v350_v48 = vld [vmem:[%s6659_s23 + $0x120] sm:$0xff] }
  0x88   : > { %2279 = vmatpush1.bf16.msra.mxu0 %v5850_v51  ;;  %2731 = vmatpush1.bf16.msra.mxu1 %v5851_v52  ;;  %v4817_v51 = vcombine.high %v346_v47, %v350_v48  ;;  %v5918_v52 = vld [vmem:[#allocation8 + $0x2e0] ss:$16 sps:$4 sm:$0xff]  }
  0x89   : > { %2280 = vmatprep.subr.bf16.mxu0 %v5852_v54  ;;  %2732 = vmatprep.subr.bf16.mxu1 %v5854_v55  ;;  %v5926_v54 = vld [vmem:[#allocation8 + $0x304] ss:$16 sps:$4 sm:$0xff]   ;;  %v5929_v55 = vld [vmem:[#allocation8 + $0x30c] ss:$16 sps:$4 sm:$0xff]  }
  0x8c   : > { %2281 = vmatpush1.bf16.msra.mxu0 %v5856_v56  ;;  %2733 = vmatpush1.bf16.msra.mxu1 %v5857_v57  ;;  %v354_v56 = vld [vmem:[%s6659_s23 + $0x140] sm:$0xff]  ;;  %v4816_v57 = vcombine.low %v346_v47, %v350_v48 }
  0x8d   : > { %2282 = vmatprep.subr.bf16.mxu0 %v5858_v58  ;;  %2734 = vmatprep.subr.bf16.mxu1 %v5860_v59  ;;  %v358_v58 = vld [vmem:[%s6659_s23 + $0x160] sm:$0xff] }
  0x8e   : > { %v5924_v59 = vld [vmem:[#allocation8 + $0x300] ss:$16 sps:$4 sm:$0xff]  }
  0x8f   : > { %v5978_v48 = vld [vmem:[#allocation8 + $0x420] ss:$16 sps:$4 sm:$0xff]  }
  0x90   : > { %2283 = vmatpush1.bf16.msra.mxu0 %v5862_v60  ;;  %2735 = vmatpush1.bf16.msra.mxu1 %v5863_v61  ;;  %v5927_v60 = vld [vmem:[#allocation8 + $0x308] ss:$16 sps:$4 sm:$0xff]   ;;  %v5932_v61 = vld [vmem:[#allocation8 + $0x324] ss:$16 sps:$4 sm:$0xff]  }
  0x91   : > { %2284 = vmatprep.subr.bf16.mxu0 %v5864_v62  ;;  %2736 = vmatprep.subr.bf16.mxu1 %v5866_v63  ;;  %v5935_v62 = vld [vmem:[#allocation8 + $0x32c] ss:$16 sps:$4 sm:$0xff]   ;;  %v4825_v63 = vcombine.high %v354_v56, %v358_v58 }
  0x94   : > { %2285 = vmatpush1.bf16.msra.mxu0 %v5868_v0  ;;  %2737 = vmatpush1.bf16.msra.mxu1 %v5869_v1  ;;  %v5930_v0 = vld [vmem:[#allocation8 + $0x320] ss:$16 sps:$4 sm:$0xff]   ;;  %v5933_v1 = vld [vmem:[#allocation8 + $0x328] ss:$16 sps:$4 sm:$0xff]  }
  0x95   : > { %2286 = vmatprep.subr.bf16.mxu0 %v5870_v2  ;;  %2738 = vmatprep.subr.bf16.mxu1 %v5872_v3  ;;  %v5938_v2 = vld [vmem:[#allocation8 + $0x344] ss:$16 sps:$4 sm:$0xff]   ;;  %v5941_v3 = vld [vmem:[#allocation8 + $0x34c] ss:$16 sps:$4 sm:$0xff]  }
  0x98   : > { %2287 = vmatpush1.bf16.msra.mxu0 %v5874_v4  ;;  %2739 = vmatpush1.bf16.msra.mxu1 %v5875_v5  ;;  %v362_v4 = vld [vmem:[%s6659_s23 + $0x180] sm:$0xff]  ;;  %v4824_v5 = vcombine.low %v354_v56, %v358_v58  ;;  %v335_v56 = vld [vmem:[%s6659_s23 + $0xa8] sm:$0xff] }
  0x99   : > { %2369 = vmatprep.subr.bf16.mxu0 %v5878_v6  ;;  %2821 = vmatprep.subr.bf16.mxu1 %v5881_v7  ;;  %v366_v6 = vld [vmem:[%s6659_s23 + $0x1a0] sm:$0xff]  ;;  %v5995_v58 = vld [vmem:[#allocation8 + $0x46c] ss:$16 sps:$4 sm:$0xff]  }
  0x9a   : > { %v5936_v7 = vld [vmem:[#allocation8 + $0x340] ss:$16 sps:$4 sm:$0xff]   ;;  %v4833_v11 = vcombine.high %v362_v4, %v366_v6 }
  0x9b   : > { %2289 = vmatmul.mubr.bf16.vlgmr.msra.gmra.mrb[0].mxu0 %v4784_v10  ;;  %2741 = vmatmul.mubr.bf16.vlgmr.msra.gmra.mrb[0].mxu1 %v4784_v10  ;;  %v5947_v10 = vld [vmem:[#allocation8 + $0x36c] ss:$16 sps:$4 sm:$0xff]  }
  0x9c   : > { %2370 = vmatpush1.bf16.msra.mxu0 %v5876_v8  ;;  %2822 = vmatpush1.bf16.msra.mxu1 %v5879_v9  ;;  %v5939_v8 = vld [vmem:[#allocation8 + $0x348] ss:$16 sps:$4 sm:$0xff]   ;;  %v5944_v9 = vld [vmem:[#allocation8 + $0x364] ss:$16 sps:$4 sm:$0xff]  }
  0x9d   : > { %2371 = vmatprep.subr.bf16.mxu0 %v5884_v13  ;;  %2823 = vmatprep.subr.bf16.mxu1 %v5887_v14  ;;  %v5945_v13 = vld [vmem:[#allocation8 + $0x368] ss:$16 sps:$4 sm:$0xff]   ;;  %v5950_v14 = vld [vmem:[#allocation8 + $0x384] ss:$16 sps:$4 sm:$0xff]  }
  0x9e   : > { %2298 = vmatprep.mubr.bf16.mxu0 %v4793_v15  ;;  %2750 = vmatprep.mubr.bf16.mxu1 %v4793_v15  ;;  %v5953_v15 = vld [vmem:[#allocation8 + $0x38c] ss:$16 sps:$4 sm:$0xff]  }
  0xa0   : > { %2372 = vmatpush1.bf16.msra.mxu0 %v5882_v16  ;;  %2824 = vmatpush1.bf16.msra.mxu1 %v5885_v17  ;;  %v5948_v16 = vld [vmem:[#allocation8 + $0x380] ss:$16 sps:$4 sm:$0xff]   ;;  %v5951_v17 = vld [vmem:[#allocation8 + $0x388] ss:$16 sps:$4 sm:$0xff]  }
  0xa1   : > { %2373 = vmatprep.subr.bf16.mxu0 %v5890_v18  ;;  %2825 = vmatprep.subr.bf16.mxu1 %v5893_v19  ;;  %v4832_v18 = vcombine.low %v362_v4, %v366_v6  ;;  %v370_v19 = vld [vmem:[%s6659_s23 + $0x1c0] sm:$0xff]  ;;  %v5999_v4 = vld [vmem:[#allocation8 + $0x488] ss:$16 sps:$4 sm:$0xff]   ;;  %v6007_v6 = vld [vmem:[#allocation8 + $0x4ac] ss:$16 sps:$4 sm:$0xff]  }
  0xa3   : > { %2299 = vmatmul.mubr.bf16.gmra.mrb[4].mxu0 %v4792_v21  ;;  %2751 = vmatmul.mubr.bf16.gmra.mrb[4].mxu1 %v4792_v21  ;;  %v5956_v21 = vld [vmem:[#allocation8 + $0x3a4] ss:$16 sps:$4 sm:$0xff]  }
  0xa4   : > { %2374 = vmatpush1.bf16.msra.mxu0 %v5888_v23  ;;  %2826 = vmatpush1.bf16.msra.mxu1 %v5891_v24  ;;  %v4841_v23 = vcombine.high %v370_v19, %v374_v20  ;;  %v5954_v24 = vld [vmem:[#allocation8 + $0x3a0] ss:$16 sps:$4 sm:$0xff]  }
  0xa5   : > { %2375 = vmatprep.subr.bf16.mxu0 %v5896_v25  ;;  %2827 = vmatprep.subr.bf16.mxu1 %v5899_v26  ;;  %v5957_v25 = vld [vmem:[#allocation8 + $0x3a8] ss:$16 sps:$4 sm:$0xff]   ;;  %v5962_v26 = vld [vmem:[#allocation8 + $0x3c4] ss:$16 sps:$4 sm:$0xff]  }
  0xa6   : > { %2308 = vmatprep.mubr.bf16.mxu0 %v4801_v27  ;;  %2760 = vmatprep.mubr.bf16.mxu1 %v4801_v27  ;;  %v5965_v27 = vld [vmem:[#allocation8 + $0x3cc] ss:$16 sps:$4 sm:$0xff]  }
  0xa8   : > { %2376 = vmatpush1.bf16.msra.mxu0 %v5894_v28  ;;  %2828 = vmatpush1.bf16.msra.mxu1 %v5897_v29  ;;  %v315_v28 = vld [vmem:[%s6659_s23 + $0x8] sm:$0xff]  ;;  %v4840_v29 = vcombine.low %v370_v19, %v374_v20  ;;  %v6014_v20 = vld [vmem:[#allocation8 + $0x4e0] ss:$16 sps:$4 sm:$0xff]  }
  0xa9   : > { %2377 = vmatprep.subr.bf16.mxu0 %v5902_v30  ;;  %2829 = vmatprep.subr.bf16.mxu1 %v5905_v31  ;;  %v319_v30 = vld [vmem:[%s6659_s23 + $0x28] sm:$0xff]  ;;  %v5960_v31 = vld [vmem:[#allocation8 + $0x3c0] ss:$16 sps:$4 sm:$0xff]  }
  0xab   : > { %2309 = vmatmul.mubr.bf16.gmra.mrb[8].mxu0 %v4800_v33  ;;  %2761 = vmatmul.mubr.bf16.gmra.mrb[8].mxu1 %v4800_v33  ;;  %v5968_v33 = vld [vmem:[#allocation8 + $0x3e4] ss:$16 sps:$4 sm:$0xff]  }
  0xac   : > { %2378 = vmatpush1.bf16.msra.mxu0 %v5900_v35  ;;  %2830 = vmatpush1.bf16.msra.mxu1 %v5903_v36  ;;  %v4787_v35 = vcombine.high %v315_v28, %v319_v30  ;;  %v5966_v36 = vld [vmem:[#allocation8 + $0x3e0] ss:$16 sps:$4 sm:$0xff]  }
  0xad   : > { %2379 = vmatprep.subr.bf16.mxu0 %v5908_v37  ;;  %2831 = vmatprep.subr.bf16.mxu1 %v5911_v38  ;;  %v5969_v37 = vld [vmem:[#allocation8 + $0x3e8] ss:$16 sps:$4 sm:$0xff]   ;;  %v5974_v38 = vld [vmem:[#allocation8 + $0x404] ss:$16 sps:$4 sm:$0xff]  }
  0xae   : > { %2318 = vmatprep.mubr.bf16.mxu0 %v4809_v39  ;;  %2770 = vmatprep.mubr.bf16.mxu1 %v4809_v39  ;;  %v5977_v39 = vld [vmem:[#allocation8 + $0x40c] ss:$16 sps:$4 sm:$0xff]  }
  0xb0   : > { %2380 = vmatpush1.bf16.msra.mxu0 %v5906_v40  ;;  %2832 = vmatpush1.bf16.msra.mxu1 %v5909_v41  ;;  %v323_v40 = vld [vmem:[%s6659_s23 + $0x48] sm:$0xff]  ;;  %v4786_v41 = vcombine.low %v315_v28, %v319_v30 }
  0xb1   : > { %2381 = vmatprep.subr.bf16.mxu0 %v5914_v42  ;;  %2833 = vmatprep.subr.bf16.mxu1 %v5917_v43  ;;  %v327_v42 = vld [vmem:[%s6659_s23 + $0x68] sm:$0xff]  ;;  %v5972_v43 = vld [vmem:[#allocation8 + $0x400] ss:$16 sps:$4 sm:$0xff]  }
  0xb2   : > { %v4795_v47 = vcombine.high %v323_v40, %v327_v42  ;;  %v359_v28 = vld [vmem:[%s6659_s23 + $0x168] sm:$0xff] }
  0xb3   : > { %2319 = vmatmul.mubr.bf16.gmra.mrb[12].mxu0 %v4808_v46  ;;  %2771 = vmatmul.mubr.bf16.gmra.mrb[12].mxu1 %v4808_v46  ;;  %v5983_v46 = vld [vmem:[#allocation8 + $0x42c] ss:$16 sps:$4 sm:$0xff]  }
  0xb4   : > { %2382 = vmatpush1.bf16.msra.mxu0 %v5912_v44  ;;  %2834 = vmatpush1.bf16.msra.mxu1 %v5915_v45  ;;  %v5975_v44 = vld [vmem:[#allocation8 + $0x408] ss:$16 sps:$4 sm:$0xff]   ;;  %v5980_v45 = vld [vmem:[#allocation8 + $0x424] ss:$16 sps:$4 sm:$0xff]   ;;  %v6031_v30 = vld [vmem:[#allocation8 + $0x52c] ss:$16 sps:$4 sm:$0xff]  }
  0xb5   : > { %2383 = vmatprep.subr.bf16.mxu0 %v5920_v49  ;;  %2835 = vmatprep.subr.bf16.mxu1 %v5923_v50  ;;  %v5981_v49 = vld [vmem:[#allocation8 + $0x428] ss:$16 sps:$4 sm:$0xff]   ;;  %v5986_v50 = vld [vmem:[#allocation8 + $0x444] ss:$16 sps:$4 sm:$0xff]  }
  0xb6   : > { %2328 = vmatprep.mubr.bf16.mxu0 %v4817_v51  ;;  %2780 = vmatprep.mubr.bf16.mxu1 %v4817_v51  ;;  %v5989_v51 = vld [vmem:[#allocation8 + $0x44c] ss:$16 sps:$4 sm:$0xff]  }
  0xb8   : > { %2384 = vmatpush1.bf16.msra.mxu0 %v5918_v52  ;;  %2836 = vmatpush1.bf16.msra.mxu1 %v5921_v53  ;;  %v5984_v52 = vld [vmem:[#allocation8 + $0x440] ss:$16 sps:$4 sm:$0xff]   ;;  %v5987_v53 = vld [vmem:[#allocation8 + $0x448] ss:$16 sps:$4 sm:$0xff]  }
  0xb9   : > { %2385 = vmatprep.subr.bf16.mxu0 %v5926_v54  ;;  %2837 = vmatprep.subr.bf16.mxu1 %v5929_v55  ;;  %v4794_v54 = vcombine.low %v323_v40, %v327_v42  ;;  %v331_v55 = vld [vmem:[%s6659_s23 + $0x88] sm:$0xff] }
  0xba   : > { %v6035_v40 = vld [vmem:[#allocation8 + $0x548] ss:$16 sps:$4 sm:$0xff]   ;;  %v6043_v42 = vld [vmem:[#allocation8 + $0x56c] ss:$16 sps:$4 sm:$0xff]  }
  0xbb   : > { %2329 = vmatmul.mubr.bf16.gmra.mrb[16].mxu0 %v4816_v57  ;;  %2781 = vmatmul.mubr.bf16.gmra.mrb[16].mxu1 %v4816_v57  ;;  %v5992_v57 = vld [vmem:[#allocation8 + $0x464] ss:$16 sps:$4 sm:$0xff]  }
  0xbc   : > { %2386 = vmatpush1.bf16.msra.mxu0 %v5924_v59  ;;  %2838 = vmatpush1.bf16.msra.mxu1 %v5927_v60  ;;  %v4803_v59 = vcombine.high %v331_v55, %v335_v56  ;;  %v5990_v60 = vld [vmem:[#allocation8 + $0x460] ss:$16 sps:$4 sm:$0xff]  }
  0xbd   : > { %2387 = vmatprep.subr.bf16.mxu0 %v5932_v61  ;;  %2839 = vmatprep.subr.bf16.mxu1 %v5935_v62  ;;  %v5993_v61 = vld [vmem:[#allocation8 + $0x468] ss:$16 sps:$4 sm:$0xff]   ;;  %v5998_v62 = vld [vmem:[#allocation8 + $0x484] ss:$16 sps:$4 sm:$0xff]  }
  0xbe   : > { %2338 = vmatprep.mubr.bf16.mxu0 %v4825_v63  ;;  %2790 = vmatprep.mubr.bf16.mxu1 %v4825_v63  ;;  %v6001_v63 = vld [vmem:[#allocation8 + $0x48c] ss:$16 sps:$4 sm:$0xff]  }
  0xc0   : > { %2388 = vmatpush1.bf16.msra.mxu0 %v5930_v0  ;;  %2840 = vmatpush1.bf16.msra.mxu1 %v5933_v1  ;;  %v339_v0 = vld [vmem:[%s6659_s23 + $0xc8] sm:$0xff]  ;;  %v4802_v1 = vcombine.low %v331_v55, %v335_v56  ;;  %v6050_v56 = vld [vmem:[#allocation8 + $0x5a0] ss:$16 sps:$4 sm:$0xff]  }
  0xc1   : > { %2389 = vmatprep.subr.bf16.mxu0 %v5938_v2  ;;  %2841 = vmatprep.subr.bf16.mxu1 %v5941_v3  ;;  %v343_v2 = vld [vmem:[%s6659_s23 + $0xe8] sm:$0xff]  ;;  %v5996_v3 = vld [vmem:[#allocation8 + $0x480] ss:$16 sps:$4 sm:$0xff]  }
  0xc3   : > { %2339 = vmatmul.mubr.bf16.gmra.mrb[20].mxu0 %v4824_v5  ;;  %2791 = vmatmul.mubr.bf16.gmra.mrb[20].mxu1 %v4824_v5  ;;  %v6004_v5 = vld [vmem:[#allocation8 + $0x4a4] ss:$16 sps:$4 sm:$0xff]  }
  0xc4   : > { %2390 = vmatpush1.bf16.msra.mxu0 %v5936_v7  ;;  %2842 = vmatpush1.bf16.msra.mxu1 %v5939_v8  ;;  %v4811_v7 = vcombine.high %v339_v0, %v343_v2  ;;  %v6002_v8 = vld [vmem:[#allocation8 + $0x4a0] ss:$16 sps:$4 sm:$0xff]  }
  0xc5   : > { %2391 = vmatprep.subr.bf16.mxu0 %v5944_v9  ;;  %2843 = vmatprep.subr.bf16.mxu1 %v5947_v10  ;;  %v6005_v9 = vld [vmem:[#allocation8 + $0x4a8] ss:$16 sps:$4 sm:$0xff]   ;;  %v6010_v10 = vld [vmem:[#allocation8 + $0x4c4] ss:$16 sps:$4 sm:$0xff]  }
  0xc6   : > { %2348 = vmatprep.mubr.bf16.mxu0 %v4833_v11  ;;  %2800 = vmatprep.mubr.bf16.mxu1 %v4833_v11  ;;  %v6013_v11 = vld [vmem:[#allocation8 + $0x4cc] ss:$16 sps:$4 sm:$0xff]  }
  0xc8   : > { %2392 = vmatpush1.bf16.msra.mxu0 %v5942_v12  ;;  %2844 = vmatpush1.bf16.msra.mxu1 %v5945_v13  ;;  %v347_v12 = vld [vmem:[%s6659_s23 + $0x108] sm:$0xff]  ;;  %v4810_v13 = vcombine.low %v339_v0, %v343_v2  ;;  %v320_v0 = vld [vmem:[%s6659_s23 + $0x30] sm:$0xff] }
  0xc9   : > { %2393 = vmatprep.subr.bf16.mxu0 %v5950_v14  ;;  %2845 = vmatprep.subr.bf16.mxu1 %v5953_v15  ;;  %v351_v14 = vld [vmem:[%s6659_s23 + $0x128] sm:$0xff]  ;;  %v6008_v15 = vld [vmem:[#allocation8 + $0x4c0] ss:$16 sps:$4 sm:$0xff]  }
  0xca   : > { %v4819_v19 = vcombine.high %v347_v12, %v351_v14  ;;  %v6067_v2 = vld [vmem:[#allocation8 + $0x5ec] ss:$16 sps:$4 sm:$0xff]  }
  0xcb   : > { %2349 = vmatmul.mubr.bf16.gmra.mrb[24].mxu0 %v4832_v18  ;;  %2801 = vmatmul.mubr.bf16.gmra.mrb[24].mxu1 %v4832_v18  ;;  %v6019_v18 = vld [vmem:[#allocation8 + $0x4ec] ss:$16 sps:$4 sm:$0xff]  }
  0xcc   : > { %2394 = vmatpush1.bf16.msra.mxu0 %v5948_v16  ;;  %2846 = vmatpush1.bf16.msra.mxu1 %v5951_v17  ;;  %v6011_v16 = vld [vmem:[#allocation8 + $0x4c8] ss:$16 sps:$4 sm:$0xff]   ;;  %v6016_v17 = vld [vmem:[#allocation8 + $0x4e4] ss:$16 sps:$4 sm:$0xff]  }
  0xcd   : > { %2395 = vmatprep.subr.bf16.mxu0 %v5956_v21  ;;  %2847 = vmatprep.subr.bf16.mxu1 %v5959_v22  ;;  %v6017_v21 = vld [vmem:[#allocation8 + $0x4e8] ss:$16 sps:$4 sm:$0xff]   ;;  %v6022_v22 = vld [vmem:[#allocation8 + $0x504] ss:$16 sps:$4 sm:$0xff]  }
  0xce   : > { %2358 = vmatprep.mubr.bf16.mxu0 %v4841_v23  ;;  %2810 = vmatprep.mubr.bf16.mxu1 %v4841_v23  ;;  %v6025_v23 = vld [vmem:[#allocation8 + $0x50c] ss:$16 sps:$4 sm:$0xff]  }
  0xd0   : > { %2396 = vmatpush1.bf16.msra.mxu0 %v5954_v24  ;;  %2848 = vmatpush1.bf16.msra.mxu1 %v5957_v25  ;;  %v6020_v24 = vld [vmem:[#allocation8 + $0x500] ss:$16 sps:$4 sm:$0xff]   ;;  %v6023_v25 = vld [vmem:[#allocation8 + $0x508] ss:$16 sps:$4 sm:$0xff]  }
  0xd1   : > { %2397 = vmatprep.subr.bf16.mxu0 %v5962_v26  ;;  %2849 = vmatprep.subr.bf16.mxu1 %v5965_v27  ;;  %v4818_v26 = vcombine.low %v347_v12, %v351_v14  ;;  %v355_v27 = vld [vmem:[%s6659_s23 + $0x148] sm:$0xff]  ;;  %v328_v12 = vld [vmem:[%s6659_s23 + $0x70] sm:$0xff] }
  0xd2   : > { %v6079_v14 = vld [vmem:[#allocation8 + $0x62c] ss:$16 sps:$4 sm:$0xff]  }
  0xd3   : > { %2359 = vmatmul.mubr.bf16.gmra.mrb[28].mxu0 %v4840_v29  ;;  %2811 = vmatmul.mubr.bf16.gmra.mrb[28].mxu1 %v4840_v29  ;;  %v6028_v29 = vld [vmem:[#allocation8 + $0x524] ss:$16 sps:$4 sm:$0xff]  }
  0xd4   : > { %2398 = vmatpush1.bf16.msra.mxu0 %v5960_v31  ;;  %2850 = vmatpush1.bf16.msra.mxu1 %v5963_v32  ;;  %v4827_v31 = vcombine.high %v355_v27, %v359_v28  ;;  %v6026_v32 = vld [vmem:[#allocation8 + $0x520] ss:$16 sps:$4 sm:$0xff]  }
  0xd5   : > { %2399 = vmatprep.subr.bf16.mxu0 %v5968_v33  ;;  %2851 = vmatprep.subr.bf16.mxu1 %v5971_v34  ;;  %v6029_v33 = vld [vmem:[#allocation8 + $0x528] ss:$16 sps:$4 sm:$0xff]   ;;  %v6034_v34 = vld [vmem:[#allocation8 + $0x544] ss:$16 sps:$4 sm:$0xff]  }
  0xd6   : > { %2401 = vmatprep.mubr.bf16.mxu0 %v4787_v35  ;;  %2853 = vmatprep.mubr.bf16.mxu1 %v4787_v35  ;;  %v6037_v35 = vld [vmem:[#allocation8 + $0x54c] ss:$16 sps:$4 sm:$0xff]  }
  0xd8   : > { %2400 = vmatpush1.bf16.msra.mxu0 %v5966_v36  ;;  %2852 = vmatpush1.bf16.msra.mxu1 %v5969_v37  ;;  %v363_v36 = vld [vmem:[%s6659_s23 + $0x188] sm:$0xff]  ;;  %v4826_v37 = vcombine.low %v355_v27, %v359_v28  ;;  %v6086_v28 = vld [vmem:[#allocation8 + $0x660] ss:$16 sps:$4 sm:$0xff]  }
  0xd9   : > { %2482 = vmatprep.subr.bf16.mxu0 %v5974_v38  ;;  %2934 = vmatprep.subr.bf16.mxu1 %v5977_v39  ;;  %v367_v38 = vld [vmem:[%s6659_s23 + $0x1a8] sm:$0xff]  ;;  %v6032_v39 = vld [vmem:[#allocation8 + $0x540] ss:$16 sps:$4 sm:$0xff]  }
  0xdb   : > { %2402 = vmatmul.mubr.bf16.vlgmr.msra.gmra.mrb[0].mxu0 %v4786_v41  ;;  %2854 = vmatmul.mubr.bf16.vlgmr.msra.gmra.mrb[0].mxu1 %v4786_v41  ;;  %v6040_v41 = vld [vmem:[#allocation8 + $0x564] ss:$16 sps:$4 sm:$0xff]  }
  0xdc   : > { %2483 = vmatpush1.bf16.msra.mxu0 %v5972_v43  ;;  %2935 = vmatpush1.bf16.msra.mxu1 %v5975_v44  ;;  %v4835_v43 = vcombine.high %v363_v36, %v367_v38  ;;  %v6038_v44 = vld [vmem:[#allocation8 + $0x560] ss:$16 sps:$4 sm:$0xff]  }
  0xdd   : > { %2484 = vmatprep.subr.bf16.mxu0 %v5980_v45  ;;  %2936 = vmatprep.subr.bf16.mxu1 %v5983_v46  ;;  %v6041_v45 = vld [vmem:[#allocation8 + $0x568] ss:$16 sps:$4 sm:$0xff]   ;;  %v6046_v46 = vld [vmem:[#allocation8 + $0x584] ss:$16 sps:$4 sm:$0xff]  }
  0xde   : > { %2411 = vmatprep.mubr.bf16.mxu0 %v4795_v47  ;;  %2863 = vmatprep.mubr.bf16.mxu1 %v4795_v47  ;;  %v6049_v47 = vld [vmem:[#allocation8 + $0x58c] ss:$16 sps:$4 sm:$0xff]  }
  0xe0   : > { %2485 = vmatpush1.bf16.msra.mxu0 %v5978_v48  ;;  %2937 = vmatpush1.bf16.msra.mxu1 %v5981_v49  ;;  %v371_v48 = vld [vmem:[%s6659_s23 + $0x1c8] sm:$0xff]  ;;  %v4834_v49 = vcombine.low %v363_v36, %v367_v38  ;;  %v344_v36 = vld [vmem:[%s6659_s23 + $0xf0] sm:$0xff] }
  0xe1   : > { %2486 = vmatprep.subr.bf16.mxu0 %v5986_v50  ;;  %2938 = vmatprep.subr.bf16.mxu1 %v5989_v51  ;;  %v375_v50 = vld [vmem:[%s6659_s23 + $0x1e8] sm:$0xff]  ;;  %v6044_v51 = vld [vmem:[#allocation8 + $0x580] ss:$16 sps:$4 sm:$0xff]  }
  0xe2   : > { %v4843_v55 = vcombine.high %v371_v48, %v375_v50  ;;  %v6103_v38 = vld [vmem:[#allocation8 + $0x6ac] ss:$16 sps:$4 sm:$0xff]  }
  0xe3   : > { %2412 = vmatmul.mubr.bf16.gmra.mrb[4].mxu0 %v4794_v54  ;;  %2864 = vmatmul.mubr.bf16.gmra.mrb[4].mxu1 %v4794_v54  ;;  %v6055_v54 = vld [vmem:[#allocation8 + $0x5ac] ss:$16 sps:$4 sm:$0xff]  }
  0xe4   : > { %2487 = vmatpush1.bf16.msra.mxu0 %v5984_v52  ;;  %2939 = vmatpush1.bf16.msra.mxu1 %v5987_v53  ;;  %v6047_v52 = vld [vmem:[#allocation8 + $0x588] ss:$16 sps:$4 sm:$0xff]   ;;  %v6052_v53 = vld [vmem:[#allocation8 + $0x5a4] ss:$16 sps:$4 sm:$0xff]  }
  0xe5   : > { %2488 = vmatprep.subr.bf16.mxu0 %v5992_v57  ;;  %2940 = vmatprep.subr.bf16.mxu1 %v5995_v58  ;;  %v6053_v57 = vld [vmem:[#allocation8 + $0x5a8] ss:$16 sps:$4 sm:$0xff]   ;;  %v6058_v58 = vld [vmem:[#allocation8 + $0x5c4] ss:$16 sps:$4 sm:$0xff]  }
  0xe6   : > { %2421 = vmatprep.mubr.bf16.mxu0 %v4803_v59  ;;  %2873 = vmatprep.mubr.bf16.mxu1 %v4803_v59  ;;  %v6061_v59 = vld [vmem:[#allocation8 + $0x5cc] ss:$16 sps:$4 sm:$0xff]  }
  0xe8   : > { %2489 = vmatpush1.bf16.msra.mxu0 %v5990_v60  ;;  %2941 = vmatpush1.bf16.msra.mxu1 %v5993_v61  ;;  %v6056_v60 = vld [vmem:[#allocation8 + $0x5c0] ss:$16 sps:$4 sm:$0xff]   ;;  %v6059_v61 = vld [vmem:[#allocation8 + $0x5c8] ss:$16 sps:$4 sm:$0xff]  }
  0xe9   : > { %2490 = vmatprep.subr.bf16.mxu0 %v5998_v62  ;;  %2942 = vmatprep.subr.bf16.mxu1 %v6001_v63  ;;  %v4842_v62 = vcombine.low %v371_v48, %v375_v50  ;;  %v316_v63 = vld [vmem:[%s6659_s23 + $0x10] sm:$0xff]  ;;  %v6115_v50 = vld [vmem:[#allocation8 + $0x6ec] ss:$16 sps:$4 sm:$0xff]  }
  0xea   : > { %v352_v48 = vld [vmem:[%s6659_s23 + $0x130] sm:$0xff] }
  0xeb   : > { %2422 = vmatmul.mubr.bf16.gmra.mrb[8].mxu0 %v4802_v1  ;;  %2874 = vmatmul.mubr.bf16.gmra.mrb[8].mxu1 %v4802_v1  ;;  %v6064_v1 = vld [vmem:[#allocation8 + $0x5e4] ss:$16 sps:$4 sm:$0xff]  }
  0xec   : > { %2491 = vmatpush1.bf16.msra.mxu0 %v5996_v3  ;;  %2943 = vmatpush1.bf16.msra.mxu1 %v5999_v4  ;;  %v4789_v3 = vcombine.high %v316_v63, %v320_v0  ;;  %v6062_v4 = vld [vmem:[#allocation8 + $0x5e0] ss:$16 sps:$4 sm:$0xff]  }
  0xed   : > { %2492 = vmatprep.subr.bf16.mxu0 %v6004_v5  ;;  %2944 = vmatprep.subr.bf16.mxu1 %v6007_v6  ;;  %v6065_v5 = vld [vmem:[#allocation8 + $0x5e8] ss:$16 sps:$4 sm:$0xff]   ;;  %v6070_v6 = vld [vmem:[#allocation8 + $0x604] ss:$16 sps:$4 sm:$0xff]  }
  0xee   : > { %2431 = vmatprep.mubr.bf16.mxu0 %v4811_v7  ;;  %2883 = vmatprep.mubr.bf16.mxu1 %v4811_v7  ;;  %v6073_v7 = vld [vmem:[#allocation8 + $0x60c] ss:$16 sps:$4 sm:$0xff]  }
  0xf0   : > { %2493 = vmatpush1.bf16.msra.mxu0 %v6002_v8  ;;  %2945 = vmatpush1.bf16.msra.mxu1 %v6005_v9  ;;  %v6068_v8 = vld [vmem:[#allocation8 + $0x600] ss:$16 sps:$4 sm:$0xff]   ;;  %v4788_v9 = vcombine.low %v316_v63, %v320_v0 }
  0xf1   : > { %2494 = vmatprep.subr.bf16.mxu0 %v6010_v10  ;;  %2946 = vmatprep.subr.bf16.mxu1 %v6013_v11  ;;  %v6071_v10 = vld [vmem:[#allocation8 + $0x608] ss:$16 sps:$4 sm:$0xff]   ;;  %v324_v11 = vld [vmem:[%s6659_s23 + $0x50] sm:$0xff] }
  0xf2   : > { %v6122_v63 = vld [vmem:[#allocation8 + $0x720] ss:$16 sps:$4 sm:$0xff]  }
  0xf3   : > { %2432 = vmatmul.mubr.bf16.gmra.mrb[12].mxu0 %v4810_v13  ;;  %2884 = vmatmul.mubr.bf16.gmra.mrb[12].mxu1 %v4810_v13  ;;  %v6076_v13 = vld [vmem:[#allocation8 + $0x624] ss:$16 sps:$4 sm:$0xff]  }
  0xf4   : > { %2495 = vmatpush1.bf16.msra.mxu0 %v6008_v15  ;;  %2947 = vmatpush1.bf16.msra.mxu1 %v6011_v16  ;;  %v4797_v15 = vcombine.high %v324_v11, %v328_v12  ;;  %v6074_v16 = vld [vmem:[#allocation8 + $0x620] ss:$16 sps:$4 sm:$0xff]  }
  0xf5   : > { %2496 = vmatprep.subr.bf16.mxu0 %v6016_v17  ;;  %2948 = vmatprep.subr.bf16.mxu1 %v6019_v18  ;;  %v6077_v17 = vld [vmem:[#allocation8 + $0x628] ss:$16 sps:$4 sm:$0xff]   ;;  %v6082_v18 = vld [vmem:[#allocation8 + $0x644] ss:$16 sps:$4 sm:$0xff]  }
  0xf6   : > { %2441 = vmatprep.mubr.bf16.mxu0 %v4819_v19  ;;  %2893 = vmatprep.mubr.bf16.mxu1 %v4819_v19  ;;  %v6085_v19 = vld [vmem:[#allocation8 + $0x64c] ss:$16 sps:$4 sm:$0xff]  }
  0xf8   : > { %2497 = vmatpush1.bf16.msra.mxu0 %v6014_v20  ;;  %2949 = vmatpush1.bf16.msra.mxu1 %v6017_v21  ;;  %v6080_v20 = vld [vmem:[#allocation8 + $0x640] ss:$16 sps:$4 sm:$0xff]   ;;  %v6083_v21 = vld [vmem:[#allocation8 + $0x648] ss:$16 sps:$4 sm:$0xff]  }
  0xf9   : > { %2498 = vmatprep.subr.bf16.mxu0 %v6022_v22  ;;  %2950 = vmatprep.subr.bf16.mxu1 %v6025_v23  ;;  %v4796_v22 = vcombine.low %v324_v11, %v328_v12  ;;  %v332_v23 = vld [vmem:[%s6659_s23 + $0x90] sm:$0xff] }
  0xfa   : > { %v6134_v12 = vld [vmem:[#allocation8 + $0x760] ss:$16 sps:$4 sm:$0xff]  }
  0xfb   : > { %2442 = vmatmul.mubr.bf16.gmra.mrb[16].mxu0 %v4818_v26  ;;  %2894 = vmatmul.mubr.bf16.gmra.mrb[16].mxu1 %v4818_v26  ;;  %v6091_v26 = vld [vmem:[#allocation8 + $0x66c] ss:$16 sps:$4 sm:$0xff]  }
  0xfc   : > { %2499 = vmatpush1.bf16.msra.mxu0 %v6020_v24  ;;  %2951 = vmatpush1.bf16.msra.mxu1 %v6023_v25  ;;  %v336_v24 = vld [vmem:[%s6659_s23 + $0xb0] sm:$0xff] }
  0xfd   : > { %2500 = vmatprep.subr.bf16.mxu0 %v6028_v29  ;;  %2952 = vmatprep.subr.bf16.mxu1 %v6031_v30  ;;  %v6088_v25 = vld [vmem:[#allocation8 + $0x664] ss:$16 sps:$4 sm:$0xff]   ;;  %v4805_v27 = vcombine.high %v332_v23, %v336_v24  ;;  %v6089_v29 = vld [vmem:[#allocation8 + $0x668] ss:$16 sps:$4 sm:$0xff]  }
  0xfe   : > { %2451 = vmatprep.mubr.bf16.mxu0 %v4827_v31  ;;  %2903 = vmatprep.mubr.bf16.mxu1 %v4827_v31  ;;  %v6094_v30 = vld [vmem:[#allocation8 + $0x684] ss:$16 sps:$4 sm:$0xff]   ;;  %v6097_v31 = vld [vmem:[#allocation8 + $0x68c] ss:$16 sps:$4 sm:$0xff]  }
 0x100   : > { %2501 = vmatpush1.bf16.msra.mxu0 %v6026_v32  ;;  %2953 = vmatpush1.bf16.msra.mxu1 %v6029_v33  ;;  %v6092_v32 = vld [vmem:[#allocation8 + $0x680] ss:$16 sps:$4 sm:$0xff]   ;;  %v6095_v33 = vld [vmem:[#allocation8 + $0x688] ss:$16 sps:$4 sm:$0xff]  }
 0x101   : > { %2502 = vmatprep.subr.bf16.mxu0 %v6034_v34  ;;  %2954 = vmatprep.subr.bf16.mxu1 %v6037_v35  ;;  %v4804_v34 = vcombine.low %v332_v23, %v336_v24  ;;  %v340_v35 = vld [vmem:[%s6659_s23 + $0xd0] sm:$0xff] }
 0x102   : > { %v6146_v24 = vld [vmem:[#allocation8 + $0x7a0] ss:$16 sps:$4 sm:$0xff]  }
 0x103   : > { %2452 = vmatmul.mubr.bf16.gmra.mrb[20].mxu0 %v4826_v37  ;;  %2904 = vmatmul.mubr.bf16.gmra.mrb[20].mxu1 %v4826_v37  ;;  %v6100_v37 = vld [vmem:[#allocation8 + $0x6a4] ss:$16 sps:$4 sm:$0xff]  }
 0x104   : > { %2503 = vmatpush1.bf16.msra.mxu0 %v6032_v39  ;;  %2955 = vmatpush1.bf16.msra.mxu1 %v6035_v40  ;;  %v4813_v39 = vcombine.high %v340_v35, %v344_v36  ;;  %v6098_v40 = vld [vmem:[#allocation8 + $0x6a0] ss:$16 sps:$4 sm:$0xff]  }
 0x105   : > { %2504 = vmatprep.subr.bf16.mxu0 %v6040_v41  ;;  %2956 = vmatprep.subr.bf16.mxu1 %v6043_v42  ;;  %v6101_v41 = vld [vmem:[#allocation8 + $0x6a8] ss:$16 sps:$4 sm:$0xff]   ;;  %v6106_v42 = vld [vmem:[#allocation8 + $0x6c4] ss:$16 sps:$4 sm:$0xff]  }
 0x106   : > { %2461 = vmatprep.mubr.bf16.mxu0 %v4835_v43  ;;  %2913 = vmatprep.mubr.bf16.mxu1 %v4835_v43  ;;  %v6109_v43 = vld [vmem:[#allocation8 + $0x6cc] ss:$16 sps:$4 sm:$0xff]  }
 0x108   : > { %2505 = vmatpush1.bf16.msra.mxu0 %v6038_v44  ;;  %2957 = vmatpush1.bf16.msra.mxu1 %v6041_v45  ;;  %v6104_v44 = vld [vmem:[#allocation8 + $0x6c0] ss:$16 sps:$4 sm:$0xff]   ;;  %v6107_v45 = vld [vmem:[#allocation8 + $0x6c8] ss:$16 sps:$4 sm:$0xff]  }
 0x109   : > { %2506 = vmatprep.subr.bf16.mxu0 %v6046_v46  ;;  %2958 = vmatprep.subr.bf16.mxu1 %v6049_v47  ;;  %v4812_v46 = vcombine.low %v340_v35, %v344_v36  ;;  %v348_v47 = vld [vmem:[%s6659_s23 + $0x110] sm:$0xff] }
 0x10a   : > { %v6158_v36 = vld [vmem:[#allocation8 + $0x7e0] ss:$16 sps:$4 sm:$0xff]  }
 0x10b   : > { %2462 = vmatmul.mubr.bf16.gmra.mrb[24].mxu0 %v4834_v49  ;;  %2914 = vmatmul.mubr.bf16.gmra.mrb[24].mxu1 %v4834_v49  ;;  %v6112_v49 = vld [vmem:[#allocation8 + $0x6e4] ss:$16 sps:$4 sm:$0xff]  }
 0x10c   : > { %2507 = vmatpush1.bf16.msra.mxu0 %v6044_v51  ;;  %2959 = vmatpush1.bf16.msra.mxu1 %v6047_v52  ;;  %v4821_v51 = vcombine.high %v348_v47, %v352_v48  ;;  %v6110_v52 = vld [vmem:[#allocation8 + $0x6e0] ss:$16 sps:$4 sm:$0xff]  }
 0x10d   : > { %2508 = vmatprep.subr.bf16.mxu0 %v6052_v53  ;;  %2960 = vmatprep.subr.bf16.mxu1 %v6055_v54  ;;  %v6113_v53 = vld [vmem:[#allocation8 + $0x6e8] ss:$16 sps:$4 sm:$0xff]   ;;  %v6118_v54 = vld [vmem:[#allocation8 + $0x704] ss:$16 sps:$4 sm:$0xff]  }
 0x10e   : > { %2471 = vmatprep.mubr.bf16.mxu0 %v4843_v55  ;;  %2923 = vmatprep.mubr.bf16.mxu1 %v4843_v55  ;;  %v6121_v55 = vld [vmem:[#allocation8 + $0x70c] ss:$16 sps:$4 sm:$0xff]  }
 0x110   : > { %2509 = vmatpush1.bf16.msra.mxu0 %v6050_v56  ;;  %2961 = vmatpush1.bf16.msra.mxu1 %v6053_v57  ;;  %v6116_v56 = vld [vmem:[#allocation8 + $0x700] ss:$16 sps:$4 sm:$0xff]   ;;  %v6119_v57 = vld [vmem:[#allocation8 + $0x708] ss:$16 sps:$4 sm:$0xff]  }
 0x111   : > { %2510 = vmatprep.subr.bf16.mxu0 %v6058_v58  ;;  %2962 = vmatprep.subr.bf16.mxu1 %v6061_v59  ;;  %v4820_v58 = vcombine.low %v348_v47, %v352_v48  ;;  %v356_v59 = vld [vmem:[%s6659_s23 + $0x150] sm:$0xff]  ;;  %v333_v48 = vld [vmem:[%s6659_s23 + $0x98] sm:$0xff] }
 0x112   : > { %v6746_v47 = vld [vmem:[%s7686_s3 + $0x114] ss:$8 sps:$4 sm:$0xff]  }
 0x113   : > { %2472 = vmatmul.mubr.bf16.gmra.mrb[28].mxu0 %v4842_v62  ;;  %2924 = vmatmul.mubr.bf16.gmra.mrb[28].mxu1 %v4842_v62  ;;  %v6127_v62 = vld [vmem:[#allocation8 + $0x72c] ss:$16 sps:$4 sm:$0xff]  }
 0x114   : > { %2511 = vmatpush1.bf16.msra.mxu0 %v6056_v60  ;;  %2963 = vmatpush1.bf16.msra.mxu1 %v6059_v61  ;;  %v360_v60 = vld [vmem:[%s6659_s23 + $0x170] sm:$0xff] }
 0x115   : > { %2512 = vmatprep.subr.bf16.mxu0 %v6064_v1  ;;  %2964 = vmatprep.subr.bf16.mxu1 %v6067_v2  ;;  %v6124_v61 = vld [vmem:[#allocation8 + $0x724] ss:$16 sps:$4 sm:$0xff]   ;;  %v4829_v0 = vcombine.high %v356_v59, %v360_v60  ;;  %v6125_v1 = vld [vmem:[#allocation8 + $0x728] ss:$16 sps:$4 sm:$0xff]  }
 0x116   : > { %2514 = vmatprep.mubr.bf16.mxu0 %v4789_v3  ;;  %2966 = vmatprep.mubr.bf16.mxu1 %v4789_v3  ;;  %v6130_v2 = vld [vmem:[#allocation8 + $0x744] ss:$16 sps:$4 sm:$0xff]   ;;  %v6133_v3 = vld [vmem:[#allocation8 + $0x74c] ss:$16 sps:$4 sm:$0xff]  }
 0x118   : > { %2513 = vmatpush1.bf16.msra.mxu0 %v6062_v4  ;;  %2965 = vmatpush1.bf16.msra.mxu1 %v6065_v5  ;;  %v364_v4 = vld [vmem:[%s6659_s23 + $0x190] sm:$0xff]  ;;  %v4828_v5 = vcombine.low %v356_v59, %v360_v60  ;;  %v341_v60 = vld [vmem:[%s6659_s23 + $0xd8] sm:$0xff] }
 0x119   : > { %2595 = vmatprep.subr.bf16.mxu0 %v6070_v6  ;;  %3047 = vmatprep.subr.bf16.mxu1 %v6073_v7  ;;  %v368_v6 = vld [vmem:[%s6659_s23 + $0x1b0] sm:$0xff] }
 0x11a   : > { %v6128_v7 = vld [vmem:[#allocation8 + $0x740] ss:$16 sps:$4 sm:$0xff]   ;;  %v4837_v11 = vcombine.high %v364_v4, %v368_v6 }
 0x11b   : > { %2515 = vmatmul.mubr.bf16.vlgmr.msra.gmra.mrb[0].mxu0 %v4788_v9  ;;  %2967 = vmatmul.mubr.bf16.vlgmr.msra.gmra.mrb[0].mxu1 %v4788_v9  ;;  %v6136_v9 = vld [vmem:[#allocation8 + $0x764] ss:$16 sps:$4 sm:$0xff]  }
 0x11c   : > { %2596 = vmatpush1.bf16.msra.mxu0 %v6068_v8  ;;  %3048 = vmatpush1.bf16.msra.mxu1 %v6071_v10  ;;  %v6131_v8 = vld [vmem:[#allocation8 + $0x748] ss:$16 sps:$4 sm:$0xff]   ;;  %v6139_v10 = vld [vmem:[#allocation8 + $0x76c] ss:$16 sps:$4 sm:$0xff]  }
 0x11d   : > { %2597 = vmatprep.subr.bf16.mxu0 %v6076_v13  ;;  %3049 = vmatprep.subr.bf16.mxu1 %v6079_v14  ;;  %v6137_v13 = vld [vmem:[#allocation8 + $0x768] ss:$16 sps:$4 sm:$0xff]   ;;  %v6142_v14 = vld [vmem:[#allocation8 + $0x784] ss:$16 sps:$4 sm:$0xff]  }
 0x11e   : > { %2524 = vmatprep.mubr.bf16.mxu0 %v4797_v15  ;;  %2976 = vmatprep.mubr.bf16.mxu1 %v4797_v15  ;;  %v6145_v15 = vld [vmem:[#allocation8 + $0x78c] ss:$16 sps:$4 sm:$0xff]  }
 0x11f   : > { %v6784_v59 = vld [vmem:[%s7686_s3 + $0x134] ss:$8 sps:$4 sm:$0xff]  }
 0x120   : > { %2598 = vmatpush1.bf16.msra.mxu0 %v6074_v16  ;;  %3050 = vmatpush1.bf16.msra.mxu1 %v6077_v17  ;;  %v4836_v16 = vcombine.low %v364_v4, %v368_v6  ;;  %v372_v17 = vld [vmem:[%s6659_s23 + $0x1d0] sm:$0xff]  ;;  %v6188_v4 = vld [vmem:[%s7686_s3 + $0x40] ss:$8 sps:$4 sm:$0xff]  }
 0x121   : > { %2599 = vmatprep.subr.bf16.mxu0 %v6082_v18  ;;  %3051 = vmatprep.subr.bf16.mxu1 %v6085_v19  ;;  %v376_v18 = vld [vmem:[%s6659_s23 + $0x1f0] sm:$0xff] }
 0x122   : > { %v6140_v19 = vld [vmem:[#allocation8 + $0x780] ss:$16 sps:$4 sm:$0xff]   ;;  %v4845_v23 = vcombine.high %v372_v17, %v376_v18 }
 0x123   : > { %2525 = vmatmul.mubr.bf16.gmra.mrb[4].mxu0 %v4796_v22  ;;  %2977 = vmatmul.mubr.bf16.gmra.mrb[4].mxu1 %v4796_v22  ;;  %v6151_v22 = vld [vmem:[#allocation8 + $0x7ac] ss:$16 sps:$4 sm:$0xff]  }
 0x124   : > { %2600 = vmatpush1.bf16.msra.mxu0 %v6080_v20  ;;  %3052 = vmatpush1.bf16.msra.mxu1 %v6083_v21  ;;  %v6143_v20 = vld [vmem:[#allocation8 + $0x788] ss:$16 sps:$4 sm:$0xff]   ;;  %v6148_v21 = vld [vmem:[#allocation8 + $0x7a4] ss:$16 sps:$4 sm:$0xff]  }
 0x125   : > { %2601 = vmatprep.subr.bf16.mxu0 %v6088_v25  ;;  %3053 = vmatprep.subr.bf16.mxu1 %v6091_v26  ;;  %v6149_v25 = vld [vmem:[#allocation8 + $0x7a8] ss:$16 sps:$4 sm:$0xff]   ;;  %v6154_v26 = vld [vmem:[#allocation8 + $0x7c4] ss:$16 sps:$4 sm:$0xff]  }
 0x126   : > { %2534 = vmatprep.mubr.bf16.mxu0 %v4805_v27  ;;  %2986 = vmatprep.mubr.bf16.mxu1 %v4805_v27  ;;  %v6157_v27 = vld [vmem:[#allocation8 + $0x7cc] ss:$16 sps:$4 sm:$0xff]  }
 0x127   : > { %v6196_v6 = vld [vmem:[%s7686_s3 + $0x54] ss:$8 sps:$4 sm:$0xff]  }
 0x128   : > { %2602 = vmatpush1.bf16.msra.mxu0 %v6086_v28  ;;  %3054 = vmatpush1.bf16.msra.mxu1 %v6089_v29  ;;  %v4844_v28 = vcombine.low %v372_v17, %v376_v18  ;;  %v317_v29 = vld [vmem:[%s6659_s23 + $0x18] sm:$0xff] }
 0x129   : > { %2603 = vmatprep.subr.bf16.mxu0 %v6094_v30  ;;  %3055 = vmatprep.subr.bf16.mxu1 %v6097_v31  ;;  %v321_v30 = vld [vmem:[%s6659_s23 + $0x38] sm:$0xff]  ;;  %v6152_v31 = vld [vmem:[#allocation8 + $0x7c0] ss:$16 sps:$4 sm:$0xff]  }
 0x12a   : > { %v4791_v35 = vcombine.high %v317_v29, %v321_v30  ;;  %v6851_v17 = vld [vmem:[%s7686_s3 + $0x160] ss:$8 sps:$4 sm:$0xff]   ;;  %v6208_v18 = vld [vmem:[%s7686_s3 + $0x74] ss:$8 sps:$4 sm:$0xff]  }
 0x12b   : > { %2535 = vmatmul.mubr.bf16.gmra.mrb[8].mxu0 %v4804_v34  ;;  %2987 = vmatmul.mubr.bf16.gmra.mrb[8].mxu1 %v4804_v34  ;;  %v6163_v34 = vld [vmem:[#allocation8 + $0x7ec] ss:$16 sps:$4 sm:$0xff]  }
 0x12c   : > { %2604 = vmatpush1.bf16.msra.mxu0 %v6092_v32  ;;  %3056 = vmatpush1.bf16.msra.mxu1 %v6095_v33  ;;  %v6155_v32 = vld [vmem:[#allocation8 + $0x7c8] ss:$16 sps:$4 sm:$0xff]   ;;  %v6160_v33 = vld [vmem:[#allocation8 + $0x7e4] ss:$16 sps:$4 sm:$0xff]  }
 0x12d   : > { %2605 = vmatprep.subr.bf16.mxu0 %v6100_v37  ;;  %3057 = vmatprep.subr.bf16.mxu1 %v6103_v38  ;;  %v6161_v37 = vld [vmem:[#allocation8 + $0x7e8] ss:$16 sps:$4 sm:$0xff]  }
 0x12e   : > { %2544 = vmatprep.mubr.bf16.mxu0 %v4813_v39  ;;  %2996 = vmatprep.mubr.bf16.mxu1 %v4813_v39  ;;  %v325_v38 = vld [vmem:[%s6659_s23 + $0x58] sm:$0xff] }
 0x12f   : > { %v329_v39 = vld [vmem:[%s6659_s23 + $0x78] sm:$0xff] }
 0x130   : > { %2606 = vmatpush1.bf16.msra.mxu0 %v6098_v40  ;;  %3058 = vmatpush1.bf16.msra.mxu1 %v6101_v41  ;;  %v6166_v40 = vld [vmem:[%s7686_s3 + $0x4] ss:$8 sps:$4 sm:$0xff]  }
 0x131   : > { %2607 = vmatprep.subr.bf16.mxu0 %v6106_v42  ;;  %3059 = vmatprep.subr.bf16.mxu1 %v6109_v43  ;;  %v6729_v41 = vld [vmem:[%s7686_s3 + $0x104] ss:$8 sps:$4 sm:$0xff]   ;;  %v4790_v42 = vcombine.low %v317_v29, %v321_v30  ;;  %v4799_v43 = vcombine.high %v325_v38, %v329_v39  ;;  %v6889_v29 = vld [vmem:[%s7686_s3 + $0x180] ss:$8 sps:$4 sm:$0xff]   ;;  %v6220_v30 = vld [vmem:[%s7686_s3 + $0x94] ss:$8 sps:$4 sm:$0xff]  }
 0x133   : > { %2545 = vmatmul.mubr.bf16.gmra.mrb[12].mxu0 %v4812_v46  ;;  %2997 = vmatmul.mubr.bf16.gmra.mrb[12].mxu1 %v4812_v46  ;;  %v6172_v46 = vld [vmem:[%s7686_s3 + $0x14] ss:$8 sps:$4 sm:$0xff]  }
 0x134   : > { %2608 = vmatpush1.bf16.msra.mxu0 %v6104_v44  ;;  %3060 = vmatpush1.bf16.msra.mxu1 %v6107_v45  ;;  %v6164_v44 = vld [vmem:[%s7686_s3] ss:$8 sps:$4 sm:$0xff]  }
 0x135   : > { %2609 = vmatprep.subr.bf16.mxu0 %v6112_v49  ;;  %3061 = vmatprep.subr.bf16.mxu1 %v6115_v50  ;;  %v6737_v45 = vld [vmem:[%s7686_s3 + $0x100] ss:$8 sps:$4 sm:$0xff]   ;;  %v6170_v50 = vld [vmem:[%s7686_s3 + $0x10] ss:$8 sps:$4 sm:$0xff]  }
 0x136   : > { %2554 = vmatprep.mubr.bf16.mxu0 %v4821_v51  ;;  %3006 = vmatprep.mubr.bf16.mxu1 %v4821_v51  ;;  %v337_v49 = vld [vmem:[%s6659_s23 + $0xb8] sm:$0xff]  ;;  %v6757_v51 = vld [vmem:[%s7686_s3 + $0x110] ss:$8 sps:$4 sm:$0xff]  }
 0x138   : > { %2610 = vmatpush1.bf16.msra.mxu0 %v6110_v52  ;;  %3062 = vmatpush1.bf16.msra.mxu1 %v6113_v53  ;;  %v6178_v52 = vld [vmem:[%s7686_s3 + $0x24] ss:$8 sps:$4 sm:$0xff]  }
 0x139   : > { %2611 = vmatprep.subr.bf16.mxu0 %v6118_v54  ;;  %3063 = vmatprep.subr.bf16.mxu1 %v6121_v55  ;;  %v6766_v53 = vld [vmem:[%s7686_s3 + $0x124] ss:$8 sps:$4 sm:$0xff]   ;;  %v4798_v54 = vcombine.low %v325_v38, %v329_v39  ;;  %v4807_v55 = vcombine.high %v333_v48, %v337_v49 }
 0x13b   : > { %2555 = vmatmul.mubr.bf16.gmra.mrb[16].mxu0 %v4820_v58  ;;  %3007 = vmatmul.mubr.bf16.gmra.mrb[16].mxu1 %v4820_v58  ;;  %v6184_v58 = vld [vmem:[%s7686_s3 + $0x34] ss:$8 sps:$4 sm:$0xff]  }
 0x13c   : > { %2612 = vmatpush1.bf16.msra.mxu0 %v6116_v56  ;;  %3064 = vmatpush1.bf16.msra.mxu1 %v6119_v57  ;;  %v6176_v56 = vld [vmem:[%s7686_s3 + $0x20] ss:$8 sps:$4 sm:$0xff]  }
 0x13d   : > { %2613 = vmatprep.subr.bf16.mxu0 %v6124_v61  ;;  %3065 = vmatprep.subr.bf16.mxu1 %v6127_v62  ;;  %v6775_v57 = vld [vmem:[%s7686_s3 + $0x120] ss:$8 sps:$4 sm:$0xff]   ;;  %v6182_v62 = vld [vmem:[%s7686_s3 + $0x30] ss:$8 sps:$4 sm:$0xff]  }
 0x13e   : > { %2564 = vmatprep.mubr.bf16.mxu0 %v4829_v0  ;;  %3016 = vmatprep.mubr.bf16.mxu1 %v4829_v0  ;;  %v345_v61 = vld [vmem:[%s6659_s23 + $0xf8] sm:$0xff] }
 0x13f   : > { %v6190_v0 = vld [vmem:[%s7686_s3 + $0x44] ss:$8 sps:$4 sm:$0xff]  }
 0x140   : > { %2614 = vmatpush1.bf16.msra.mxu0 %v6122_v63  ;;  %3066 = vmatpush1.bf16.msra.mxu1 %v6125_v1  ;;  %v6795_v63 = vld [vmem:[%s7686_s3 + $0x130] ss:$8 sps:$4 sm:$0xff]   ;;  %v6804_v1 = vld [vmem:[%s7686_s3 + $0x144] ss:$8 sps:$4 sm:$0xff]  }
 0x141   : > { %2615 = vmatprep.subr.bf16.mxu0 %v6130_v2  ;;  %3067 = vmatprep.subr.bf16.mxu1 %v6133_v3  ;;  %v4806_v2 = vcombine.low %v333_v48, %v337_v49  ;;  %v4815_v3 = vcombine.high %v341_v60, %v345_v61  ;;  %v377_v48 = vld [vmem:[%s6659_s23 + $0x1f8] sm:$0xff]  ;;  %v6230_v49 = vld [vmem:[%s7686_s3 + $0xb0] ss:$8 sps:$4 sm:$0xff]  }
 0x143   : > { %2565 = vmatmul.mubr.bf16.gmra.mrb[20].mxu0 %v4828_v5  ;;  %3017 = vmatmul.mubr.bf16.gmra.mrb[20].mxu1 %v4828_v5  ;;  %v6813_v5 = vld [vmem:[%s7686_s3 + $0x140] ss:$8 sps:$4 sm:$0xff]  }
 0x144   : > { %2616 = vmatpush1.bf16.msra.mxu0 %v6128_v7  ;;  %3068 = vmatpush1.bf16.msra.mxu1 %v6131_v8  ;;  %v6822_v7 = vld [vmem:[%s7686_s3 + $0x154] ss:$8 sps:$4 sm:$0xff]  }
 0x145   : > { %2617 = vmatprep.subr.bf16.mxu0 %v6136_v9  ;;  %3069 = vmatprep.subr.bf16.mxu1 %v6139_v10  ;;  %v349_v8 = vld [vmem:[%s6659_s23 + $0x118] sm:$0xff]  ;;  %v6194_v10 = vld [vmem:[%s7686_s3 + $0x50] ss:$8 sps:$4 sm:$0xff]  }
 0x146   : > { %2574 = vmatprep.mubr.bf16.mxu0 %v4837_v11  ;;  %3026 = vmatprep.mubr.bf16.mxu1 %v4837_v11  ;;  %v353_v9 = vld [vmem:[%s6659_s23 + $0x138] sm:$0xff]  ;;  %v6833_v11 = vld [vmem:[%s7686_s3 + $0x150] ss:$8 sps:$4 sm:$0xff]  }
 0x148   : > { %2618 = vmatpush1.bf16.msra.mxu0 %v6134_v12  ;;  %3070 = vmatpush1.bf16.msra.mxu1 %v6137_v13  ;;  %v6202_v12 = vld [vmem:[%s7686_s3 + $0x64] ss:$8 sps:$4 sm:$0xff]  }
 0x149   : > { %2619 = vmatprep.subr.bf16.mxu0 %v6142_v14  ;;  %3071 = vmatprep.subr.bf16.mxu1 %v6145_v15  ;;  %v6842_v13 = vld [vmem:[%s7686_s3 + $0x164] ss:$8 sps:$4 sm:$0xff]   ;;  %v4814_v14 = vcombine.low %v341_v60, %v345_v61  ;;  %v4823_v15 = vcombine.high %v349_v8, %v353_v9  ;;  %v6965_v60 = vld [vmem:[%s7686_s3 + $0x1c0] ss:$8 sps:$4 sm:$0xff]   ;;  %v6244_v61 = vld [vmem:[%s7686_s3 + $0xd4] ss:$8 sps:$4 sm:$0xff]  }
 0x14b   : > { %2575 = vmatmul.mubr.bf16.gmra.mrb[24].mxu0 %v4836_v16  ;;  %3027 = vmatmul.mubr.bf16.gmra.mrb[24].mxu1 %v4836_v16  ;;  %v6200_v16 = vld [vmem:[%s7686_s3 + $0x60] ss:$8 sps:$4 sm:$0xff]  }
 0x14c   : > { %2620 = vmatpush1.bf16.msra.mxu0 %v6140_v19  ;;  %3072 = vmatpush1.bf16.msra.mxu1 %v6143_v20  ;;  %v6860_v19 = vld [vmem:[%s7686_s3 + $0x174] ss:$8 sps:$4 sm:$0xff]  }
 0x14d   : > { %2621 = vmatprep.subr.bf16.mxu0 %v6148_v21  ;;  %3073 = vmatprep.subr.bf16.mxu1 %v6151_v22  ;;  %v357_v20 = vld [vmem:[%s6659_s23 + $0x158] sm:$0xff]  ;;  %v6206_v22 = vld [vmem:[%s7686_s3 + $0x70] ss:$8 sps:$4 sm:$0xff]  }
 0x14e   : > { %2584 = vmatprep.mubr.bf16.mxu0 %v4845_v23  ;;  %3036 = vmatprep.mubr.bf16.mxu1 %v4845_v23  ;;  %v361_v21 = vld [vmem:[%s6659_s23 + $0x178] sm:$0xff]  ;;  %v6871_v23 = vld [vmem:[%s7686_s3 + $0x170] ss:$8 sps:$4 sm:$0xff]  }
 0x14f   : > { %v4830_v38 = vcombine.low %v357_v20, %v361_v21 }
 0x150   : > { %2622 = vmatpush1.bf16.msra.mxu0 %v6146_v24  ;;  %3074 = vmatpush1.bf16.msra.mxu1 %v6149_v25  ;;  %v6214_v24 = vld [vmem:[%s7686_s3 + $0x84] ss:$8 sps:$4 sm:$0xff]  }
 0x151   : > { %2623 = vmatprep.subr.bf16.mxu0 %v6154_v26  ;;  %3075 = vmatprep.subr.bf16.mxu1 %v6157_v27  ;;  %v6880_v25 = vld [vmem:[%s7686_s3 + $0x184] ss:$8 sps:$4 sm:$0xff]   ;;  %v4822_v26 = vcombine.low %v349_v8, %v353_v9  ;;  %v4831_v27 = vcombine.high %v357_v20, %v361_v21  ;;  %v7001_v9 = vld [vmem:[%s7686_s3 + $0x1e0] ss:$8 sps:$4 sm:$0xff]  }
 0x152   : > { %v6996_v8 = vld [vmem:[%s7686_s3 + $0x1e4] ss:$8 sps:$4 sm:$0xff]  }
 0x153   : > { %2585 = vmatmul.mubr.bf16.gmra.mrb[28].mxu0 %v4844_v28  ;;  %3037 = vmatmul.mubr.bf16.gmra.mrb[28].mxu1 %v4844_v28  ;;  %v6212_v28 = vld [vmem:[%s7686_s3 + $0x80] ss:$8 sps:$4 sm:$0xff]  }
 0x154   : > { %2624 = vmatpush1.bf16.msra.mxu0 %v6152_v31  ;;  %3076 = vmatpush1.bf16.msra.mxu1 %v6155_v32  ;;  %v6898_v31 = vld [vmem:[%s7686_s3 + $0x194] ss:$8 sps:$4 sm:$0xff]  }
 0x155   : > { %2625 = vmatprep.subr.bf16.mxu0 %v6160_v33  ;;  %3077 = vmatprep.subr.bf16.mxu1 %v6163_v34  ;;  %v365_v32 = vld [vmem:[%s6659_s23 + $0x198] sm:$0xff]  ;;  %v6218_v34 = vld [vmem:[%s7686_s3 + $0x90] ss:$8 sps:$4 sm:$0xff]  }
 0x156   : > { %2627 = vmatprep.mubr.bf16.mxu0 %v4791_v35  ;;  %3079 = vmatprep.mubr.bf16.mxu1 %v4791_v35  ;;  %v369_v33 = vld [vmem:[%s6659_s23 + $0x1b8] sm:$0xff]  ;;  %v6909_v35 = vld [vmem:[%s7686_s3 + $0x190] ss:$8 sps:$4 sm:$0xff]  }
 0x157   : > { %v4839_v39 = vcombine.high %v365_v32, %v369_v33 }
 0x158   : > { %2626 = vmatpush1.bf16.msra.mxu0 %v6158_v36  ;;  %3078 = vmatpush1.bf16.msra.mxu1 %v6161_v37  ;;  %v6226_v36 = vld [vmem:[%s7686_s3 + $0xa4] ss:$8 sps:$4 sm:$0xff]  }
 0x159   : > { %3640 = vmatprep.subr.bf16.mxu0 %v6166_v40  ;;  %5391 = vmatprep.subr.bf16.mxu1 %v6729_v41  ;;  %v6918_v37 = vld [vmem:[%s7686_s3 + $0x1a4] ss:$8 sps:$4 sm:$0xff]   ;;  %v6224_v40 = vld [vmem:[%s7686_s3 + $0xa0] ss:$8 sps:$4 sm:$0xff]  }
 0x15b   : > { %2628 = vmatmul.mubr.bf16.vlgmr.msra.gmra.mrb[0].mxu0 %v4790_v42  ;;  %3080 = vmatmul.mubr.bf16.vlgmr.msra.gmra.mrb[0].mxu1 %v4790_v42  ;;  %v6927_v42 = vld [vmem:[%s7686_s3 + $0x1a0] ss:$8 sps:$4 sm:$0xff]  }
 0x15c   : > { %2637 = vmatprep.mubr.bf16.mxu0 %v4799_v43  ;;  %3089 = vmatprep.mubr.bf16.mxu1 %v4799_v43  ;;  %v6232_v43 = vld [vmem:[%s7686_s3 + $0xb4] ss:$8 sps:$4 sm:$0xff]  }
 0x15d   : > { %3641 = vmatpush1.bf16.msra.mxu0 %v6164_v44  ;;  %5407 = vmatpush1.bf16.msra.mxu1 %v6737_v45  ;;  %v6936_v44 = vld [vmem:[%s7686_s3 + $0x1b4] ss:$8 sps:$4 sm:$0xff]  }
 0x15e   : > { %3642 = vmatprep.subr.bf16.mxu0 %v6172_v46  ;;  %5392 = vmatprep.subr.bf16.mxu1 %v6746_v47  ;;  %v373_v46 = vld [vmem:[%s6659_s23 + $0x1d8] sm:$0xff] }
 0x161   : > { %3643 = vmatpush1.bf16.msra.mxu0 %v6170_v50  ;;  %5408 = vmatpush1.bf16.msra.mxu1 %v6757_v51  ;;  %v6947_v50 = vld [vmem:[%s7686_s3 + $0x1b0] ss:$8 sps:$4 sm:$0xff]  }
 0x162   : > { %3644 = vmatprep.subr.bf16.mxu0 %v6178_v52  ;;  %5393 = vmatprep.subr.bf16.mxu1 %v6766_v53  ;;  %v6238_v52 = vld [vmem:[%s7686_s3 + $0xc4] ss:$8 sps:$4 sm:$0xff]  }
 0x163   : > { %2638 = vmatmul.mubr.bf16.gmra.mrb[4].mxu0 %v4798_v54  ;;  %3090 = vmatmul.mubr.bf16.gmra.mrb[4].mxu1 %v4798_v54  ;;  %v6956_v54 = vld [vmem:[%s7686_s3 + $0x1c4] ss:$8 sps:$4 sm:$0xff]  }
 0x164   : > { %2647 = vmatprep.mubr.bf16.mxu0 %v4807_v55  ;;  %3099 = vmatprep.mubr.bf16.mxu1 %v4807_v55  ;;  %v4838_v55 = vcombine.low %v365_v32, %v369_v33 }
 0x165   : > { %3645 = vmatpush1.bf16.msra.mxu0 %v6176_v56  ;;  %5409 = vmatpush1.bf16.msra.mxu1 %v6775_v57  ;;  %v4847_v56 = vcombine.high %v373_v46, %v377_v48 }
 0x166   : > { %3646 = vmatprep.subr.bf16.mxu0 %v6184_v58  ;;  %5394 = vmatprep.subr.bf16.mxu1 %v6784_v59  ;;  %v6236_v58 = vld [vmem:[%s7686_s3 + $0xc0] ss:$8 sps:$4 sm:$0xff]  }
 0x169   : > { %3647 = vmatpush1.bf16.msra.mxu0 %v6182_v62  ;;  %5410 = vmatpush1.bf16.msra.mxu1 %v6795_v63  ;;  %v6242_v62 = vld [vmem:[%s7686_s3 + $0xd0] ss:$8 sps:$4 sm:$0xff]  }
 0x16a   : > { %3648 = vmatprep.subr.bf16.mxu0 %v6190_v0  ;;  %5395 = vmatprep.subr.bf16.mxu1 %v6804_v1  ;;  %v4846_v0 = vcombine.low %v373_v46, %v377_v48 }
 0x16b   : > { %2648 = vmatmul.mubr.bf16.gmra.mrb[8].mxu0 %v4806_v2  ;;  %3100 = vmatmul.mubr.bf16.gmra.mrb[8].mxu1 %v4806_v2  ;;  %v6978_v2 = vld [vmem:[%s7686_s3 + $0x1d4] ss:$8 sps:$4 sm:$0xff]  }
 0x16c   : > { %2657 = vmatprep.mubr.bf16.mxu0 %v4815_v3  ;;  %3109 = vmatprep.mubr.bf16.mxu1 %v4815_v3  ;;  %v6983_v3 = vld [vmem:[%s7686_s3 + $0x1d0] ss:$8 sps:$4 sm:$0xff]  }
 0x16d   : > { %3649 = vmatpush1.bf16.msra.mxu0 %v6188_v4  ;;  %5411 = vmatpush1.bf16.msra.mxu1 %v6813_v5  ;;  %v6250_v4 = vld [vmem:[%s7686_s3 + $0xe4] ss:$8 sps:$4 sm:$0xff]  }
 0x16e   : > { %3650 = vmatprep.subr.bf16.mxu0 %v6196_v6  ;;  %5396 = vmatprep.subr.bf16.mxu1 %v6822_v7  ;;  %v6248_v6 = vld [vmem:[%s7686_s3 + $0xe0] ss:$8 sps:$4 sm:$0xff]  }
 0x171   : > { %3651 = vmatpush1.bf16.msra.mxu0 %v6194_v10  ;;  %5412 = vmatpush1.bf16.msra.mxu1 %v6833_v11  ;;  %v6256_v10 = vld [vmem:[%s7686_s3 + $0xf4] ss:$8 sps:$4 sm:$0xff]  }
 0x172   : > { %3652 = vmatprep.subr.bf16.mxu0 %v6202_v12  ;;  %5397 = vmatprep.subr.bf16.mxu1 %v6842_v13  ;;  %v6254_v12 = vld [vmem:[%s7686_s3 + $0xf0] ss:$8 sps:$4 sm:$0xff]  }
 0x173   : > { %2658 = vmatmul.mubr.bf16.gmra.mrb[12].mxu0 %v4814_v14  ;;  %3110 = vmatmul.mubr.bf16.gmra.mrb[12].mxu1 %v4814_v14  ;;  %v7014_v14 = vld [vmem:[%s7686_s3 + $0x1f4] ss:$8 sps:$4 sm:$0xff]  }
 0x174   : > { %2667 = vmatprep.mubr.bf16.mxu0 %v4823_v15  ;;  %3119 = vmatprep.mubr.bf16.mxu1 %v4823_v15  ;;  %v7019_v15 = vld [vmem:[%s7686_s3 + $0x1f0] ss:$8 sps:$4 sm:$0xff]  }
 0x175   : > { %3653 = vmatpush1.bf16.msra.mxu0 %v6200_v16  ;;  %5413 = vmatpush1.bf16.msra.mxu1 %v6851_v17  ;;  %v636_v16 = vlaneseq }
 0x176   : > { %3654 = vmatprep.subr.bf16.mxu0 %v6208_v18  ;;  %5398 = vmatprep.subr.bf16.mxu1 %v6860_v19 }
 0x177   : > { %v7025_v18 = vshrl.u32 %v636_v16, 7 }
 0x179   : > { %3655 = vmatpush1.bf16.msra.mxu0 %v6206_v22  ;;  %5414 = vmatpush1.bf16.msra.mxu1 %v6871_v23  ;;  %v7028_v20 = vsub.s32 0, %v7025_v18  ;;  %v7694_v21 = vsub.s32 2, %v7025_v18  ;;  %v634_v22 = vld [vmem:[%s7685_s2] sm:$0xf] }
 0x17a   : > { %3656 = vmatprep.subr.bf16.mxu0 %v6214_v24  ;;  %5399 = vmatprep.subr.bf16.mxu1 %v6880_v25  ;;  %v642_v24 = vsub.s32 1, %v7025_v18 }
 0x17b   : > { %2668 = vmatmul.mubr.bf16.gmra.mrb[16].mxu0 %v4822_v26  ;;  %3120 = vmatmul.mubr.bf16.gmra.mrb[16].mxu1 %v4822_v26  ;;  %v650_v26 = vsub.s32 3, %v7025_v18 }
 0x17c   : > { %2677 = vmatprep.mubr.bf16.mxu0 %v4831_v27  ;;  %3129 = vmatprep.mubr.bf16.mxu1 %v4831_v27  ;;  %v7037_v27 = vrot.slane %v634_v22, %v7028_v20 }
 0x17d   : > { %3657 = vmatpush1.bf16.msra.mxu0 %v6212_v28  ;;  %5415 = vmatpush1.bf16.msra.mxu1 %v6889_v29  ;;  %v7045_v28 = vrot.slane %v634_v22, %v642_v24 }
 0x17e   : > { %3658 = vmatprep.subr.bf16.mxu0 %v6220_v30  ;;  %5400 = vmatprep.subr.bf16.mxu1 %v6898_v31  ;;  %v7049_v30 = vrot.slane %v634_v22, %v650_v26 }
 0x181   : > { %3659 = vmatpush1.bf16.msra.mxu0 %v6218_v34  ;;  %5416 = vmatpush1.bf16.msra.mxu1 %v6909_v35 }
 0x182   : > { %3660 = vmatprep.subr.bf16.mxu0 %v6226_v36  ;;  %5401 = vmatprep.subr.bf16.mxu1 %v6918_v37 }
 0x183   : > { %2678 = vmatmul.mubr.bf16.gmra.mrb[20].mxu0 %v4830_v38  ;;  %3130 = vmatmul.mubr.bf16.gmra.mrb[20].mxu1 %v4830_v38 }
 0x184   : > { %2687 = vmatprep.mubr.bf16.mxu0 %v4839_v39  ;;  %3139 = vmatprep.mubr.bf16.mxu1 %v4839_v39 }
 0x185   : > { %3661 = vmatpush1.bf16.msra.mxu0 %v6224_v40  ;;  %5417 = vmatpush1.bf16.msra.mxu1 %v6927_v42 }
 0x186   : > { %3662 = vmatprep.subr.bf16.mxu0 %v6232_v43  ;;  %5402 = vmatprep.subr.bf16.mxu1 %v6936_v44 }
 0x189   : > { %3663 = vmatpush1.bf16.msra.mxu0 %v6230_v49  ;;  %5418 = vmatpush1.bf16.msra.mxu1 %v6947_v50 }
 0x18a   : > { %3664 = vmatprep.subr.bf16.mxu0 %v6238_v52  ;;  %5403 = vmatprep.subr.bf16.mxu1 %v6956_v54 }
 0x18b   : > { %2688 = vmatmul.mubr.bf16.gmra.mrb[24].mxu0 %v4838_v55  ;;  %3140 = vmatmul.mubr.bf16.gmra.mrb[24].mxu1 %v4838_v55 }
 0x18c   : > { %2697 = vmatprep.mubr.bf16.mxu0 %v4847_v56  ;;  %3149 = vmatprep.mubr.bf16.mxu1 %v4847_v56 }
 0x18d   : > { %3665 = vmatpush1.bf16.msra.mxu0 %v6236_v58  ;;  %5419 = vmatpush1.bf16.msra.mxu1 %v6965_v60 }
 0x18e   : > { %3666 = vmatprep.subr.bf16.mxu0 %v6244_v61  ;;  %5404 = vmatprep.subr.bf16.mxu1 %v6978_v2 }
 0x191   : > { %3667 = vmatpush1.bf16.msra.mxu0 %v6242_v62  ;;  %5420 = vmatpush1.bf16.msra.mxu1 %v6983_v3 }
 0x192   : > { %3668 = vmatprep.subr.bf16.mxu0 %v6250_v4  ;;  %5405 = vmatprep.subr.bf16.mxu1 %v6996_v8 }
 0x193   : > { %2698 = vmatmul.mubr.bf16.gmra.mrb[28].mxu0 %v4846_v0  ;;  %3150 = vmatmul.mubr.bf16.gmra.mrb[28].mxu1 %v4846_v0 }
 0x195   : > { %3669 = vmatpush1.bf16.msra.mxu0 %v6248_v6  ;;  %5421 = vmatpush1.bf16.msra.mxu1 %v7001_v9 }
 0x196   : > { %3670 = vmatprep.subr.bf16.mxu0 %v6256_v10  ;;  %5406 = vmatprep.subr.bf16.mxu1 %v7014_v14 }
 0x199   : > { %3671 = vmatpush1.bf16.msra.mxu0 %v6254_v12  ;;  %5422 = vmatpush1.bf16.msra.mxu1 %v7019_v15 }
 0x19a   : > { %3753 = vmatprep.subr.bf16.mxu0 %v6729_v41  ;;  %v7041_v41 = vrot.slane %v634_v22, %v7694_v21 }
 0x22e   : > { %v2629_v32 = vpop.f32.mrb[0].mxu0  ;;  %v3081_v33 = vpop.f32.mrb[0].mxu1 }
 0x22f   : > { %v5423_v34 = vadd.f32 %v2629_v32, %v7037_v27  ;;  %v5455_v36 = vadd.f32 %v3081_v33, %v7041_v41  ;;  %v2631_v38 = vpop.f32.mrb[1].mxu0  ;;  %v3083_v39 = vpop.f32.mrb[1].mxu1 }
 0x230   : > { %v5424_v40 = vadd.f32 %v2631_v38, %v7045_v28  ;;  %v5456_v43 = vadd.f32 %v3083_v39, %v7049_v30  ;;  %v2633_v46 = vpop.f32.mrb[2].mxu0  ;;  %v3085_v48 = vpop.f32.mrb[2].mxu1 }
 0x231   : > { %v5425_v49 = vadd.f32 %v2633_v46, %v7037_v27  ;;  %v5457_v52 = vadd.f32 %v3085_v48, %v7041_v41  ;;  %v2635_v55 = vpop.f32.mrb[3].mxu0  ;;  %v3087_v56 = vpop.f32.mrb[3].mxu1  ;;  %v3160_v62 = vmax.f32 %v5423_v34, 0.0  ;;  %v3162_v0 = vmax.f32 %v5455_v36, 0.0 }
 0x232   : > { %v5426_v58 = vadd.f32 %v2635_v55, %v7045_v28  ;;  %v5458_v61 = vadd.f32 %v3087_v56, %v7049_v30  ;;  %v3161_v10 = vmax.f32 %v5424_v40, 0.0  ;;  %v3163_v12 = vmax.f32 %v5456_v43, 0.0 }
 0x233   : > { %v3164_v4 = vmax.f32 %v5425_v49, 0.0  ;;  %v3166_v6 = vmax.f32 %v5457_v52, 0.0 }
 0x234   : > { %v3165_v22 = vmax.f32 %v5426_v58, 0.0  ;;  %v3167_v32 = vmax.f32 %v5458_v61, 0.0 }
 0x235   : > { %v7059_v33 = vpack.c.bf16 %v3164_v4, %v3160_v62  ;;  %v7061_v38 = vpack.c.bf16 %v3166_v6, %v3162_v0 }
 0x236   : > { %v3225_v39 = vpack.c.bf16 %v3165_v22, %v3161_v10  ;;  %v7063_v46 = vpack.c.bf16 %v3167_v32, %v3163_v12  ;;  %v2639_v48 = vpop.f32.mrb[4].mxu0  ;;  %v3091_v21 = vpop.f32.mrb[4].mxu1 }
 0x237   : > { %v5427_v55 = vadd.f32 %v2639_v48, %v7037_v27  ;;  %v5459_v34 = vadd.f32 %v3091_v21, %v7041_v41  ;;  %v2641_v36 = vpop.f32.mrb[5].mxu0  ;;  %v3093_v49 = vpop.f32.mrb[5].mxu1 }
 0x238   : > { %v5428_v40 = vadd.f32 %v2641_v36, %v7045_v28  ;;  %v5460_v43 = vadd.f32 %v3093_v49, %v7049_v30  ;;  %v2643_v52 = vpop.f32.mrb[6].mxu0  ;;  %v3095_v56 = vpop.f32.mrb[6].mxu1  ;;  %3672 = vmatprep.mubr.bf16.mxu0 %v3225_v39  ;;  %5264 = vmatprep.subr.bf16.mxu1 %v3225_v39 }
 0x239   : > { %v5429_v58 = vadd.f32 %v2643_v52, %v7037_v27  ;;  %v5461_v61 = vadd.f32 %v3095_v56, %v7041_v41  ;;  %v2645_v62 = vpop.f32.mrb[7].mxu0  ;;  %v3097_v0 = vpop.f32.mrb[7].mxu1  ;;  %3673 = vmatmul.mubr.bf16.vlgmr.msra.gmra.mrb[32].mxu0 %v7059_v33  ;;  %v3168_v6 = vmax.f32 %v5427_v55, 0.0  ;;  %v3170_v10 = vmax.f32 %v5459_v34, 0.0 }
 0x23a   : > { %v5430_v21 = vadd.f32 %v2645_v62, %v7045_v28  ;;  %v5462_v4 = vadd.f32 %v3097_v0, %v7049_v30  ;;  %3754 = vmatpush1.bf16.msra.mxu0 %v6737_v45  ;;  %v3169_v32 = vmax.f32 %v5428_v40, 0.0  ;;  %v3171_v39 = vmax.f32 %v5460_v43, 0.0 }
 0x23b   : > { %v3172_v12 = vmax.f32 %v5429_v58, 0.0  ;;  %v3174_v22 = vmax.f32 %v5461_v61, 0.0  ;;  %3755 = vmatprep.subr.bf16.mxu0 %v6746_v47 }
 0x23c   : > { %v3173_v48 = vmax.f32 %v5430_v21, 0.0  ;;  %v3175_v36 = vmax.f32 %v5462_v4, 0.0 }
 0x23d   : > { %v7076_v49 = vpack.c.bf16 %v3172_v12, %v3168_v6  ;;  %v7078_v52 = vpack.c.bf16 %v3174_v22, %v3170_v10 }
 0x23e   : > { %v7080_v56 = vpack.c.bf16 %v3173_v48, %v3169_v32  ;;  %v7082_v62 = vpack.c.bf16 %v3175_v36, %v3171_v39  ;;  %v2649_v0 = vpop.f32.mrb[8].mxu0  ;;  %v3101_v45 = vpop.f32.mrb[8].mxu1  ;;  %3756 = vmatpush1.bf16.msra.mxu0 %v6757_v51 }
 0x23f   : > { %v5431_v55 = vadd.f32 %v2649_v0, %v7037_v27  ;;  %v5463_v47 = vadd.f32 %v3101_v45, %v7041_v41  ;;  %v2651_v34 = vpop.f32.mrb[9].mxu0  ;;  %v3103_v40 = vpop.f32.mrb[9].mxu1  ;;  %3757 = vmatprep.subr.bf16.mxu0 %v6766_v53 }
 0x240   : > { %v5432_v43 = vadd.f32 %v2651_v34, %v7045_v28  ;;  %v5464_v58 = vadd.f32 %v3103_v40, %v7049_v30  ;;  %v2653_v61 = vpop.f32.mrb[10].mxu0  ;;  %v3105_v21 = vpop.f32.mrb[10].mxu1  ;;  %3682 = vmatprep.mubr.bf16.mxu0 %v7080_v56 }
 0x241   : > { %v5433_v4 = vadd.f32 %v2653_v61, %v7037_v27  ;;  %v5465_v51 = vadd.f32 %v3105_v21, %v7041_v41  ;;  %v2655_v6 = vpop.f32.mrb[11].mxu0  ;;  %v3107_v10 = vpop.f32.mrb[11].mxu1  ;;  %3683 = vmatmul.mubr.bf16.gmra.mrb[36].mxu0 %v7076_v49  ;;  %v3176_v22 = vmax.f32 %v5431_v55, 0.0  ;;  %v3178_v32 = vmax.f32 %v5463_v47, 0.0 }
 0x242   : > { %v5434_v12 = vadd.f32 %v2655_v6, %v7045_v28  ;;  %v5466_v53 = vadd.f32 %v3107_v10, %v7049_v30  ;;  %3758 = vmatpush1.bf16.msra.mxu0 %v6775_v57  ;;  %v3177_v36 = vmax.f32 %v5432_v43, 0.0  ;;  %v3179_v0 = vmax.f32 %v5464_v58, 0.0 }
 0x243   : > { %v3180_v39 = vmax.f32 %v5433_v4, 0.0  ;;  %v3182_v48 = vmax.f32 %v5465_v51, 0.0  ;;  %3759 = vmatprep.subr.bf16.mxu0 %v6784_v59 }
 0x244   : > { %v3181_v45 = vmax.f32 %v5434_v12, 0.0  ;;  %v3183_v34 = vmax.f32 %v5466_v53, 0.0 }
 0x245   : > { %v7098_v40 = vpack.c.bf16 %v3180_v39, %v3176_v22  ;;  %v7100_v61 = vpack.c.bf16 %v3182_v48, %v3178_v32 }
 0x246   : > { %v7102_v21 = vpack.c.bf16 %v3181_v45, %v3177_v36  ;;  %v7104_v6 = vpack.c.bf16 %v3183_v34, %v3179_v0  ;;  %v2659_v10 = vpop.f32.mrb[12].mxu0  ;;  %v3111_v57 = vpop.f32.mrb[12].mxu1  ;;  %3760 = vmatpush1.bf16.msra.mxu0 %v6795_v63 }
 0x247   : > { %v5435_v55 = vadd.f32 %v2659_v10, %v7037_v27  ;;  %v5467_v59 = vadd.f32 %v3111_v57, %v7041_v41  ;;  %v2661_v47 = vpop.f32.mrb[13].mxu0  ;;  %v3113_v43 = vpop.f32.mrb[13].mxu1  ;;  %3761 = vmatprep.subr.bf16.mxu0 %v6804_v1 }
 0x248   : > { %v5436_v58 = vadd.f32 %v2661_v47, %v7045_v28  ;;  %v5468_v4 = vadd.f32 %v3113_v43, %v7049_v30  ;;  %v2663_v51 = vpop.f32.mrb[14].mxu0  ;;  %v3115_v12 = vpop.f32.mrb[14].mxu1  ;;  %3692 = vmatprep.mubr.bf16.mxu0 %v7102_v21 }
 0x249   : > { %v5437_v53 = vadd.f32 %v2663_v51, %v7037_v27  ;;  %v5469_v63 = vadd.f32 %v3115_v12, %v7041_v41  ;;  %v2665_v22 = vpop.f32.mrb[15].mxu0  ;;  %v3117_v32 = vpop.f32.mrb[15].mxu1  ;;  %3693 = vmatmul.mubr.bf16.gmra.mrb[40].mxu0 %v7098_v40  ;;  %v3184_v48 = vmax.f32 %v5435_v55, 0.0  ;;  %v3186_v36 = vmax.f32 %v5467_v59, 0.0 }
 0x24a   : > { %v5438_v39 = vadd.f32 %v2665_v22, %v7045_v28  ;;  %v5470_v1 = vadd.f32 %v3117_v32, %v7049_v30  ;;  %3762 = vmatpush1.bf16.msra.mxu0 %v6813_v5  ;;  %v3185_v34 = vmax.f32 %v5436_v58, 0.0  ;;  %v3187_v10 = vmax.f32 %v5468_v4, 0.0 }
 0x24b   : > { %v3188_v0 = vmax.f32 %v5437_v53, 0.0  ;;  %v3190_v45 = vmax.f32 %v5469_v63, 0.0  ;;  %3763 = vmatprep.subr.bf16.mxu0 %v6822_v7 }
 0x24c   : > { %v3189_v57 = vmax.f32 %v5438_v39, 0.0  ;;  %v3191_v47 = vmax.f32 %v5470_v1, 0.0 }
 0x24d   : > { %v7120_v43 = vpack.c.bf16 %v3188_v0, %v3184_v48  ;;  %v7122_v51 = vpack.c.bf16 %v3190_v45, %v3186_v36 }
 0x24e   : > { %v7124_v12 = vpack.c.bf16 %v3189_v57, %v3185_v34  ;;  %v7126_v22 = vpack.c.bf16 %v3191_v47, %v3187_v10  ;;  %v2669_v32 = vpop.f32.mrb[16].mxu0  ;;  %v3121_v5 = vpop.f32.mrb[16].mxu1  ;;  %3764 = vmatpush1.bf16.msra.mxu0 %v6833_v11 }
 0x24f   : > { %v5439_v55 = vadd.f32 %v2669_v32, %v7037_v27  ;;  %v5471_v7 = vadd.f32 %v3121_v5, %v7041_v41  ;;  %v2671_v59 = vpop.f32.mrb[17].mxu0  ;;  %v3123_v58 = vpop.f32.mrb[17].mxu1  ;;  %3765 = vmatprep.subr.bf16.mxu0 %v6842_v13 }
 0x250   : > { %v5440_v4 = vadd.f32 %v2671_v59, %v7045_v28  ;;  %v5472_v53 = vadd.f32 %v3123_v58, %v7049_v30  ;;  %v2673_v63 = vpop.f32.mrb[18].mxu0  ;;  %v3125_v39 = vpop.f32.mrb[18].mxu1  ;;  %3702 = vmatprep.mubr.bf16.mxu0 %v7124_v12  ;;  %3815 = vmatprep.mubr.bf16.mxu1 %v7126_v22 }
 0x251   : > { %v5441_v11 = vadd.f32 %v2673_v63, %v7037_v27  ;;  %v5473_v1 = vadd.f32 %v3125_v39, %v7041_v41  ;;  %v2675_v48 = vpop.f32.mrb[19].mxu0  ;;  %v3127_v36 = vpop.f32.mrb[19].mxu1  ;;  %3703 = vmatmul.mubr.bf16.gmra.mrb[44].mxu0 %v7120_v43  ;;  %3816 = vmatmul.mubr.bf16.vlgmr.msra.gmra.mrb[32].mxu1 %v7122_v51  ;;  %v3192_v45 = vmax.f32 %v5439_v55, 0.0  ;;  %v3194_v34 = vmax.f32 %v5471_v7, 0.0 }
 0x252   : > { %v5442_v13 = vadd.f32 %v2675_v48, %v7045_v28  ;;  %v5474_v0 = vadd.f32 %v3127_v36, %v7049_v30  ;;  %5266 = vmatpush1.bf16.msra.mxu1 %v7059_v33  ;;  %3766 = vmatpush1.bf16.msra.mxu0 %v6851_v17  ;;  %v3193_v47 = vmax.f32 %v5440_v4, 0.0  ;;  %v3195_v32 = vmax.f32 %v5472_v53, 0.0 }
 0x253   : > { %v3196_v10 = vmax.f32 %v5441_v11, 0.0  ;;  %v3198_v57 = vmax.f32 %v5473_v1, 0.0  ;;  %5268 = vmatprep.subr.bf16.mxu1 %v7080_v56  ;;  %3767 = vmatprep.subr.bf16.mxu0 %v6860_v19 }
 0x254   : > { %v3197_v5 = vmax.f32 %v5442_v13, 0.0  ;;  %v3199_v59 = vmax.f32 %v5474_v0, 0.0 }
 0x255   : > { %v7146_v58 = vpack.c.bf16 %v3196_v10, %v3192_v45  ;;  %v7148_v63 = vpack.c.bf16 %v3198_v57, %v3194_v34 }
 0x256   : > { %v3241_v39 = vpack.c.bf16 %v3197_v5, %v3193_v47  ;;  %v7150_v33 = vpack.c.bf16 %v3199_v59, %v3195_v32  ;;  %5270 = vmatpush1.bf16.msra.mxu1 %v7076_v49  ;;  %v2679_v17 = vpop.f32.mrb[20].mxu0  ;;  %v3131_v55 = vpop.f32.mrb[20].mxu1  ;;  %3768 = vmatpush1.bf16.msra.mxu0 %v6871_v23 }
 0x257   : > { %v5443_v56 = vadd.f32 %v2679_v17, %v7037_v27  ;;  %v5475_v19 = vadd.f32 %v3131_v55, %v7041_v41  ;;  %5272 = vmatprep.subr.bf16.mxu1 %v7102_v21  ;;  %v2681_v7 = vpop.f32.mrb[21].mxu0  ;;  %v3133_v4 = vpop.f32.mrb[21].mxu1  ;;  %3769 = vmatprep.subr.bf16.mxu0 %v6880_v25 }
 0x258   : > { %v5444_v53 = vadd.f32 %v2681_v7, %v7045_v28  ;;  %v5476_v11 = vadd.f32 %v3133_v4, %v7049_v30  ;;  %v2683_v1 = vpop.f32.mrb[22].mxu0  ;;  %v3135_v49 = vpop.f32.mrb[22].mxu1  ;;  %3712 = vmatprep.mubr.bf16.mxu0 %v3241_v39  ;;  %3825 = vmatprep.mubr.bf16.mxu1 %v7150_v33 }
 0x259   : > { %v5445_v23 = vadd.f32 %v2683_v1, %v7037_v27  ;;  %v5477_v48 = vadd.f32 %v3135_v49, %v7041_v41  ;;  %v2685_v36 = vpop.f32.mrb[23].mxu0  ;;  %v3137_v13 = vpop.f32.mrb[23].mxu1  ;;  %3713 = vmatmul.mubr.bf16.gmra.mrb[48].mxu0 %v7146_v58  ;;  %3826 = vmatmul.mubr.bf16.gmra.mrb[36].mxu1 %v7148_v63  ;;  %v3200_v0 = vmax.f32 %v5443_v56, 0.0  ;;  %v3202_v45 = vmax.f32 %v5475_v19, 0.0 }
 0x25a   : > { %v5446_v25 = vadd.f32 %v2685_v36, %v7045_v28  ;;  %v5478_v21 = vadd.f32 %v3137_v13, %v7049_v30  ;;  %5274 = vmatpush1.bf16.msra.mxu1 %v7098_v40  ;;  %3770 = vmatpush1.bf16.msra.mxu0 %v6889_v29  ;;  %v3201_v57 = vmax.f32 %v5444_v53, 0.0  ;;  %v3203_v47 = vmax.f32 %v5476_v11, 0.0 }
 0x25b   : > { %v3204_v34 = vmax.f32 %v5445_v23, 0.0  ;;  %v3206_v10 = vmax.f32 %v5477_v48, 0.0  ;;  %5276 = vmatprep.subr.bf16.mxu1 %v7124_v12  ;;  %3771 = vmatprep.subr.bf16.mxu0 %v6898_v31 }
 0x25c   : > { %v3205_v32 = vmax.f32 %v5446_v25, 0.0  ;;  %v3207_v5 = vmax.f32 %v5478_v21, 0.0 }
 0x25d   : > { %v3244_v59 = vpack.c.bf16 %v3204_v34, %v3200_v0  ;;  %v7171_v17 = vpack.c.bf16 %v3206_v10, %v3202_v45 }
 0x25e   : > { %v3245_v55 = vpack.c.bf16 %v3205_v32, %v3201_v57  ;;  %v7173_v7 = vpack.c.bf16 %v3207_v5, %v3203_v47  ;;  %5278 = vmatpush1.bf16.msra.mxu1 %v7120_v43  ;;  %v2689_v29 = vpop.f32.mrb[24].mxu0  ;;  %v3141_v40 = vpop.f32.mrb[24].mxu1  ;;  %3772 = vmatpush1.bf16.msra.mxu0 %v6909_v35 }
 0x25f   : > { %v5447_v12 = vadd.f32 %v2689_v29, %v7037_v27  ;;  %v5479_v31 = vadd.f32 %v3141_v40, %v7041_v41  ;;  %5280 = vmatprep.subr.bf16.mxu1 %v3241_v39  ;;  %v2691_v56 = vpop.f32.mrb[25].mxu0  ;;  %v3143_v19 = vpop.f32.mrb[25].mxu1  ;;  %3773 = vmatprep.subr.bf16.mxu0 %v6918_v37 }
 0x260   : > { %v5448_v4 = vadd.f32 %v2691_v56, %v7045_v28  ;;  %v5480_v53 = vadd.f32 %v3143_v19, %v7049_v30  ;;  %v2693_v11 = vpop.f32.mrb[26].mxu0  ;;  %v3145_v1 = vpop.f32.mrb[26].mxu1  ;;  %3722 = vmatprep.mubr.bf16.mxu0 %v3245_v55  ;;  %3835 = vmatprep.mubr.bf16.mxu1 %v7173_v7 }
 0x261   : > { %v5449_v35 = vadd.f32 %v2693_v11, %v7037_v27  ;;  %v5481_v43 = vadd.f32 %v3145_v1, %v7041_v41  ;;  %v2695_v49 = vpop.f32.mrb[27].mxu0  ;;  %v3147_v23 = vpop.f32.mrb[27].mxu1  ;;  %3723 = vmatmul.mubr.bf16.gmra.mrb[52].mxu0 %v3244_v59  ;;  %3836 = vmatmul.mubr.bf16.gmra.mrb[40].mxu1 %v7171_v17  ;;  %v3208_v48 = vmax.f32 %v5447_v12, 0.0  ;;  %v3210_v36 = vmax.f32 %v5479_v31, 0.0 }
 0x262   : > { %v5450_v37 = vadd.f32 %v2695_v49, %v7045_v28  ;;  %v5482_v39 = vadd.f32 %v3147_v23, %v7049_v30  ;;  %5282 = vmatpush1.bf16.msra.mxu1 %v7146_v58  ;;  %3774 = vmatpush1.bf16.msra.mxu0 %v6927_v42  ;;  %v3209_v21 = vmax.f32 %v5448_v4, 0.0  ;;  %v3211_v0 = vmax.f32 %v5480_v53, 0.0 }
 0x263   : > { %v3212_v13 = vmax.f32 %v5449_v35, 0.0  ;;  %v3214_v25 = vmax.f32 %v5481_v43, 0.0  ;;  %5284 = vmatprep.subr.bf16.mxu1 %v3245_v55  ;;  %3775 = vmatprep.subr.bf16.mxu0 %v6936_v44 }
 0x264   : > { %v3213_v45 = vmax.f32 %v5450_v37, 0.0  ;;  %v3215_v34 = vmax.f32 %v5482_v39, 0.0 }
 0x265   : > { %v3248_v10 = vpack.c.bf16 %v3212_v13, %v3208_v48  ;;  %v7191_v57 = vpack.c.bf16 %v3214_v25, %v3210_v36 }
 0x266   : > { %v3249_v47 = vpack.c.bf16 %v3213_v45, %v3209_v21  ;;  %v7193_v32 = vpack.c.bf16 %v3215_v34, %v3211_v0  ;;  %5286 = vmatpush1.bf16.msra.mxu1 %v3244_v59  ;;  %v2699_v58 = vpop.f32.mrb[28].mxu0  ;;  %v3151_v42 = vpop.f32.mrb[28].mxu1  ;;  %3776 = vmatpush1.bf16.msra.mxu0 %v6947_v50 }
 0x267   : > { %v5451_v5 = vadd.f32 %v2699_v58, %v7037_v27  ;;  %v5483_v55 = vadd.f32 %v3151_v42, %v7041_v41  ;;  %v2701_v44 = vpop.f32.mrb[29].mxu0  ;;  %v3153_v29 = vpop.f32.mrb[29].mxu1  ;;  %3777 = vmatprep.subr.bf16.mxu0 %v6956_v54 }
 0x268   : > { %v5452_v40 = vadd.f32 %v2701_v44, %v7045_v28  ;;  %v5484_v12 = vadd.f32 %v3153_v29, %v7049_v30  ;;  %v2703_v31 = vpop.f32.mrb[30].mxu0  ;;  %v3155_v56 = vpop.f32.mrb[30].mxu1  ;;  %3732 = vmatprep.mubr.bf16.mxu0 %v3249_v47  ;;  %3845 = vmatprep.mubr.bf16.mxu1 %v7193_v32 }
 0x269   : > { %v5453_v59 = vadd.f32 %v2703_v31, %v7037_v27  ;;  %v5485_v50 = vadd.f32 %v3155_v56, %v7041_v41  ;;  %5288 = vmatprep.subr.bf16.mxu1 %v3249_v47  ;;  %v2705_v19 = vpop.f32.mrb[31].mxu0  ;;  %v3157_v4 = vpop.f32.mrb[31].mxu1  ;;  %3733 = vmatmul.mubr.bf16.gmra.mrb[56].mxu0 %v3248_v10  ;;  %v3216_v11 = vmax.f32 %v5451_v5, 0.0  ;;  %v3218_v1 = vmax.f32 %v5483_v55, 0.0 }
 0x26a   : > { %v5454_v53 = vadd.f32 %v2705_v19, %v7045_v28  ;;  %v5486_v54 = vadd.f32 %v3157_v4, %v7049_v30  ;;  %3846 = vmatmul.mubr.bf16.gmra.mrb[44].mxu1 %v7191_v57  ;;  %3778 = vmatpush1.bf16.msra.mxu0 %v6965_v60  ;;  %v3217_v27 = vmax.f32 %v5452_v40, 0.0  ;;  %v3219_v41 = vmax.f32 %v5484_v12, 0.0 }
 0x26b   : > { %v3220_v35 = vmax.f32 %v5453_v59, 0.0  ;;  %v3222_v43 = vmax.f32 %v5485_v50, 0.0  ;;  %5290 = vmatpush1.bf16.msra.mxu1 %v3248_v10  ;;  %3779 = vmatprep.subr.bf16.mxu0 %v6978_v2 }
 0x26c   : > { %v3221_v49 = vmax.f32 %v5454_v53, 0.0  ;;  %v3223_v23 = vmax.f32 %v5486_v54, 0.0 }
 0x26d   : > { %v3252_v37 = vpack.c.bf16 %v3220_v35, %v3216_v11  ;;  %v7209_v39 = vpack.c.bf16 %v3222_v43, %v3218_v1 }
 0x26e   : > { %v3253_v28 = vpack.c.bf16 %v3221_v49, %v3217_v27  ;;  %v7211_v30 = vpack.c.bf16 %v3223_v23, %v3219_v41  ;;  %3780 = vmatpush1.bf16.msra.mxu0 %v6983_v3 }
 0x26f   : > { %3781 = vmatprep.subr.bf16.mxu0 %v6996_v8 }
 0x270   : > { %3742 = vmatprep.mubr.bf16.mxu0 %v3253_v28  ;;  %3855 = vmatprep.mubr.bf16.mxu1 %v7211_v30 }
 0x271   : > { %5292 = vmatprep.subr.bf16.mxu1 %v3253_v28  ;;  %3743 = vmatmul.mubr.bf16.gmra.mrb[60].mxu0 %v3252_v37 }
 0x272   : > { %3856 = vmatmul.mubr.bf16.gmra.mrb[48].mxu1 %v7209_v39  ;;  %3782 = vmatpush1.bf16.msra.mxu0 %v7001_v9 }
 0x273   : > { %5294 = vmatpush1.bf16.msra.mxu1 %v3252_v37  ;;  %3785 = vmatprep.mubr.bf16.mxu0 %v7063_v46 }
 0x274   : > { %5296 = vmatprep.subr.bf16.mxu1 %v7063_v46  ;;  %3783 = vmatprep.subr.bf16.mxu0 %v7014_v14 }
 0x276   : > { %3784 = vmatpush1.bf16.msra.mxu0 %v7019_v15 }
 0x279   : > { %3786 = vmatmul.mubr.bf16.vlgmr.msra.gmra.mrb[32].mxu0 %v7061_v38 }
 0x27a   : > { %3795 = vmatprep.mubr.bf16.mxu0 %v7082_v62 }
 0x281   : > { %3796 = vmatmul.mubr.bf16.gmra.mrb[36].mxu0 %v7078_v52 }
 0x282   : > { %3805 = vmatprep.mubr.bf16.mxu0 %v7104_v6 }
 0x289   : > { %3806 = vmatmul.mubr.bf16.gmra.mrb[40].mxu0 %v7100_v61 }
 0x324   : > { %v3704_v60 = vpop.f32.mrb[44].mxu0  ;;  %v3817_v2 = vpop.f32.mrb[32].mxu1 }
 0x325   : > { %v7227_v3 = vadd.f32 %v3817_v2, %v3704_v60  ;;  %v3706_v8 = vpop.f32.mrb[45].mxu0  ;;  %v3819_v9 = vpop.f32.mrb[33].mxu1 }
 0x326   : > { %v3820_v46 = vadd.f32 %v3819_v9, %v3706_v8  ;;  %v3708_v14 = vpop.f32.mrb[46].mxu0  ;;  %v3821_v48 = vpop.f32.mrb[34].mxu1 }
 0x327   : > { %v7229_v15 = vadd.f32 %v3821_v48, %v3708_v14  ;;  %v3710_v36 = vpop.f32.mrb[47].mxu0  ;;  %v3823_v13 = vpop.f32.mrb[35].mxu1 }
 0x328   : > { %v5174_v25 = vmul.f32 -1.442695, %v3820_v46  ;;  %v3824_v21 = vadd.f32 %v3823_v13, %v3710_v36 }
 0x32a   : > { %6260 = vpow2.f32 %v5174_v25  ;;  %v5175_v0 = vmul.f32 -1.442695, %v3824_v21 }
 0x32c   : > { %6262 = vpow2.f32 %v5175_v0  ;;  %v3714_v45 = vpop.f32.mrb[48].mxu0  ;;  %v3827_v34 = vpop.f32.mrb[36].mxu1 }
 0x32d   : > { %v7231_v10 = vadd.f32 %v3827_v34, %v3714_v45  ;;  %v3716_v47 = vpop.f32.mrb[49].mxu0  ;;  %v3829_v58 = vpop.f32.mrb[37].mxu1 }
 0x32e   : > { %v3830_v42 = vadd.f32 %v3829_v58, %v3716_v47  ;;  %v3718_v5 = vpop.f32.mrb[50].mxu0  ;;  %v3831_v55 = vpop.f32.mrb[38].mxu1  ;;  %v3872_v58 = vmax.f32 %v7227_v3, 0.0 }
 0x32f   : > { %v7233_v44 = vadd.f32 %v3831_v55, %v3718_v5  ;;  %v3720_v29 = vpop.f32.mrb[51].mxu0  ;;  %v3833_v40 = vpop.f32.mrb[39].mxu1 }
 0x330   : > { %v5176_v12 = vmul.f32 -1.442695, %v3830_v42  ;;  %v3834_v31 = vadd.f32 %v3833_v40, %v3720_v29 }
 0x332   : > { %6264 = vpow2.f32 %v5176_v12  ;;  %v5177_v56 = vmul.f32 -1.442695, %v3834_v31  ;;  %v7247_v12 = vld [vmem:[%s7687_s4] ss:$0 sm:$0xff]  ;;  %v3873_v31 = vmax.f32 %v7229_v15, 0.0 }
 0x334   : > { %v6261_v59 = vpop.eup %6260  ;;  %6266 = vpow2.f32 %v5177_v56  ;;  %v3724_v50 = vpop.f32.mrb[52].mxu0 }
 0x335   : > { %v3837_v19 = vpop.f32.mrb[40].mxu1  ;;  %v3936_v4 = vadd.f32 1.0, %v6261_v59  ;;  %v3726_v54 = vpop.f32.mrb[53].mxu0 }
 0x336   : > { %v7235_v53 = vadd.f32 %v3837_v19, %v3724_v50  ;;  %v3839_v11 = vpop.f32.mrb[41].mxu1  ;;  %v6263_v1 = vpop.eup %6262 }
 0x337   : > { %v3840_v35 = vadd.f32 %v3839_v11, %v3726_v54  ;;  %v3728_v43 = vpop.f32.mrb[54].mxu0  ;;  %v3841_v27 = vpop.f32.mrb[42].mxu1  ;;  %6268 = vrcp.f32 %v3936_v4  ;;  %v3937_v41 = vadd.f32 1.0, %v6263_v1 }
 0x338   : > { %v7237_v49 = vadd.f32 %v3841_v27, %v3728_v43  ;;  %v3730_v23 = vpop.f32.mrb[55].mxu0  ;;  %v3843_v37 = vpop.f32.mrb[43].mxu1 }
 0x339   : > { %v5178_v28 = vmul.f32 -1.442695, %v3840_v35  ;;  %v3844_v60 = vadd.f32 %v3843_v37, %v3730_v23  ;;  %6270 = vrcp.f32 %v3937_v41 }
 0x33b   : > { %6272 = vpow2.f32 %v5178_v28  ;;  %v5179_v2 = vmul.f32 -1.442695, %v3844_v60 }
 0x33c   : > { %v6265_v8 = vpop.eup %6264  ;;  %v3734_v9 = vpop.f32.mrb[56].mxu0 }
 0x33d   : > { %6274 = vpow2.f32 %v5179_v2  ;;  %v3938_v46 = vadd.f32 1.0, %v6265_v8  ;;  %v3847_v14 = vpop.f32.mrb[44].mxu1  ;;  %v3736_v48 = vpop.f32.mrb[57].mxu0  ;;  %v3874_v8 = vmax.f32 %v7231_v10, 0.0 }
 0x33e   : > { %v6267_v36 = vpop.eup %6266  ;;  %v7239_v13 = vadd.f32 %v3847_v14, %v3734_v9  ;;  %v3849_v25 = vpop.f32.mrb[45].mxu1 }
 0x33f   : > { %v3738_v21 = vpop.f32.mrb[58].mxu0  ;;  %6276 = vrcp.f32 %v3938_v46  ;;  %v3939_v0 = vadd.f32 1.0, %v6267_v36  ;;  %v3850_v45 = vadd.f32 %v3849_v25, %v3736_v48  ;;  %v3851_v34 = vpop.f32.mrb[46].mxu1  ;;  %v3875_v25 = vmax.f32 %v7233_v44, 0.0 }
 0x340   : > { %v3740_v47 = vpop.f32.mrb[59].mxu0  ;;  %v7242_v42 = vadd.f32 %v3851_v34, %v3738_v21  ;;  %v3853_v5 = vpop.f32.mrb[47].mxu1 }
 0x341   : > { %v6269_v55 = vpop.eup %6268  ;;  %6278 = vrcp.f32 %v3939_v0  ;;  %v5180_v29 = vmul.f32 -1.442695, %v3850_v45  ;;  %v3854_v40 = vadd.f32 %v3853_v5, %v3740_v47 }
 0x342   : > { %v3984_v56 = vmul.f32 %v6269_v55, %v3872_v58 }
 0x343   : > { %v6271_v59 = vpop.eup %6270  ;;  %6280 = vpow2.f32 %v5180_v29  ;;  %v5181_v50 = vmul.f32 -1.442695, %v3854_v40 }
 0x344   : > { %v3744_v3 = vpop.f32.mrb[60].mxu0  ;;  %v4007_v4 = vmul.f32 %v7247_v12, %v3984_v56  ;;  %v3985_v54 = vmul.f32 %v6271_v59, %v3873_v31  ;;  %v3876_v59 = vmax.f32 %v7235_v53, 0.0 }
 0x345   : > { %v6273_v19 = vpop.eup %6272  ;;  %6282 = vpow2.f32 %v5181_v50  ;;  %v3857_v1 = vpop.f32.mrb[48].mxu1 }
 0x346   : > { %v3940_v11 = vadd.f32 1.0, %v6273_v19  ;;  %v3746_v35 = vpop.f32.mrb[61].mxu0  ;;  %v7251_v27 = vadd.f32 %v3857_v1, %v3744_v3  ;;  %v3859_v41 = vpop.f32.mrb[49].mxu1  ;;  %4029 = vadd.xlane.f32.xlu0 %v4007_v4  ;;  %v4008_v15 = vmul.f32 %v7247_v12, %v3985_v54  ;;  %v3877_v4 = vmax.f32 %v7237_v49, 0.0 }
 0x347   : > { %v6275_v43 = vpop.eup %6274  ;;  %v3748_v23 = vpop.f32.mrb[62].mxu0  ;;  %v3860_v28 = vadd.f32 %v3859_v41, %v3746_v35 }
 0x348   : > { %6284 = vrcp.f32 %v3940_v11  ;;  %v3941_v37 = vadd.f32 1.0, %v6275_v43  ;;  %v3861_v60 = vpop.f32.mrb[50].mxu1  ;;  %v3750_v2 = vpop.f32.mrb[63].mxu0  ;;  %4031 = vadd.xlane.f32.xlu1 %v4008_v15 }
 0x349   : > { %v7255_v9 = vadd.f32 %v3861_v60, %v3748_v23  ;;  %v3863_v46 = vpop.f32.mrb[51].mxu1  ;;  %v6277_v14 = vpop.eup %6276  ;;  %v5182_v48 = vmul.f32 -1.442695, %v3860_v28 }
 0x34a   : > { %6286 = vrcp.f32 %v3941_v37  ;;  %v3864_v36 = vadd.f32 %v3863_v46, %v3750_v2  ;;  %v3986_v21 = vmul.f32 %v6277_v14, %v3874_v8  ;;  %v3878_v46 = vmax.f32 %v7239_v13, 0.0 }
 0x34b   : > { %v6279_v0 = vpop.eup %6278  ;;  %6288 = vpow2.f32 %v5182_v48 }
 0x34c   : > { %v5183_v45 = vmul.f32 -1.442695, %v3864_v36  ;;  %v7258_v34 = vpop.f32.mrb[32].mxu0  ;;  %v4009_v47 = vmul.f32 %v7247_v12, %v3986_v21  ;;  %v3987_v58 = vmul.f32 %v6279_v0, %v3875_v25  ;;  %v3879_v36 = vmax.f32 %v7242_v42, 0.0 }
 0x34d   : > { %v6281_v10 = vpop.eup %6280  ;;  %v3789_v5 = vpop.f32.mrb[33].mxu0 }
 0x34e   : > { %6290 = vpow2.f32 %v5183_v45  ;;  %v3942_v55 = vadd.f32 1.0, %v6281_v10  ;;  %v5168_v29 = vmul.f32 -1.442695, %v3789_v5  ;;  %4033 = vadd.xlane.f32.xlu0 %v4009_v47  ;;  %v7261_v40 = vpop.f32.mrb[34].mxu0  ;;  %v4010_v31 = vmul.f32 %v7247_v12, %v3987_v58 }
 0x34f   : > { %v6283_v44 = vpop.eup %6282  ;;  %v3793_v56 = vpop.f32.mrb[35].mxu0 }
 0x350   : > { %6292 = vrcp.f32 %v3942_v55  ;;  %v3943_v50 = vadd.f32 1.0, %v6283_v44  ;;  %v5169_v19 = vmul.f32 -1.442695, %v3793_v56  ;;  %4035 = vadd.xlane.f32.xlu1 %v4010_v31  ;;  %v3880_v56 = vmax.f32 %v7251_v27, 0.0 }
 0x351   : > { %6294 = vpow2.f32 %v5168_v29  ;;  %v3867_v27 = vmax.f32 %v7261_v40, 0.0 }
 0x352   : > { %v6285_v3 = vpop.eup %6284  ;;  %6296 = vrcp.f32 %v3943_v50 }
 0x353   : > { %v3988_v54 = vmul.f32 %v6285_v3, %v3876_v59  ;;  %6298 = vpow2.f32 %v5169_v19  ;;  %v3881_v19 = vmax.f32 %v7255_v9, 0.0 }
 0x354   : > { %v6287_v11 = vpop.eup %6286  ;;  %v7266_v1 = vpop.f32.mrb[36].mxu0 }
 0x355   : > { %v4011_v35 = vmul.f32 %v7247_v12, %v3988_v54  ;;  %v3989_v43 = vmul.f32 %v6287_v11, %v3877_v4  ;;  %v6289_v41 = vpop.eup %6288  ;;  %v3799_v23 = vpop.f32.mrb[37].mxu0 }
 0x356   : > { %v3944_v53 = vadd.f32 1.0, %v6289_v41  ;;  %v5170_v15 = vmul.f32 -1.442695, %v3799_v23  ;;  %v7269_v37 = vpop.f32.mrb[38].mxu0  ;;  %v3866_v41 = vmax.f32 %v7258_v34, 0.0 }
 0x357   : > { %4037 = vadd.xlane.f32.xlu0 %v4011_v35  ;;  %v4012_v28 = vmul.f32 %v7247_v12, %v3989_v43  ;;  %v3803_v49 = vpop.f32.mrb[39].mxu0 }
 0x358   : > { %v6291_v60 = vpop.eup %6290  ;;  %6300 = vrcp.f32 %v3944_v53  ;;  %v5171_v8 = vmul.f32 -1.442695, %v3803_v49 }
 0x359   : > { %v3945_v2 = vadd.f32 1.0, %v6291_v60  ;;  %4039 = vadd.xlane.f32.xlu1 %v4012_v28  ;;  %6302 = vpow2.f32 %v5170_v15 }
 0x35a   : > { %v6293_v14 = vpop.eup %6292 }
 0x35b   : > { %6304 = vrcp.f32 %v3945_v2  ;;  %v6295_v48 = vpop.eup %6294  ;;  %v3990_v25 = vmul.f32 %v6293_v14, %v3878_v46  ;;  %v3868_v46 = vmax.f32 %v7266_v1, 0.0 }
 0x35c   : > { %6306 = vpow2.f32 %v5171_v8  ;;  %v6297_v21 = vpop.eup %6296  ;;  %v3930_v0 = vadd.f32 1.0, %v6295_v48  ;;  %v3807_v45 = vpop.f32.mrb[40].mxu0  ;;  %v3869_v48 = vmax.f32 %v7269_v37, 0.0 }
 0x35d   : > { %v6299_v47 = vpop.eup %6298  ;;  %v3809_v58 = vpop.f32.mrb[41].mxu0  ;;  %v4013_v10 = vmul.f32 %v7247_v12, %v3990_v25  ;;  %v3991_v5 = vmul.f32 %v6297_v21, %v3879_v36 }
 0x35e   : > { %6308 = vrcp.f32 %v3930_v0  ;;  %v3931_v55 = vadd.f32 1.0, %v6299_v47  ;;  %v5172_v29 = vmul.f32 -1.442695, %v3809_v58  ;;  %v3811_v13 = vpop.f32.mrb[42].mxu0  ;;  %v3870_v0 = vmax.f32 %v3807_v45, 0.0 }
 0x35f   : > { %4041 = vadd.xlane.f32.xlu0 %v4013_v10  ;;  %v3813_v31 = vpop.f32.mrb[43].mxu0  ;;  %v4014_v44 = vmul.f32 %v7247_v12, %v3991_v5  ;;  %v3871_v10 = vmax.f32 %v3811_v13, 0.0  ;;  %v6497_v45 = vmov 0  }
 0x360   : > { %6310 = vrcp.f32 %v3931_v55  ;;  %v5173_v42 = vmul.f32 -1.442695, %v3813_v31  ;;  %5778 = vset.pattern.permute.xlu1 %v6497_v45 }
 0x361   : > { %6312 = vpow2.f32 %v5172_v29  ;;  %4043 = vadd.xlane.f32.xlu1 %v4014_v44 }
 0x362   : > { %v6301_v59 = vpop.eup %6300  ;;  %6314 = vpow2.f32 %v5173_v42 }
 0x363   : > { %v6303_v50 = vpop.eup %6302  ;;  %v3992_v3 = vmul.f32 %v6301_v59, %v3880_v56 }
 0x364   : > { %v3932_v54 = vadd.f32 1.0, %v6303_v50 }
 0x365   : > { %v6305_v4 = vpop.eup %6304  ;;  %v4015_v31 = vmul.f32 %v7247_v12, %v3992_v3  ;;  %v4054_v3 = vadd.s32 24, %v7025_v18 }
 0x366   : > { %v6307_v11 = vpop.eup %6306  ;;  %v3993_v35 = vmul.f32 %v6305_v4, %v3881_v19  ;;  %6316 = vrcp.f32 %v3932_v54  ;;  %v4057_v54 = vadd.s32 48, %v7025_v18 }
 0x367   : > { %v3933_v43 = vadd.f32 1.0, %v6307_v11  ;;  %v4058_v11 = vadd.s32 56, %v7025_v18 }
 0x368   : > { %v6309_v23 = vpop.eup %6308  ;;  %v4016_v44 = vmul.f32 %v7247_v12, %v3993_v35 }
 0x369   : > { %6318 = vrcp.f32 %v3933_v43  ;;  %v3978_v53 = vmul.f32 %v6309_v23, %v3866_v41  ;;  %v4067_v43 = vstv %s5185_s18  ;;  %v4059_v41 = vadd.s32 64, %v7025_v18 }
 0x36a   : > { %v6311_v15 = vpop.eup %6310  ;;  %v4060_v23 = vadd.s32 72, %v7025_v18 }
 0x36b   : > { %v6313_v28 = vpop.eup %6312  ;;  %v4001_v60 = vmul.f32 %v7247_v12, %v3978_v53  ;;  %v3979_v49 = vmul.f32 %v6311_v15, %v3867_v27  ;;  %v4061_v27 = vadd.s32 80, %v7025_v18  ;;  %v4052_v15 = vadd.s32 8, %v7025_v18 }
 0x36c   : > { %v6315_v9 = vpop.eup %6314  ;;  %v3934_v2 = vadd.f32 1.0, %v6313_v28  ;;  %v4055_v28 = vadd.s32 32, %v7025_v18 }
 0x36d   : > { %v3935_v8 = vadd.f32 1.0, %v6315_v9  ;;  %4017 = vadd.xlane.f32.xlu0 %v4001_v60  ;;  %v4002_v34 = vmul.f32 %v7247_v12, %v3979_v49  ;;  %v4071_v49 = vadd.s32 %v4067_v43, %v4054_v3  ;;  %v4056_v9 = vadd.s32 40, %v7025_v18 }
 0x36e   : > { %6320 = vrcp.f32 %v3934_v2  ;;  %v4074_v2 = vadd.s32 %v4067_v43, %v4057_v54 }
 0x36f   : > { %6322 = vrcp.f32 %v3935_v8  ;;  %v4075_v8 = vadd.s32 %v4067_v43, %v4058_v11  ;;  %vm4087_vm3 = vcmp.lt.s32.totalorder %v4071_v49, 300 }
 0x370   : > { %v6317_v14 = vpop.eup %6316  ;;  %vm4090_vm4 = vcmp.lt.s32.totalorder %v4074_v2, 300 }
 0x371   : > { %4019 = vadd.xlane.f32.xlu0 %v4002_v34  ;;  %v3980_v40 = vmul.f32 %v6317_v14, %v3868_v46  ;;  %v4062_v46 = vadd.s32 88, %v7025_v18  ;;  %v4063_v34 = vadd.s32 96, %v7025_v18  ;;  %vm4091_vm5 = vcmp.lt.s32.totalorder %v4075_v8, 300 }
 0x373   : > { %v6319_v36 = vpop.eup %6318  ;;  %v4003_v25 = vmul.f32 %v7247_v12, %v3980_v40  ;;  %v4077_v40 = vadd.s32 %v4067_v43, %v4060_v23 }
 0x374   : > { %v3981_v21 = vmul.f32 %v6319_v36, %v3869_v48  ;;  %v4076_v48 = vadd.s32 %v4067_v43, %v4059_v41  ;;  %v4078_v36 = vadd.s32 %v4067_v43, %v4061_v27 }
 0x375   : > { %4021 = vadd.xlane.f32.xlu1 %v4003_v25  ;;  %v4068_v25 = vadd.s32 %v4067_v43, %v7025_v18  ;;  %vm4093_vm7 = vcmp.lt.s32.totalorder %v4077_v40, 300 }
 0x376   : > { %v4004_v47 = vmul.f32 %v7247_v12, %v3981_v21  ;;  %v4064_v21 = vadd.s32 104, %v7025_v18  ;;  %vm4092_vm6 = vcmp.lt.s32.totalorder %v4076_v48, 300  ;;  %vm4094_vm8 = vcmp.lt.s32.totalorder %v4078_v36, 300 }
 0x377   : > { %vm4084_vm9 = vcmp.lt.s32.totalorder %v4068_v25, 300 }
 0x378   : > { %v6321_v58 = vpop.eup %6320  ;;  %v4081_v3 = vadd.s32 %v4067_v43, %v4064_v21 }
 0x379   : > { %v6323_v5 = vpop.eup %6322  ;;  %4023 = vadd.xlane.f32.xlu1 %v4004_v47  ;;  %v3982_v1 = vmul.f32 %v6321_v58, %v3870_v0  ;;  %v4069_v0 = vadd.s32 %v4067_v43, %v4052_v15  ;;  %v4072_v47 = vadd.s32 %v4067_v43, %v4055_v28  ;;  %v4065_v58 = vadd.s32 112, %v7025_v18 }
 0x37a   : > { %v3983_v55 = vmul.f32 %v6323_v5, %v3871_v10  ;;  %v4073_v10 = vadd.s32 %v4067_v43, %v4056_v9  ;;  %v4066_v5 = vadd.s32 120, %v7025_v18  ;;  %vm4097_vm0 = vcmp.lt.s32.totalorder %v4081_v3, 300 }
 0x37b   : > { %v4005_v29 = vmul.f32 %v7247_v12, %v3982_v1  ;;  %v4079_v1 = vadd.s32 %v4067_v43, %v4062_v46  ;;  %vm4088_vm10 = vcmp.lt.s32.totalorder %v4072_v47, 300  ;;  %vm4085_vm11 = vcmp.lt.s32.totalorder %v4069_v0, 300 }
 0x37c   : > { %v4006_v37 = vmul.f32 %v7247_v12, %v3983_v55  ;;  %v4053_v12 = vadd.s32 16, %v7025_v18  ;;  %v4080_v55 = vadd.s32 %v4067_v43, %v4063_v34  ;;  %vm4089_vm12 = vcmp.lt.s32.totalorder %v4073_v10, 300 }
 0x37d   : > { %4025 = vadd.xlane.f32.xlu0 %v4005_v29  ;;  %v4083_v54 = vadd.s32 %v4067_v43, %v4066_v5  ;;  %vm4095_vm13 = vcmp.lt.s32.totalorder %v4079_v1, 300 }
 0x37e   : > { %4027 = vadd.xlane.f32.xlu1 %v4006_v37  ;;  %v4070_v60 = vadd.s32 %v4067_v43, %v4053_v12  ;;  %v4082_v12 = vadd.s32 %v4067_v43, %v4065_v58  ;;  %vm4096_vm14 = vcmp.lt.s32.totalorder %v4080_v55, 300 }
 0x37f   : > { %vm4099_vm1 = vcmp.lt.s32.totalorder %v4083_v54, 300 }
 0x380   : > { %vm4086_vm2 = vcmp.lt.s32.totalorder %v4070_v60, 300  ;;  %vm4098_vm15 = vcmp.lt.s32.totalorder %v4082_v12, 300 }
 0x381   : > { %4045 = vadd.xlane.f32.xlu0 %v4015_v31 }
 0x382   : > { %4047 = vadd.xlane.f32.xlu1 %v4016_v44 }
 0x3d3   : > { %v4030_v13 = vpop.xlane.xlu0 %4029 }
 0x3d4   : > { %v7325_v11 = vsel %vm4090_vm4, %v4030_v13, -1e+30  ;;  %vm4456_vm4 = vcmp.lt.s32.totalorder %v636_v16, 512  ;;  %v4525_v16 = vld [vmem:[%s7688_s5 + $0x180] sm:$0xff] (!%p5186_p9) }
 0x3d5   : > { %v4032_v42 = vpop.xlane.xlu1 %4031 }
 0x3d6   : > { %v7328_v41 = vsel %vm4091_vm5, %v4032_v42, -1e+30  ;;  %vm4703_vm5 = vcmask (!%p5186_p9), 8192  }
 0x3db   : > { %v7291_v56 = vpop.xlane.xlu0 %4033 }
 0x3dc   : > { %v7336_v13 = vsel %vm4092_vm6, %v7291_v56, -1e+30 }
 0x3dd   : > { %v7293_v59 = vpop.xlane.xlu1 %4035 }
 0x3e4   : > { %v7295_v50 = vpop.xlane.xlu0 %4037 }
 0x3e5   : > { %v7344_v8 = vsel %vm4094_vm8, %v7295_v50, -1e+30 }
 0x3e6   : > { %v7297_v19 = vpop.xlane.xlu1 %4039 }
 0x3e7   : > { %v7348_v46 = vsel %vm4095_vm13, %v7297_v19, -1e+30 }
 0x3ec   : > { %v7300_v4 = vpop.xlane.xlu0 %4041 }
 0x3ed   : > { %v7358_v50 = vsel %vm4096_vm14, %v7300_v4, -1e+30 }
 0x3ee   : > { %v7306_v35 = vpop.xlane.xlu1 %4043 }
 0x3ef   : > { %v7361_v36 = vsel %vm4097_vm0, %v7306_v35, -1e+30  ;;  %v4116_v35 = vld [vmem:[#allocation2] sm:$0x1] }
 0x3fa   : > { %v4018_v53 = vpop.xlane.xlu0 %4017 }
 0x3fb   : > { %v4100_v27 = vsel %vm4084_vm9, %v4018_v53, -1e+30  ;;  %v7340_v53 = vsel %vm4093_vm7, %v7293_v59, -1e+30 }
 0x3fe   : > { %v4020_v29 = vpop.xlane.xlu0 %4019 }
 0x3ff   : > { %v4101_v9 = vsel %vm4085_vm11, %v4020_v29, -1e+30 }
 0x402   : > { %v4022_v14 = vpop.xlane.xlu1 %4021 }
 0x403   : > { %v7320_v31 = vsel %vm4086_vm2, %v4022_v14, -1e+30  ;;  %vm4237_vm2 = vcmask 0  }
 0x404   : > { %v4119_v15 = vmax.f32 %v7320_v31, %v7325_v11 }
 0x406   : > { %v4024_v37 = vpop.xlane.xlu1 %4023  ;;  %v4123_v48 = vmax.f32 %v4119_v15, %v7344_v8 }
 0x407   : > { %v7322_v44 = vsel %vm4087_vm3, %v4024_v37, -1e+30  ;;  %vm4198_vm3 = vcmask 7168  }
 0x408   : > { %v4120_v28 = vmax.f32 %v7322_v44, %v7328_v41 }
 0x40a   : > { %v4026_v23 = vpop.xlane.xlu0 %4025  ;;  %v4124_v59 = vmax.f32 %v4120_v28, %v7348_v46 }
 0x40b   : > { %v4104_v60 = vsel %vm4088_vm10, %v4026_v23, -1e+30  ;;  %v4028_v49 = vpop.xlane.xlu1 %4027 }
 0x40c   : > { %v4117_v43 = vmax.f32 %v4100_v27, %v4104_v60  ;;  %v4105_v2 = vsel %vm4089_vm12, %v4028_v49, -1e+30 }
 0x40d   : > { %v4118_v42 = vmax.f32 %v4101_v9, %v4105_v2 }
 0x40e   : > { %v4121_v34 = vmax.f32 %v4117_v43, %v7336_v13  ;;  %v4046_v14 = vpop.xlane.xlu0 %4045 }
 0x40f   : > { %v4122_v56 = vmax.f32 %v4118_v42, %v7340_v53  ;;  %v7353_v25 = vsel %vm4098_vm15, %v4046_v14, -1e+30  ;;  %v4048_v40 = vpop.xlane.xlu1 %4047 }
 0x410   : > { %v7363_v19 = vsel %vm4099_vm1, %v4048_v40, -1e+30  ;;  %v4125_v21 = vmax.f32 %v4121_v34, %v7358_v50  ;;  %v4127_v47 = vmax.f32 %v4123_v48, %v7353_v25 }
 0x411   : > { %v4126_v0 = vmax.f32 %v4122_v56, %v7361_v36  ;;  %v4128_v58 = vmax.f32 %v4124_v59, %v7363_v19 }
 0x413   : > { %v4129_v10 = vmax.f32 %v4125_v21, %v4126_v0  ;;  %v4130_v5 = vmax.f32 %v4127_v47, %v4128_v58 }
 0x415   : > { %v4131_v1 = vmax.f32 %v4129_v10, %v4130_v5  ;;  %v6498_v10 = vmov 0.0  }
 0x416   : > { %4346 = vmatprep.mubr.f32.mxu1 %v6498_v10 }
 0x417   : > { %v4132_v29 = vrot.slane %v4131_v1, 4 }
 0x419   : > { %v4133_v55 = vmax.f32 %v4131_v1, %v4132_v29 }
 0x41b   : > { %v4134_v4 = vrot.slane %v4133_v55, 2 }
 0x41d   : > { %v4135_v37 = vmax.f32 %v4133_v55, %v4134_v4 }
 0x41f   : > { %v4136_v12 = vrot.slane %v4135_v37, 1 }
 0x421   : > { %v4137_v3 = vmax.f32 %v4135_v37, %v4136_v12 }
 0x423   : > { %v4138_v54 = vmax.f32 %v4116_v35, %v4137_v3 }
 0x425   : > { %v4139_v23 = vsub.f32 %v4116_v35, %v4138_v54  ;;  %v7370_v15 = vrot.slane %v4138_v54, %v7028_v20  ;;  %4459 = vst.msk [vmem:[#allocation2] sm:$0x1] %vm4237_vm2, %v4138_v54 }
 0x427   : > { %v4140_v28 = vmul.f32 1.442695, %v4139_v23  ;;  %v4148_v49 = vsub.f32 %v4100_v27, %v7370_v15  ;;  %v4149_v43 = vsub.f32 %v4101_v9, %v7370_v15  ;;  %v4150_v42 = vsub.f32 %v7320_v31, %v7370_v15 }
 0x428   : > { %v4151_v34 = vsub.f32 %v7322_v44, %v7370_v15  ;;  %v4152_v14 = vsub.f32 %v4104_v60, %v7370_v15  ;;  %v4153_v40 = vsub.f32 %v4105_v2, %v7370_v15  ;;  %v4154_v27 = vsub.f32 %v7325_v11, %v7370_v15 }
 0x429   : > { %6324 = vpow2.f32 %v4140_v28  ;;  %v4164_v56 = vmul.f32 1.442695, %v4148_v49  ;;  %v4166_v48 = vmul.f32 1.442695, %v4149_v43  ;;  %v4168_v59 = vmul.f32 1.442695, %v4150_v42 }
 0x42a   : > { %v4170_v21 = vmul.f32 1.442695, %v4151_v34  ;;  %v4172_v9 = vmul.f32 1.442695, %v4152_v14  ;;  %v4155_v31 = vsub.f32 %v7328_v41, %v7370_v15  ;;  %v4174_v44 = vmul.f32 1.442695, %v4153_v40 }
 0x42b   : > { %6326 = vpow2.f32 %v4164_v56  ;;  %v4156_v60 = vsub.f32 %v7336_v13, %v7370_v15  ;;  %v4176_v2 = vmul.f32 1.442695, %v4154_v27  ;;  %v4157_v11 = vsub.f32 %v7340_v53, %v7370_v15 }
 0x42c   : > { %6328 = vpow2.f32 %v4166_v48  ;;  %v4178_v47 = vmul.f32 1.442695, %v4155_v31  ;;  %v4158_v41 = vsub.f32 %v7344_v8, %v7370_v15  ;;  %v4159_v1 = vsub.f32 %v7348_v46, %v7370_v15 }
 0x42d   : > { %6330 = vpow2.f32 %v4168_v59  ;;  %v4180_v58 = vmul.f32 1.442695, %v4156_v60  ;;  %v4182_v29 = vmul.f32 1.442695, %v4157_v11  ;;  %v4160_v8 = vsub.f32 %v7358_v50, %v7370_v15 }
 0x42e   : > { %6332 = vpow2.f32 %v4170_v21  ;;  %v4184_v12 = vmul.f32 1.442695, %v4158_v41  ;;  %v4161_v46 = vsub.f32 %v7361_v36, %v7370_v15  ;;  %v4186_v23 = vmul.f32 1.442695, %v4159_v1 }
 0x42f   : > { %6334 = vpow2.f32 %v4172_v9  ;;  %v4162_v42 = vsub.f32 %v7353_v25, %v7370_v15  ;;  %v4188_v50 = vmul.f32 1.442695, %v4160_v8  ;;  %v4163_v48 = vsub.f32 %v7363_v19, %v7370_v15 }
 0x430   : > { %6336 = vpow2.f32 %v4174_v44  ;;  %v4190_v36 = vmul.f32 1.442695, %v4161_v46 }
 0x431   : > { %6338 = vpow2.f32 %v4176_v2  ;;  %v4192_v27 = vmul.f32 1.442695, %v4162_v42  ;;  %v4194_v44 = vmul.f32 1.442695, %v4163_v48  ;;  %v4196_v48 = vld [vmem:[#allocation3] sm:$0x1] }
 0x432   : > { %6340 = vpow2.f32 %v4178_v47 }
 0x433   : > { %v7385_v0 = vpop.eup %6324  ;;  %6342 = vpow2.f32 %v4180_v58 }
 0x434   : > { %4242 = vperm.xlu1 %5778, %v7385_v0   ;;  %6344 = vpow2.f32 %v4182_v29 }
 0x435   : > { %v6327_v5 = vpop.eup %6326  ;;  %6346 = vpow2.f32 %v4184_v12 }
 0x436   : > { %v6329_v13 = vpop.eup %6328  ;;  %4250 = vxpose.xlu0.b32.start [1/16] (narrow) %v6327_v5, 8  ;;  %v4199_v53 = vsel %vm4198_vm3, %v6327_v5, 0.0  ;;  %6348 = vpow2.f32 %v4186_v23 }
 0x437   : > { %v6331_v55 = vpop.eup %6330  ;;  %v4200_v4 = vsel %vm4198_vm3, %v6329_v13, 0.0  ;;  %6350 = vpow2.f32 %v4188_v50 }
 0x438   : > { %v6333_v37 = vpop.eup %6332  ;;  %v4201_v35 = vadd.f32 %v4200_v4, %v4199_v53  ;;  %v4202_v3 = vsel %vm4198_vm3, %v6331_v55, 0.0  ;;  %6352 = vpow2.f32 %v4190_v36 }
 0x439   : > { %v6335_v54 = vpop.eup %6334  ;;  %v4204_v49 = vsel %vm4198_vm3, %v6333_v37, 0.0  ;;  %6354 = vpow2.f32 %v4192_v27 }
 0x43a   : > { %v4203_v28 = vadd.f32 %v4202_v3, %v4201_v35  ;;  %4251 = vxpose.xlu0.b32.cont [2/16] (narrow) %v6329_v13, 8  ;;  %v6337_v43 = vpop.eup %6336  ;;  %v4206_v14 = vsel %vm4198_vm3, %v6335_v54, 0.0  ;;  %6356 = vpow2.f32 %v4194_v44  ;;  %v6500_v44 = vmov (!%p5186_p9), 0  }
 0x43b   : > { %v6339_v56 = vpop.eup %6338  ;;  %v4208_v40 = vsel %vm4198_vm3, %v6337_v43, 0.0 }
 0x43c   : > { %v4205_v34 = vadd.f32 %v4204_v49, %v4203_v28  ;;  %v6341_v21 = vpop.eup %6340  ;;  %v4210_v25 = vsel %vm4198_vm3, %v6339_v56, 0.0 }
 0x43d   : > { %v6343_v31 = vpop.eup %6342  ;;  %v4212_v2 = vsel %vm4198_vm3, %v6341_v21, 0.0 }
 0x43e   : > { %v4207_v59 = vadd.f32 %v4206_v14, %v4205_v34  ;;  %4252 = vxpose.xlu0.b32.cont [3/16] (narrow) %v6331_v55, 8  ;;  %v6345_v19 = vpop.eup %6344  ;;  %v4214_v11 = vsel %vm4198_vm3, %v6343_v31, 0.0 }
 0x43f   : > { %v6347_v47 = vpop.eup %6346  ;;  %v4216_v58 = vsel %vm4198_vm3, %v6345_v19, 0.0 }
 0x440   : > { %v4209_v9 = vadd.f32 %v4208_v40, %v4207_v59  ;;  %v6349_v5 = vpop.eup %6348  ;;  %v4218_v1 = vsel %vm4198_vm3, %v6347_v47, 0.0 }
 0x441   : > { %v6351_v29 = vpop.eup %6350  ;;  %v4220_v55 = vsel %vm4198_vm3, %v6349_v5, 0.0 }
 0x442   : > { %v4211_v60 = vadd.f32 %v4210_v25, %v4209_v9  ;;  %4253 = vxpose.xlu0.b32.cont [4/16] (narrow) %v6333_v37, 8  ;;  %v6353_v4 = vpop.eup %6352  ;;  %v4222_v8 = vsel %vm4198_vm3, %v6351_v29, 0.0  ;;  %v4493_v25 = vld [vmem:[%s7688_s5 + $0x80] sm:$0xff] (!%p5186_p9) }
 0x443   : > { %v6355_v12 = vpop.eup %6354  ;;  %v4224_v3 = vsel %vm4198_vm3, %v6353_v4, 0.0 }
 0x444   : > { %v4213_v15 = vadd.f32 %v4212_v2, %v4211_v60  ;;  %v4226_v23 = vsel %vm4198_vm3, %v6355_v12, 0.0  ;;  %v4526_v2 = vld [vmem:[%s7688_s5 + $0x188] sm:$0xff] (!%p5186_p9) }
 0x446   : > { %v4215_v41 = vadd.f32 %v4214_v11, %v4213_v15  ;;  %4254 = vxpose.xlu0.b32.cont [5/16] (narrow) %v6335_v54, 8  ;;  %v6357_v54 = vpop.eup %6356  ;;  %v5359_v15 = vpack.c.bf16 (!%p5186_p9), %v4526_v2, %v4525_v16  ;;  %v4478_v11 = vld [vmem:[%s7688_s5 + $0x8] sm:$0xff] (!%p5186_p9)  ;;  %v4487_v2 = vld [vmem:[%s7688_s5 + $0x50] sm:$0xff] (!%p5186_p9) }
 0x447   : > { %v4228_v49 = vsel %vm4198_vm3, %v6357_v54, 0.0 }
 0x448   : > { %v4217_v13 = vadd.f32 %v4216_v58, %v4215_v41  ;;  %v4510_v41 = vld [vmem:[%s7688_s5 + $0x108] sm:$0xff] (!%p5186_p9) }
 0x44a   : > { %v4219_v53 = vadd.f32 %v4218_v1, %v4217_v13  ;;  %4255 = vxpose.xlu0.b32.cont [6/16] (narrow) %v6337_v43, 8  ;;  %v4495_v13 = vld [vmem:[%s7688_s5 + $0x90] sm:$0xff] (!%p5186_p9)  ;;  %v4496_v1 = vld [vmem:[%s7688_s5 + $0x98] sm:$0xff] (!%p5186_p9) }
 0x44c   : > { %v4221_v37 = vadd.f32 %v4220_v55, %v4219_v53  ;;  %v5331_v53 = vpack.c.bf16 (!%p5186_p9), %v4496_v1, %v4495_v13  ;;  %v4528_v55 = vld [vmem:[%s7688_s5 + $0x198] sm:$0xff] (!%p5186_p9)  ;;  %v4537_v13 = vld [vmem:[%s7688_s5 + $0x1e0] sm:$0xff] (!%p5186_p9)  ;;  %v4538_v1 = vld [vmem:[%s7688_s5 + $0x1e8] sm:$0xff] (!%p5186_p9) }
 0x44e   : > { %v4223_v35 = vadd.f32 %v4222_v8, %v4221_v37  ;;  %4256 = vxpose.xlu0.b32.cont [7/16] (narrow) %v6339_v56, 8  ;;  %v4197_v56 = vmul.f32 %v7385_v0, %v4196_v48  ;;  %v4480_v37 = vld [vmem:[%s7688_s5 + $0x18] sm:$0xff] (!%p5186_p9)  ;;  %v4514_v48 = vld [vmem:[%s7688_s5 + $0x128] sm:$0xff] (!%p5186_p9) }
 0x450   : > { %v4225_v46 = vadd.f32 %v4224_v3, %v4223_v35  ;;  %v4511_v35 = vld [vmem:[%s7688_s5 + $0x110] sm:$0xff] (!%p5186_p9)  ;;  %v4512_v3 = vld [vmem:[%s7688_s5 + $0x118] sm:$0xff] (!%p5186_p9) }
 0x452   : > { %v4227_v28 = vadd.f32 %v4226_v23, %v4225_v46  ;;  %4257 = vxpose.xlu0.b32.cont [8/16] (narrow) %v6341_v21, 8  ;;  %v5365_v46 = vpack.c.bf16 (!%p5186_p9), %v4512_v3, %v4511_v35  ;;  %v4498_v23 = vld [vmem:[%s7688_s5 + $0xa8] sm:$0xff] (!%p5186_p9)  ;;  %v4507_v3 = vld [vmem:[%s7688_s5 + $0xf0] sm:$0xff] (!%p5186_p9) }
 0x453   : > { %v4522_v35 = vld [vmem:[%s7688_s5 + $0x168] sm:$0xff] (!%p5186_p9) }
 0x454   : > { %v4229_v43 = vadd.f32 %v4228_v49, %v4227_v28  ;;  %v4529_v28 = vld [vmem:[%s7688_s5 + $0x1a0] sm:$0xff] (!%p5186_p9)  ;;  %v4530_v49 = vld [vmem:[%s7688_s5 + $0x1a8] sm:$0xff] (!%p5186_p9) }
 0x456   : > { %v4230_v42 = vrot.slane %v4229_v43, 4  ;;  %4258 = vxpose.xlu0.b32.cont [9/16] (narrow) %v6343_v31, 8  ;;  %v4494_v31 = vld [vmem:[%s7688_s5 + $0x88] sm:$0xff] (!%p5186_p9) }
 0x457   : > { %v5327_v60 = vpack.c.bf16 (!%p5186_p9), %v4494_v31, %v4493_v25  ;;  %v4504_v25 = vld [vmem:[%s7688_s5 + $0xd8] sm:$0xff] (!%p5186_p9)  ;;  %v4535_v31 = vld [vmem:[%s7688_s5 + $0x1d0] sm:$0xff] (!%p5186_p9) }
 0x458   : > { %v4231_v50 = vadd.f32 %v4230_v42, %v4229_v43  ;;  %v5367_v42 = vpack.c.bf16 (!%p5186_p9), %v4530_v49, %v4529_v28 }
 0x459   : > { %5328 = vmatprep.subr.bf16.mxu0 (!%p5186_p9), %v5327_v60 }
 0x45a   : > { %v4232_v34 = vrot.slane %v4231_v50, 2  ;;  %4259 = vxpose.xlu0.b32.cont [10/16] (narrow) %v6345_v19, 8  ;;  %v4477_v19 = vld [vmem:[%s7688_s5] sm:$0xff] (!%p5186_p9) }
 0x45b   : > { %v5329_v58 = vpack.c.bf16 (!%p5186_p9), %v4478_v11, %v4477_v19  ;;  %v4488_v19 = vld [vmem:[%s7688_s5 + $0x58] sm:$0xff] (!%p5186_p9) }
 0x45c   : > { %v4233_v14 = vadd.f32 %v4232_v34, %v4231_v50  ;;  %v4481_v50 = vld [vmem:[%s7688_s5 + $0x20] sm:$0xff] (!%p5186_p9)  ;;  %v4482_v34 = vld [vmem:[%s7688_s5 + $0x28] sm:$0xff] (!%p5186_p9) }
 0x45d   : > { %5330 = vmatpush3.bf16.msra.mxu0 (!%p5186_p9), %v5329_v58  ;;  %v4505_v58 = vld [vmem:[%s7688_s5 + $0xe0] sm:$0xff] (!%p5186_p9) }
 0x45e   : > { %v4234_v36 = vrot.slane %v4233_v14, 1  ;;  %4260 = vxpose.xlu0.b32.cont [11/16] (narrow) %v6347_v47, 8  ;;  %v4509_v47 = vld [vmem:[%s7688_s5 + $0x100] sm:$0xff] (!%p5186_p9)  ;;  %5332 = vmatprep.subr.bf16.mxu0 (!%p5186_p9), %v5331_v53 }
 0x460   : > { %v4235_v59 = vadd.f32 %v4234_v36, %v4233_v14  ;;  %v4513_v14 = vld [vmem:[%s7688_s5 + $0x120] sm:$0xff] (!%p5186_p9)  ;;  %v4499_v36 = vld [vmem:[%s7688_s5 + $0xb0] sm:$0xff] (!%p5186_p9) }
 0x462   : > { %v4236_v40 = vadd.f32 %v4235_v59, %v4197_v56  ;;  %4261 = vxpose.xlu0.b32.cont [12/16] (narrow) %v6349_v5, 8  ;;  %v5361_v5 = vpack.c.bf16 (!%p5186_p9), %v4510_v41, %v4509_v47  ;;  %v4500_v56 = vld [vmem:[%s7688_s5 + $0xb8] sm:$0xff] (!%p5186_p9)  ;;  %v5337_v59 = vpack.c.bf16 (!%p5186_p9), %v4482_v34, %v4481_v50  ;;  %v4519_v47 = vld [vmem:[%s7688_s5 + $0x150] sm:$0xff] (!%p5186_p9) }
 0x463   : > { %v4520_v41 = vld [vmem:[%s7688_s5 + $0x158] sm:$0xff] (!%p5186_p9) }
 0x464   : > { %4238 = vst.msk [vmem:[#allocation3] sm:$0x1] %vm4237_vm2, %v4236_v40  ;;  %v5369_v40 = vpack.c.bf16 (!%p5186_p9), %v4514_v48, %v4513_v14  ;;  %v5381_v53 = vpack.c.bf16 (!%p5186_p9), %v4520_v41, %v4519_v47  ;;  %v4492_v34 = vld [vmem:[%s7688_s5 + $0x78] sm:$0xff] (!%p5186_p9)  ;;  %v4523_v14 = vld [vmem:[%s7688_s5 + $0x170] sm:$0xff] (!%p5186_p9) }
 0x465   : > { %v4524_v48 = vld [vmem:[%s7688_s5 + $0x178] sm:$0xff] (!%p5186_p9) }
 0x466   : > { %4262 = vxpose.xlu0.b32.cont [13/16] (narrow) %v6351_v29, 8  ;;  %v4527_v29 = vld [vmem:[%s7688_s5 + $0x190] sm:$0xff] (!%p5186_p9) }
 0x467   : > { %v5363_v8 = vpack.c.bf16 (!%p5186_p9), %v4528_v55, %v4527_v29  ;;  %v5349_v29 = vpack.c.bf16 (!%p5186_p9), %v4488_v19, %v4487_v2  ;;  %v4489_v55 = vld [vmem:[%s7688_s5 + $0x60] sm:$0xff] (!%p5186_p9) }
 0x46a   : > { %4263 = vxpose.xlu0.b32.cont [14/16] (narrow) %v6353_v4, 8  ;;  %v4479_v4 = vld [vmem:[%s7688_s5 + $0x10] sm:$0xff] (!%p5186_p9) }
 0x46b   : > { %v4465_v9 = vld [vmem:[#allocation3] sm:$0x1] (!%p5186_p9) }
 0x46e   : > { %4264 = vxpose.xlu0.b32.cont [15/16] (narrow) %v6355_v12, 8  ;;  %v5333_v12 = vpack.c.bf16 (!%p5186_p9), %v4480_v37, %v4479_v4  ;;  %v4490_v4 = vld [vmem:[%s7688_s5 + $0x68] sm:$0xff] (!%p5186_p9) }
 0x46f   : > { %v5353_v28 = vpack.c.bf16 (!%p5186_p9), %v4490_v4, %v4489_v55 }
 0x470   : > { %5334 = vmatpush3.bf16.msra.mxu0 (!%p5186_p9), %v5333_v12  ;;  %v4521_v12 = vld [vmem:[%s7688_s5 + $0x160] sm:$0xff] (!%p5186_p9) }
 0x471   : > { %v5385_v49 = vpack.c.bf16 (!%p5186_p9), %v4522_v35, %v4521_v12 }
 0x472   : > { %4265 = vxpose.xlu0.b32.end [16/16] (narrow) %v6357_v54, 8  ;;  %v4497_v54 = vld [vmem:[%s7688_s5 + $0xa0] sm:$0xff] (!%p5186_p9) }
 0x473   : > { %v5335_v43 = vpack.c.bf16 (!%p5186_p9), %v4498_v23, %v4497_v54  ;;  %v4508_v54 = vld [vmem:[%s7688_s5 + $0xf8] sm:$0xff] (!%p5186_p9) }
 0x474   : > { %v4540_v23 = vld [vmem:[%s7688_s5 + $0x1f8] sm:$0xff] (!%p5186_p9) }
 0x475   : > { %5336 = vmatprep.subr.bf16.mxu0 (!%p5186_p9), %v5335_v43  ;;  %v4491_v43 = vld [vmem:[%s7688_s5 + $0x70] sm:$0xff] (!%p5186_p9) }
 0x476   : > { %5338 = vmatpush3.bf16.msra.mxu0 (!%p5186_p9), %v5337_v59 }
 0x49b   : > { %5779 = vset.pattern.permute.xlu0 %v6497_v45 }
 0x49c   : > { %6358 = vset.pattern.permute.xlu0 (!%p5186_p9), %v6500_v44  ;;  %v4536_v44 = vld [vmem:[%s7688_s5 + $0x1d8] sm:$0xff] (!%p5186_p9) }
 0x49d   : > { %4468 = vperm.xlu0 (!%p5186_p9), %6358, %v4465_v9   ;;  %v4503_v9 = vld [vmem:[%s7688_s5 + $0xd0] sm:$0xff] (!%p5186_p9)  ;;  %v5379_v11 = vpack.c.bf16 (!%p5186_p9), %v4536_v44, %v4535_v31 }
 0x4b6   : > { %v4266_v21 = vpop.trf.xlu0 }
 0x4b7   : > { %4347 = vmatmul.mubr.f32.vlgmr.msra.gmra.mrb[52].mxu1 %v4266_v21 }
 0x4b8   : > { %5298 = vmatpush1.bf16.msra.mxu1 %v7061_v38  ;;  %4417 = vmatprep.mubr.f32.mxu1 %v6498_v10 }
 0x4b9   : > { %5300 = vmatprep.subr.bf16.mxu1 %v7082_v62 }
 0x4bc   : > { %5302 = vmatpush1.bf16.msra.mxu1 %v7078_v52 }
 0x4bd   : > { %5304 = vmatprep.subr.bf16.mxu1 %v7104_v6 }
 0x4c0   : > { %5306 = vmatpush1.bf16.msra.mxu1 %v7100_v61  ;;  %v6499_v61 = vmov 1966171168  }
 0x4c1   : > { %5308 = vmatprep.subr.bf16.mxu1 %v7126_v22  ;;  %v4431_v6 = vunpack.c.l.s4 %v6499_v61 }
 0x4c4   : > { %5310 = vmatpush1.bf16.msra.mxu1 %v7122_v51  ;;  %v4432_v51 = vunpack.c.0.s8 %v4431_v6  ;;  %v4484_v6 = vld [vmem:[%s7688_s5 + $0x38] sm:$0xff] (!%p5186_p9) }
 0x4c5   : > { %5312 = vmatprep.subr.bf16.mxu1 %v7150_v33  ;;  %v4243_v33 = vpop.permute.xlu1 %4242 }
 0x4c6   : > { %v4435_v22 = vsub.s32 %v4432_v51, %v7025_v18  ;;  %v4515_v51 = vld [vmem:[%s7688_s5 + $0x130] sm:$0xff] (!%p5186_p9) }
 0x4c8   : > { %5314 = vmatpush1.bf16.msra.mxu1 %v7148_v63 }
 0x4c9   : > { %5316 = vmatprep.subr.bf16.mxu1 %v7173_v7 }
 0x4cc   : > { %5318 = vmatpush1.bf16.msra.mxu1 %v7171_v17 }
 0x4cd   : > { %5320 = vmatprep.subr.bf16.mxu1 %v7193_v32  ;;  %v4248_v32 = vrot.slane %v4243_v33, %v7028_v20  ;;  %v4502_v33 = vld [vmem:[%s7688_s5 + $0xc8] sm:$0xff] (!%p5186_p9) }
 0x4d0   : > { %5322 = vmatpush1.bf16.msra.mxu1 %v7191_v57 }
 0x4d1   : > { %5324 = vmatprep.subr.bf16.mxu1 %v7211_v30  ;;  %v4239_v30 = vld [vmem:[#allocation4] sm:$0xf] }
 0x4d4   : > { %5326 = vmatpush1.bf16.msra.mxu1 %v7209_v39  ;;  %v4249_v39 = vmul.f32 %v4248_v32, %v4239_v30  ;;  %v4486_v30 = vld [vmem:[%s7688_s5 + $0x48] sm:$0xff] (!%p5186_p9) }
 0x4d5   : > { %5360 = vmatprep.subr.bf16.mxu1 (!%p5186_p9), %v5359_v15  ;;  %v5347_v15 = vpack.c.bf16 (!%p5186_p9), %v4504_v25, %v4503_v9 }
 0x4d7   : > { %4418 = vmatmul.mubr.f32.vlgmr.msra.gmra.mrb[54].mxu1 %v4266_v21  ;;  %v4531_v21 = vld [vmem:[%s7688_s5 + $0x1b0] sm:$0xff] (!%p5186_p9) }
 0x4d8   : > { %5362 = vmatpush3.bf16.msra.mxu1 (!%p5186_p9), %v5361_v5  ;;  %v4506_v5 = vld [vmem:[%s7688_s5 + $0xe8] sm:$0xff] (!%p5186_p9) }
 0x4d9   : > { %5364 = vmatprep.subr.bf16.mxu1 (!%p5186_p9), %v5363_v8  ;;  %v5351_v37 = vpack.c.bf16 (!%p5186_p9), %v4506_v5, %v4505_v58  ;;  %v5383_v8 = vpack.c.bf16 (!%p5186_p9), %v4538_v1, %v4537_v13 }
 0x4dc   : > { %5366 = vmatpush3.bf16.msra.mxu1 (!%p5186_p9), %v5365_v46  ;;  %v4539_v46 = vld [vmem:[%s7688_s5 + $0x1f0] sm:$0xff] (!%p5186_p9) }
 0x4dd   : > { %5368 = vmatprep.subr.bf16.mxu1 (!%p5186_p9), %v5367_v42  ;;  %v5355_v42 = vpack.c.bf16 (!%p5186_p9), %v4508_v54, %v4507_v3  ;;  %v5387_v50 = vpack.c.bf16 (!%p5186_p9), %v4540_v23, %v4539_v46 }
 0x4e0   : > { %5370 = vmatpush3.bf16.msra.mxu1 (!%p5186_p9), %v5369_v40 }
 0x51c   : > { %v4469_v59 = vpop.permute.xlu0 (!%p5186_p9), %4468 }
 0x51d   : > { %v4474_v40 = vrot.slane (!%p5186_p9), %v4469_v59, %v7028_v20 }
 0x51f   : > { %6359 = vrcp.f32 (!%p5186_p9), %v4474_v40 }
 0x58a   : > { %v4348_v38 = vpop.f32.mrb[52].mxu1 }
 0x58b   : > { %v4350_v52 = vpop.f32.mrb[53].mxu1 }
 0x58c   : > { %v4428_v62 = vcombine.low %v4348_v38, %v4350_v52  ;;  %v4532_v38 = vld [vmem:[%s7688_s5 + $0x1b8] sm:$0xff] (!%p5186_p9)  ;;  %v4483_v52 = vld [vmem:[%s7688_s5 + $0x30] sm:$0xff] (!%p5186_p9) }
 0x58d   : > { %v5371_v61 = vpack.c.bf16 (!%p5186_p9), %v4532_v38, %v4531_v21  ;;  %v5341_v32 = vpack.c.bf16 (!%p5186_p9), %v4484_v6, %v4483_v52  ;;  %v6360_v38 = vpop.eup (!%p5186_p9), %6359 }
 0x58e   : > { %v4436_v57 = vrot.slane %v4428_v62, %v4435_v22  ;;  %v5339_v62 = vpack.c.bf16 (!%p5186_p9), %v4500_v56, %v4499_v36  ;;  %v5357_v36 = vpack.c.bf16 (!%p5186_p9), %v4492_v34, %v4491_v43  ;;  %v5389_v56 = vpack.c.bf16 (!%p5186_p9), %v4524_v48, %v4523_v14 }
 0x58f   : > { %5372 = vmatprep.subr.bf16.mxu1 (!%p5186_p9), %v5371_v61 }
 0x590   : > { %5340 = vmatprep.subr.bf16.mxu0 (!%p5186_p9), %v5339_v62 }
 0x591   : > { %5342 = vmatpush3.bf16.msra.mxu0 (!%p5186_p9), %v5341_v32 }
 0x5aa   : > { %v4419_v63 = vpop.f32.mrb[54].mxu1 }
 0x5ab   : > { %v4421_v17 = vpop.f32.mrb[55].mxu1 }
 0x5ac   : > { %v4429_v7 = vcombine.low %v4419_v63, %v4421_v17  ;;  %v4501_v63 = vld [vmem:[%s7688_s5 + $0xc0] sm:$0xff] (!%p5186_p9) }
 0x5ad   : > { %v4533_v17 = vld [vmem:[%s7688_s5 + $0x1c0] sm:$0xff] (!%p5186_p9) }
 0x5ae   : > { %v4443_v45 = vrot.slane %v4429_v7, %v4435_v22  ;;  %v4534_v7 = vld [vmem:[%s7688_s5 + $0x1c8] sm:$0xff] (!%p5186_p9) }
 0x5b0   : > { %v4444_v0 = vcombine.low %v4436_v57, %v4443_v45  ;;  %4463 = sbr.rel (%p5186_p9) target bundleno = 1698 (0x6a2), region = 64  ;;  %v4485_v45 = vld [vmem:[%s7688_s5 + $0x40] sm:$0xff] (!%p5186_p9) }
 0x5b1   : > { %v5345_v60 = vpack.c.bf16 (!%p5186_p9), %v4486_v30, %v4485_v45 }
 0x5b2   : > { %v4451_v10 = vrot.slane %v4444_v0, %v4435_v22  ;;  %v4516_v22 = vld [vmem:[%s7688_s5 + $0x138] sm:$0xff] (!%p5186_p9)  ;;  %v5343_v0 = vpack.c.bf16 (!%p5186_p9), %v4502_v33, %v4501_v63 }
 0x5b3   : > { %v5373_v57 = vpack.c.bf16 (!%p5186_p9), %v4516_v22, %v4515_v51  ;;  %v7704_v51 = vsub.s32 (!%p5186_p9), 2, %v7025_v18 }
 0x5b4   : > { %v4453_v27 = vadd.f32 %v4451_v10, %v4249_v39  ;;  %v5375_v39 = vpack.c.bf16 (!%p5186_p9), %v4534_v7, %v4533_v17  ;;  %v4517_v10 = vld [vmem:[%s7688_s5 + $0x140] sm:$0xff] (!%p5186_p9)  ;;  %5344 = vmatprep.subr.bf16.mxu0 (!%p5186_p9), %v5343_v0 }
 0x5b5   : > { %5374 = vmatpush3.bf16.msra.mxu1 (!%p5186_p9), %v5373_v57  ;;  %5346 = vmatpush3.bf16.msra.mxu0 (!%p5186_p9), %v5345_v60  ;;  %v4541_v17 = vld [vmem:[%s7689_s6] sm:$0x1] (!%p5186_p9) }
 0x5b6   : > { %4458 = vst.msk [vmem:[#allocation4] sm:$0xf] %vm4456_vm4, %v4453_v27  ;;  %v4518_v27 = vld [vmem:[%s7688_s5 + $0x148] sm:$0xff] (!%p5186_p9)  ;;  %5376 = vmatprep.subr.bf16.mxu1 (!%p5186_p9), %v5375_v39  ;;  %5348 = vmatprep.subr.bf16.mxu0 (!%p5186_p9), %v5347_v15 }
 0x5b7   : > { %v5377_v16 = vpack.c.bf16 %v4518_v27, %v4517_v10 }
 0x5b9   : > { %5378 = vmatpush3.bf16.msra.mxu1 %v5377_v16  ;;  %5350 = vmatpush3.bf16.msra.mxu0 %v5349_v29 }
 0x5ba   : > { %5380 = vmatprep.subr.bf16.mxu1 %v5379_v11  ;;  %5352 = vmatprep.subr.bf16.mxu0 %v5351_v37 }
 0x5bd   : > { %5382 = vmatpush3.bf16.msra.mxu1 %v5381_v53  ;;  %5354 = vmatpush3.bf16.msra.mxu0 %v5353_v28  ;;  %v4464_v21 = vld [vmem:[#allocation4] sm:$0xf] }
 0x5be   : > { %5384 = vmatprep.subr.bf16.mxu1 %v5383_v8  ;;  %5356 = vmatprep.subr.bf16.mxu0 %v5355_v42  ;;  %v4476_v52 = vmul.f32 %v6360_v38, %v4464_v21 }
 0x5c0   : > { %v4550_v62 = vrot.slane %v4476_v52, %v642_v24  ;;  %v4558_v61 = vrot.slane %v4476_v52, %v650_v26  ;;  %v4546_v6 = vrot.slane %v4476_v52, %v7028_v20  ;;  %v4554_v22 = vrot.slane %v4476_v52, %v7704_v51 }
 0x5c1   : > { %5386 = vmatpush3.bf16.msra.mxu1 %v5385_v49  ;;  %5358 = vmatpush3.bf16.msra.mxu0 %v5357_v36 }
 0x5c2   : > { %5388 = vmatprep.subr.bf16.mxu1 %v5387_v50  ;;  %4627 = vmatprep.mubr.f32.mxu0 %v4550_v62 }
 0x5c3   : > { %4697 = vmatprep.mubr.f32.mxu1 %v4558_v61 }
 0x5c4   : > { %4628 = vmatmul.mubr.f32.vlgmr.msra.gmra.mrb[0].mxu0 %v4546_v6 }
 0x5c5   : > { %5390 = vmatpush3.bf16.msra.mxu1 %v5389_v56 }
 0x5c8   : > { %4698 = vmatmul.mubr.f32.vlgmr.msra.gmra.mrb[0].mxu1 %v4554_v22 }
 0x697   : > { %v5225_v63 = vpop.f32.mrb[0].mxu0 }
 0x698   : > { %v5226_v7 = vpop.f32.mrb[1].mxu0 }
 0x699   : > { %v5227_v32 = vadd.f32 %v5226_v7, %v5225_v63 }
 0x69b   : > { %v5260_v33 = vpop.f32.mrb[0].mxu1  ;;  %v4630_v26 = vadd.f32 %v5227_v32, %v4541_v17 }
 0x69c   : > { %v5261_v24 = vpop.f32.mrb[1].mxu1 }
 0x69d   : > { %v5262_v57 = vadd.f32 %v5261_v24, %v5260_v33 }
 0x69f   : > { %v4700_v20 = vadd.f32 %v5262_v57, %v4630_v26 }
 0x6a1   : > { %4704 = vst.msk [vmem:[#allocation10] sm:$0x1] %vm4703_vm5, %v4700_v20 }
 0x6a2 PF: > { %p5732_p10 = scmp.eq.s32.totalorder %s6561_s28, 2  ;;  %s6501_s21 = smov [#allocation10]  }
 0x6a3   : > { %s4712_s22 = sshll.u32 %s6501_s21, 4  ;;  %s4713_s22 = int_to_ptr.vmem [resolvable:$true] %s4712_s22 }
 0x6a4   : > { %s6419_s29 = scalar_lea.vmem %s4713_s22, 16  ;;  %s6425_s30 = scalar_lea.vmem %s4713_s22, 32 }
 0x6a5   : > { %p6420_p1 = scmp.ne.s32.totalorder %s4713_s22, %s6419_s29  ;;  %p6426_p8 = scmp.lt.s32.totalorder %s4713_s22, %s4713_s22 }
 0x6a6   : > { %p6427_p12 = scmp.lt.s32.totalorder %s6425_s30, %s6419_s29 }
 0x6a7   : > { %p6421_p4 = pnand %p6420_p1, %p5732_p10 }
 0x6a8   : > { %p6428_p0 = por %p6427_p12, %p6426_p8 }
 0x6a9   : > { %p6422_p5 = pneg %p6421_p4 }
 0x6ab   : > { %p6429_p2 = pnand %p6428_p0, %p6422_p5 }
 0x6ad   : > { %6432 = shalt.err (!%p6429_p2)
}
 0x6ae   : > { %s6433_s12 = scalar_lea.hbm %s7690_s7, 16 }
 0x6af   : > { %p6434_p11 = scmp.ne.s32.totalorder %s7690_s7, %s6433_s12  ;;  %p6439_p6 = scmp.lt.u32.totalorder %s6433_s12, %s7690_s7 }
 0x6b1   : > { %p6435_p13 = pnand %p6434_p11, %p5732_p10 }
 0x6b3   : > { %p6436_p3 = pneg %p6435_p13 }
 0x6b5   : > { %p6441_p7 = pnand %p6439_p6, %p6436_p3 }
 0x6b7   : > { %6444 = shalt.err (!%p6441_p7)
}
 0x6b8   : > { %5718 = dma.vmem_to_hbm [thread:$0]  (%p5732_p10), %s4713_s22, 16, %s7690_s7, [#allocation7]  }
 0x6b9   : > { %6470 = dma.done.wait (%p5732_p10), [#allocation7], 16  }
 0x6ba   : > { %6472 = vsyncadd (%p5732_p10), [#allocation7], 4294967280 }
 0x6bb PF: > { %p19_p9 = scmp.ge.s32.totalorder %s6587_s11, 5   ;;  %s7705_s24 = smov %s6479_s25 }
 0x6bc   : > { %s7706_s25 = smov %s6483_s26  ;;  %s7707_s26 = smov %s6613_s14 }
 0x6bd   : > { %s7708_s27 = smov %s6587_s11  ;;  %21 = sbr.rel (!%p19_p9) target bundleno = 5 (0x5), region = 97 }
 0x6c4   :  { %4725 = vsyncpa [#allocation6], 1 }
 0x6c5   :  { %4727 = vsyncpa [#allocation6 + $0x1], 1 }
 0x6c6   :  { %4728 = vsyncpa [#allocation9], 1 }
 0x6c7   :  { %4729 = vsyncpa [#allocation7], 1 }
 0x6c8   :  { %4731 = vsyncpa [#allocation7 + $0x1], 1 }

</bundles_post_ra>
